<compile_context>
chip_gen: v7x
topology: tpu7x:2x2x1
jax: 0.10.0
libtpu: 0.0.40
codegen_flags: <defaults>
</compile_context>

<pallas_src>
import functools

import jax
import jax.numpy as jnp
from jax import lax
from jax.experimental import pallas as pl
from jax.experimental.pallas import tpu as pltpu


def _round_up(x, m):
    return (x + m - 1) // m * m


def _vmem_capacity_bytes():
    try:
        return int(pltpu.get_tpu_info().vmem_capacity_bytes)
    except Exception:
        return 128 << 20


def _pick_row_tile(H, W, tap1, tap2, budget):
    """Largest multiple-of-8 row tile dividing H whose scratch fits `budget`."""
    best = None
    for t in range(8, H + 1, 8):
        if H % t:
            continue
        scratch = (4 * ((t + 4) * (W + 2) * tap1 + (t + 2) * (W + 2) * tap2)
                   + 2 * 9 * W * ((t + 2) * tap1 + t * tap2))
        if best is None or scratch <= budget:
            best = t
    return best if best is not None else H


# -----------------------------------------------------------------------------
# Fused kernel: upsample + concat + pad + conv1(BN,ReLU) + conv2(BN,ReLU) + SCSE
# -----------------------------------------------------------------------------
def _decoder_block_kernel(*refs, TR, W, Cx, Cs, C1, C2, tap1, tap2, nrt):
    Cin = Cx + Cs
    x_ref = refs[0]
    if Cs > 0:
        skip_ref = refs[1]
        rest = refs[2:]
    else:
        skip_ref = None
        rest = refs[1:]
    (w1_ref, scale1_ref, bias1_ref,
     w2_ref, scale2_ref, bias2_ref,
     se_w1_ref, se_b1_ref, se_w2_ref, se_b2_ref, se_ws_ref, se_bs_ref,
     o_ref, pad1_ref, pad2_ref, col1_ref, col2_ref) = rest

    r = pl.program_id(1)
    last = nrt - 1
    TRh = TR // 2
    rows1 = TR + 2                       # conv1 rows computed per tile (1-row halo)
    H = nrt * TR

    R0 = pl.multiple_of(r * TR, 8)       # first output row of this tile
    rh0 = r * TRh                        # first low-res input row of this tile

    # ---- 0. once per image: zero the pad scratch (borders + unused lanes) ----
    @pl.when(r == 0)
    def _():
        pad1_ref[...] = jnp.zeros_like(pad1_ref)
        pad2_ref[...] = jnp.zeros_like(pad2_ref)

    # ---- 1. nearest-x2 upsample (rows; width pre-doubled) + skip concat ------
    # main TR rows of this tile (upsampled rows [R0, R0+TR)): dense stores
    xs = x_ref[pl.ds(rh0, TRh), :, :]                              # (TRh, W, Cx)
    up = jnp.broadcast_to(xs[:, None, :, :], (TRh, 2, W, Cx)).reshape(TR, W, Cx)
    pad1_ref[2:TR + 2, 1:W + 1, 0:Cx] = up
    if skip_ref is not None:
        pad1_ref[2:TR + 2, 1:W + 1, Cx:Cin] = skip_ref[pl.ds(R0, TR), :, :]

    # 2-row top halo (upsampled rows R0-2, R0-1); zero at the image border
    @pl.when(r > 0)
    def _():
        xt = x_ref[pl.ds(rh0 - 1, 1), :, :]                        # (1, W, Cx)
        pad1_ref[0:2, 1:W + 1, 0:Cx] = jnp.broadcast_to(xt, (2, W, Cx))
        if skip_ref is not None:
            pad1_ref[0:2, 1:W + 1, Cx:Cin] = skip_ref[pl.ds(R0 - 2, 2), :, :]

    # 2-row bottom halo (upsampled rows R0+TR, R0+TR+1)
    @pl.when(r < last)
    def _():
        xb = x_ref[pl.ds(rh0 + TRh, 1), :, :]
        pad1_ref[TR + 2:TR + 4, 1:W + 1, 0:Cx] = jnp.broadcast_to(xb, (2, W, Cx))
        if skip_ref is not None:
            pad1_ref[TR + 2:TR + 4, 1:W + 1, Cx:Cin] = skip_ref[pl.ds(R0 + TR, 2), :, :]

    @pl.when(r == last)
    def _():
        pad1_ref[TR + 2:TR + 4, :, :] = jnp.zeros((2, W + 2, tap1), jnp.float32)

    # ---- 2. conv1 (3x3, pad 1) + folded BN + ReLU over TR+2 rows -------------
    # bf16 im2col with lane-aligned (multiple-of-128) per-tap stride.
    for k in range(9):
        ky, kx = divmod(k, 3)
        col1_ref[:, :, k * tap1:(k + 1) * tap1] = (
            pad1_ref[ky:ky + rows1, kx:kx + W, :].astype(jnp.bfloat16))
    acc1 = jnp.dot(col1_ref[...].reshape(rows1 * W, 9 * tap1), w1_ref[...],
                   preferred_element_type=jnp.float32)             # (rows1*W, C1)
    y1 = jnp.maximum(acc1 * scale1_ref[...] + bias1_ref[...], 0.0)
    pad2_ref[0:rows1, 1:W + 1, 0:C1] = y1.reshape(rows1, W, C1)

    # conv2 zero padding where the y1 halo row falls outside the image
    @pl.when(r == 0)
    def _():
        pad2_ref[0:1, :, :] = jnp.zeros((1, W + 2, tap2), jnp.float32)

    @pl.when(r == last)
    def _():
        pad2_ref[rows1 - 1:rows1, :, :] = jnp.zeros((1, W + 2, tap2), jnp.float32)

    # ---- 3. conv2 (3x3, pad 1) + folded BN + ReLU over the TR output rows ----
    for k in range(9):
        ky, kx = divmod(k, 3)
        col2_ref[:, :, k * tap2:(k + 1) * tap2] = (
            pad2_ref[ky:ky + TR, kx:kx + W, :].astype(jnp.bfloat16))
    acc2 = jnp.dot(col2_ref[...].reshape(TR * W, 9 * tap2), w2_ref[...],
                   preferred_element_type=jnp.float32)             # (TR*W, C2)
    y2 = jnp.maximum(acc2 * scale2_ref[...] + bias2_ref[...], 0.0)
    o_ref[pl.ds(R0, TR), :, :] = y2.reshape(TR, W, C2)

    # ---- 4. SCSE once per image, when all y2 row tiles are resident ----------
    @pl.when(r == last)
    def _():
        y2f = o_ref[...].reshape(H * W, C2)                        # full image, f32
        pooled = jnp.mean(y2f, axis=0, keepdims=True)              # (1, C2)
        hmid = jnp.maximum(
            jnp.dot(pooled, se_w1_ref[...], preferred_element_type=jnp.float32)
            + se_b1_ref[...], 0.0)
        gate_c = jax.nn.sigmoid(
            jnp.dot(hmid, se_w2_ref[...], preferred_element_type=jnp.float32)
            + se_b2_ref[...])                                      # (1, C2)
        gate_s = jax.nn.sigmoid(
            jnp.sum(y2f * se_ws_ref[...], axis=-1, keepdims=True)
            + se_bs_ref[...])                                      # (H*W, 1)
        o_ref[...] = (y2f * (gate_c + gate_s)).reshape(H, W, C2)


# -----------------------------------------------------------------------------
# Wrapper: NCHW boundary, grid = (batch, row tiles)
# -----------------------------------------------------------------------------
def decoder_block(x_nchw, skip_nchw, params, *, row_tile=None):
    N, Cx, H0, W0 = x_nchw.shape
    H, W = 2 * H0, 2 * W0
    assert H % 8 == 0 and W % 8 == 0, "upsampled H, W must be multiples of 8"

    # NCHW -> NHWC; width is pre-doubled here on the small low-res tensor so the
    # in-kernel upsample only replicates rows (dense full-width stores, no
    # per-column / strided scatter needed).
    x = jnp.repeat(jnp.transpose(x_nchw, (0, 2, 3, 1)), 2, axis=2)   # (N, H0, W, Cx)
    if skip_nchw is not None:
        skip = jnp.transpose(skip_nchw, (0, 2, 3, 1))                 # (N, H, W, Cs)
        Cs = skip.shape[-1]
        assert skip.shape[1] == H and skip.shape[2] == W
    else:
        skip, Cs = None, 0

    Cin = Cx + Cs
    C1 = params["w1"].shape[-1]
    C2 = params["w2"].shape[-1]
    tap1 = params["w1"].shape[0] // 9
    tap2 = params["w2"].shape[0] // 9
    assert tap1 >= Cin and tap2 >= C1

    vmem_cap = _vmem_capacity_bytes()
    if row_tile is None:
        row_tile = _pick_row_tile(H, W, tap1, tap2, budget=vmem_cap // 16)
    TR = row_tile
    assert TR % 8 == 0 and H % TR == 0, (TR, H)
    nrt = H // TR

    kernel = functools.partial(
        _decoder_block_kernel, TR=TR, W=W, Cx=Cx, Cs=Cs, C1=C1, C2=C2,
        tap1=tap1, tap2=tap2, nrt=nrt)

    def _full(arr):
        nd = arr.ndim
        return pl.BlockSpec(arr.shape, lambda n, r, _nd=nd: (0,) * _nd)

    inputs = [x]
    in_specs = [pl.BlockSpec((None, H0, W, Cx), lambda n, r: (n, 0, 0, 0))]
    if skip is not None:
        inputs.append(skip)
        in_specs.append(pl.BlockSpec((None, H, W, Cs), lambda n, r: (n, 0, 0, 0)))

    weights = [params["w1"], params["scale1"], params["bias1"],
               params["w2"], params["scale2"], params["bias2"],
               params["se_w1"], params["se_b1"], params["se_w2"],
               params["se_b2"], params["se_ws"], params["se_bs"]]
    in_specs += [_full(w) for w in weights]

    scratch = [
        pltpu.VMEM((TR + 4, W + 2, tap1), jnp.float32),    # padded upsample+concat tile
        pltpu.VMEM((TR + 2, W + 2, tap2), jnp.float32),    # padded conv1 activation tile
        pltpu.VMEM((TR + 2, W, 9 * tap1), jnp.bfloat16),   # conv1 im2col (bf16, aligned)
        pltpu.VMEM((TR, W, 9 * tap2), jnp.bfloat16),       # conv2 im2col (bf16, aligned)
    ]

    vmem_est = (
        2 * 4 * (H0 * W * Cx + H * W * Cs + H * W * C2)
        + 2 * 2 * 9 * (tap1 * C1 + tap2 * C2)
        + 4 * ((TR + 4) * (W + 2) * tap1 + (TR + 2) * (W + 2) * tap2)
        + 2 * 9 * W * ((TR + 2) * tap1 + TR * tap2)
        + (2 << 20))
    vmem_limit = int(min(max(vmem_est * 2, 16 << 20), vmem_cap - vmem_cap // 8))

    out_nhwc = pl.pallas_call(
        kernel,
        out_shape=jax.ShapeDtypeStruct((N, H, W, C2), jnp.float32),
        grid=(N, nrt),
        in_specs=in_specs,
        out_specs=pl.BlockSpec((None, H, W, C2), lambda n, r: (n, 0, 0, 0)),
        scratch_shapes=scratch,
        compiler_params=pltpu.CompilerParams(
            dimension_semantics=("parallel", "arbitrary"),
            vmem_limit_bytes=vmem_limit),
    )(*inputs, *weights)

    return jnp.transpose(out_nhwc, (0, 3, 1, 2))                      # back to NCHW


# -----------------------------------------------------------------------------
# Parameters (deterministic synthetic; PyTorch-equivalent layout) + reference
# -----------------------------------------------------------------------------
def make_params(key, in_channels, out_channels, reduction=16):
    ks = jax.random.split(key, 10)
    cmid = max(out_channels // reduction, 1)

    def conv_w(k, cin, cout):
        w = jax.random.normal(k, (cout, cin, 3, 3), jnp.float32) * 0.1  # PyTorch layout
        w_hwio = jnp.transpose(w, (2, 3, 1, 0))                         # (3,3,cin,cout)
        tap = _round_up(cin, 128)               # lane-aligned im2col tap stride
        w_mat = jnp.pad(w_hwio, ((0, 0), (0, 0), (0, tap - cin), (0, 0)))
        w_mat = w_mat.reshape(9 * tap, cout).astype(jnp.bfloat16)
        return w_mat, w_hwio

    def folded_bn(k, c, eps=1e-5):
        k1, k2, k3, k4 = jax.random.split(k, 4)
        gamma = jax.random.uniform(k1, (c,), jnp.float32, 0.5, 1.5)
        beta = jax.random.normal(k2, (c,), jnp.float32) * 0.1
        mean = jax.random.normal(k3, (c,), jnp.float32) * 0.1
        var = jax.random.uniform(k4, (c,), jnp.float32, 0.5, 1.5)
        scale = gamma / jnp.sqrt(var + eps)
        bias = beta - mean * scale
        return scale[None, :], bias[None, :]

    p = {}
    p["w1"], p["w1_raw"] = conv_w(ks[0], in_channels, out_channels)
    p["scale1"], p["bias1"] = folded_bn(ks[1], out_channels)
    p["w2"], p["w2_raw"] = conv_w(ks[2], out_channels, out_channels)
    p["scale2"], p["bias2"] = folded_bn(ks[3], out_channels)
    p["se_w1"] = jax.random.normal(ks[4], (out_channels, cmid), jnp.float32) * 0.1
    p["se_b1"] = jax.random.normal(ks[5], (1, cmid), jnp.float32) * 0.1
    p["se_w2"] = jax.random.normal(ks[6], (cmid, out_channels), jnp.float32) * 0.1
    p["se_b2"] = jax.random.normal(ks[7], (1, out_channels), jnp.float32) * 0.1
    p["se_ws"] = jax.random.normal(ks[8], (1, out_channels), jnp.float32) * 0.1
    p["se_bs"] = jax.random.normal(ks[9], (1, 1), jnp.float32) * 0.1
    return p


def decoder_block_reference(x_nchw, skip_nchw, params):
    """Pure-JAX reference with the same numerics (bf16 conv inputs, f32 acc)."""
    x = jnp.transpose(x_nchw, (0, 2, 3, 1))
    x = jnp.repeat(jnp.repeat(x, 2, axis=1), 2, axis=2)
    if skip_nchw is not None:
        x = jnp.concatenate([x, jnp.transpose(skip_nchw, (0, 2, 3, 1))], axis=-1)

    def conv_bn_relu(t, w_hwio, scale, bias):
        acc = lax.conv_general_dilated(
            t.astype(jnp.bfloat16), w_hwio.astype(jnp.bfloat16),
            window_strides=(1, 1), padding="SAME",
            dimension_numbers=("NHWC", "HWIO", "NHWC"),
            preferred_element_type=jnp.float32)
        return jnp.maximum(acc * scale.reshape(1, 1, 1, -1)
                           + bias.reshape(1, 1, 1, -1), 0.0)

    y = conv_bn_relu(x, params["w1_raw"], params["scale1"], params["bias1"])
    y = conv_bn_relu(y, params["w2_raw"], params["scale2"], params["bias2"])

    pooled = jnp.mean(y, axis=(1, 2), keepdims=True)
    hmid = jnp.maximum(
        jnp.einsum("nijc,cm->nijm", pooled, params["se_w1"])
        + params["se_b1"].reshape(1, 1, 1, -1), 0.0)
    gate_c = jax.nn.sigmoid(
        jnp.einsum("nijm,mc->nijc", hmid, params["se_w2"])
        + params["se_b2"].reshape(1, 1, 1, -1))
    gate_s = jax.nn.sigmoid(
        jnp.sum(y * params["se_ws"].reshape(1, 1, 1, -1), axis=-1, keepdims=True)
        + params["se_bs"].reshape(1, 1, 1, 1))
    out = y * (gate_c + gate_s)
    return jnp.transpose(out, (0, 3, 1, 2))


if __name__ == "__main__":
    key = jax.random.PRNGKey(0)
    k_x, k_skip, k_p = jax.random.split(key, 3)

    N, Cx, H0, W0 = 2, 8, 8, 8           # low-res feature map
    Cskip = 8                            # skip connection at 2x resolution
    out_channels = 32                    # SCSE reduction 16 -> Cmid = 2
    in_channels = Cx + Cskip

    x = jax.random.normal(k_x, (N, Cx, H0, W0), jnp.float32)
    skip = jax.random.normal(k_skip, (N, Cskip, 2 * H0, 2 * W0), jnp.float32)
    params = make_params(k_p, in_channels, out_channels)

    out = decoder_block(x, skip, params, row_tile=8)   # 2 row tiles -> halos exercised
    out = jax.block_until_ready(out)
    assert out.shape == (N, out_channels, 2 * H0, 2 * W0), out.shape
    assert bool(jnp.all(jnp.isfinite(out)))

    ref = jax.block_until_ready(decoder_block_reference(x, skip, params))
    err = float(jnp.max(jnp.abs(out - ref)))
    assert err < 5e-2, f"max abs err vs reference: {err}"
    print("KERNEL_OK")
</pallas_src>

<mosaic_0001>
module attributes {stable_mosaic.version = 11 : i64} {
  func.func @_decoder_block_kernel(%arg0: i32, %arg1: i32, %arg2: memref<1x8x16x8xf32, #tpu.memory_space<vmem>>, %arg3: memref<1x16x16x8xf32, #tpu.memory_space<vmem>>, %arg4: memref<1152x32xbf16, #tpu.memory_space<vmem>>, %arg5: memref<1x32xf32, #tpu.memory_space<vmem>>, %arg6: memref<1x32xf32, #tpu.memory_space<vmem>>, %arg7: memref<1152x32xbf16, #tpu.memory_space<vmem>>, %arg8: memref<1x32xf32, #tpu.memory_space<vmem>>, %arg9: memref<1x32xf32, #tpu.memory_space<vmem>>, %arg10: memref<32x2xf32, #tpu.memory_space<vmem>>, %arg11: memref<1x2xf32, #tpu.memory_space<vmem>>, %arg12: memref<2x32xf32, #tpu.memory_space<vmem>>, %arg13: memref<1x32xf32, #tpu.memory_space<vmem>>, %arg14: memref<1x32xf32, #tpu.memory_space<vmem>>, %arg15: memref<1x1xf32, #tpu.memory_space<vmem>>, %arg16: memref<1x16x16x32xf32, #tpu.memory_space<vmem>>, %arg17: memref<12x18x128xf32, #tpu.memory_space<vmem>>, %arg18: memref<10x18x128xf32, #tpu.memory_space<vmem>>, %arg19: memref<10x16x1152xbf16, #tpu.memory_space<vmem>>, %arg20: memref<8x16x1152xbf16, #tpu.memory_space<vmem>>) attributes {dimension_semantics = [#tpu.dimension_semantics<parallel>, #tpu.dimension_semantics<arbitrary>], iteration_bounds = array<i64: 2, 2>, scalar_prefetch = 0 : i64, scratch_operands = 4 : i64, tpu.core_type = #tpu.core_type<tc>, window_params = [{transform_indices = @transform_0, window_bounds = array<i64: 1, 8, 16, 8>}, {transform_indices = @transform_1, window_bounds = array<i64: 1, 16, 16, 8>}, {pipeline_mode = #tpu.pipeline_mode<synchronous>, transform_indices = @transform_2, window_bounds = array<i64: 1152, 32>}, {pipeline_mode = #tpu.pipeline_mode<synchronous>, transform_indices = @transform_3, window_bounds = array<i64: 1, 32>}, {pipeline_mode = #tpu.pipeline_mode<synchronous>, transform_indices = @transform_4, window_bounds = array<i64: 1, 32>}, {pipeline_mode = #tpu.pipeline_mode<synchronous>, transform_indices = @transform_5, window_bounds = array<i64: 1152, 32>}, {pipeline_mode = #tpu.pipeline_mode<synchronous>, transform_indices = @transform_6, window_bounds = array<i64: 1, 32>}, {pipeline_mode = #tpu.pipeline_mode<synchronous>, transform_indices = @transform_7, window_bounds = array<i64: 1, 32>}, {pipeline_mode = #tpu.pipeline_mode<synchronous>, transform_indices = @transform_8, window_bounds = array<i64: 32, 2>}, {pipeline_mode = #tpu.pipeline_mode<synchronous>, transform_indices = @transform_9, window_bounds = array<i64: 1, 2>}, {pipeline_mode = #tpu.pipeline_mode<synchronous>, transform_indices = @transform_10, window_bounds = array<i64: 2, 32>}, {pipeline_mode = #tpu.pipeline_mode<synchronous>, transform_indices = @transform_11, window_bounds = array<i64: 1, 32>}, {pipeline_mode = #tpu.pipeline_mode<synchronous>, transform_indices = @transform_12, window_bounds = array<i64: 1, 32>}, {pipeline_mode = #tpu.pipeline_mode<synchronous>, transform_indices = @transform_13, window_bounds = array<i64: 1, 1>}, {transform_indices = @transform_14, window_bounds = array<i64: 1, 16, 16, 32>}]} {
    %c8_i32 = arith.constant 8 : i32
    %0 = arith.muli %arg1, %c8_i32 : i32
    %1 = tpu.assume_multiple %0, 8 : i32
    %c4_i32 = arith.constant 4 : i32
    %2 = arith.muli %arg1, %c4_i32 : i32
    %c0_i32 = arith.constant 0 : i32
    %3 = arith.cmpi eq, %arg1, %c0_i32 : i32
    %4 = arith.extui %3 : i1 to i32
    %c0_i32_0 = arith.constant 0 : i32
    %5 = arith.cmpi ne, %4, %c0_i32_0 : i32
    scf.if %5 {
      %cst_147 = arith.constant 0.000000e+00 : f32
      %121 = vector.broadcast %cst_147 : f32 to vector<12x18x128xf32>
      %c0_148 = arith.constant 0 : index
      %c0_149 = arith.constant 0 : index
      %c0_150 = arith.constant 0 : index
      %122 = vector.load %arg17[%c0_148, %c0_149, %c0_150] : memref<12x18x128xf32, #tpu.memory_space<vmem>>, vector<12x18x128xf32>
      tpu.vector_store %arg17[%c0_148, %c0_149, %c0_150], %121 {strides = array<i32>} : memref<12x18x128xf32, #tpu.memory_space<vmem>>, vector<12x18x128xf32>,
      %cst_151 = arith.constant 0.000000e+00 : f32
      %123 = vector.broadcast %cst_151 : f32 to vector<10x18x128xf32>
      %c0_152 = arith.constant 0 : index
      %c0_153 = arith.constant 0 : index
      %c0_154 = arith.constant 0 : index
      %124 = vector.load %arg18[%c0_152, %c0_153, %c0_154] : memref<10x18x128xf32, #tpu.memory_space<vmem>>, vector<10x18x128xf32>
      tpu.vector_store %arg18[%c0_152, %c0_153, %c0_154], %123 {strides = array<i32>} : memref<10x18x128xf32, #tpu.memory_space<vmem>>, vector<10x18x128xf32>,
    } else {
    }
    %c0 = arith.constant 0 : index
    %6 = arith.index_cast %2 : i32 to index
    %c0_1 = arith.constant 0 : index
    %c0_2 = arith.constant 0 : index
    %7 = vector.load %arg2[%c0, %6, %c0_1, %c0_2] : memref<1x8x16x8xf32, #tpu.memory_space<vmem>>, vector<1x4x16x8xf32>
    %8 = vector.shape_cast %7 : vector<1x4x16x8xf32> to vector<4x16x8xf32>
    %9 = vector.shape_cast %8 : vector<4x16x8xf32> to vector<4x1x16x8xf32>
    %10 = vector.shape_cast %9 : vector<4x1x16x8xf32> to vector<4x1x16x8xf32>
    %11 = vector.broadcast %10 : vector<4x1x16x8xf32> to vector<4x2x16x8xf32>
    %12 = vector.shape_cast %11 : vector<4x2x16x8xf32> to vector<8x16x8xf32>
    %c2 = arith.constant 2 : index
    %c1 = arith.constant 1 : index
    %c0_3 = arith.constant 0 : index
    %13 = vector.load %arg17[%c2, %c1, %c0_3] : memref<12x18x128xf32, #tpu.memory_space<vmem>>, vector<8x16x8xf32>
    tpu.vector_store %arg17[%c2, %c1, %c0_3], %12 {strides = array<i32>} : memref<12x18x128xf32, #tpu.memory_space<vmem>>, vector<8x16x8xf32>,
    %c0_4 = arith.constant 0 : index
    %14 = arith.index_cast %1 : i32 to index
    %c0_5 = arith.constant 0 : index
    %c0_6 = arith.constant 0 : index
    %15 = vector.load %arg3[%c0_4, %14, %c0_5, %c0_6] : memref<1x16x16x8xf32, #tpu.memory_space<vmem>>, vector<1x8x16x8xf32>
    %16 = vector.shape_cast %15 : vector<1x8x16x8xf32> to vector<8x16x8xf32>
    %c2_7 = arith.constant 2 : index
    %c1_8 = arith.constant 1 : index
    %c8 = arith.constant 8 : index
    %17 = vector.load %arg17[%c2_7, %c1_8, %c8] : memref<12x18x128xf32, #tpu.memory_space<vmem>>, vector<8x16x8xf32>
    tpu.vector_store %arg17[%c2_7, %c1_8, %c8], %16 {strides = array<i32>} : memref<12x18x128xf32, #tpu.memory_space<vmem>>, vector<8x16x8xf32>,
    %c0_i32_9 = arith.constant 0 : i32
    %18 = arith.cmpi sgt, %arg1, %c0_i32_9 : i32
    %19 = arith.extui %18 : i1 to i32
    %c0_i32_10 = arith.constant 0 : i32
    %20 = arith.cmpi ne, %19, %c0_i32_10 : i32
    scf.if %20 {
      %c1_i32_147 = arith.constant 1 : i32
      %121 = arith.subi %2, %c1_i32_147 : i32
      %c0_148 = arith.constant 0 : index
      %122 = arith.index_cast %121 : i32 to index
      %c0_149 = arith.constant 0 : index
      %c0_150 = arith.constant 0 : index
      %123 = vector.load %arg2[%c0_148, %122, %c0_149, %c0_150] : memref<1x8x16x8xf32, #tpu.memory_space<vmem>>, vector<1x1x16x8xf32>
      %124 = vector.shape_cast %123 : vector<1x1x16x8xf32> to vector<1x16x8xf32>
      %125 = vector.shape_cast %124 : vector<1x16x8xf32> to vector<1x16x8xf32>
      %126 = vector.broadcast %125 : vector<1x16x8xf32> to vector<2x16x8xf32>
      %c0_151 = arith.constant 0 : index
      %c1_152 = arith.constant 1 : index
      %c0_153 = arith.constant 0 : index
      %127 = vector.load %arg17[%c0_151, %c1_152, %c0_153] : memref<12x18x128xf32, #tpu.memory_space<vmem>>, vector<2x16x8xf32>
      tpu.vector_store %arg17[%c0_151, %c1_152, %c0_153], %126 {strides = array<i32>} : memref<12x18x128xf32, #tpu.memory_space<vmem>>, vector<2x16x8xf32>,
      %c2_i32 = arith.constant 2 : i32
      %128 = arith.subi %1, %c2_i32 : i32
      %c0_154 = arith.constant 0 : index
      %129 = arith.index_cast %128 : i32 to index
      %c0_155 = arith.constant 0 : index
      %c0_156 = arith.constant 0 : index
      %130 = vector.load %arg3[%c0_154, %129, %c0_155, %c0_156] : memref<1x16x16x8xf32, #tpu.memory_space<vmem>>, vector<1x2x16x8xf32>
      %131 = vector.shape_cast %130 : vector<1x2x16x8xf32> to vector<2x16x8xf32>
      %c0_157 = arith.constant 0 : index
      %c1_158 = arith.constant 1 : index
      %c8_159 = arith.constant 8 : index
      %132 = vector.load %arg17[%c0_157, %c1_158, %c8_159] : memref<12x18x128xf32, #tpu.memory_space<vmem>>, vector<2x16x8xf32>
      tpu.vector_store %arg17[%c0_157, %c1_158, %c8_159], %131 {strides = array<i32>} : memref<12x18x128xf32, #tpu.memory_space<vmem>>, vector<2x16x8xf32>,
    } else {
    }
    %c1_i32 = arith.constant 1 : i32
    %21 = arith.cmpi slt, %arg1, %c1_i32 : i32
    %22 = arith.extui %21 : i1 to i32
    %c0_i32_11 = arith.constant 0 : i32
    %23 = arith.cmpi ne, %22, %c0_i32_11 : i32
    scf.if %23 {
      %c4_i32_147 = arith.constant 4 : i32
      %121 = arith.addi %2, %c4_i32_147 : i32
      %c0_148 = arith.constant 0 : index
      %122 = arith.index_cast %121 : i32 to index
      %c0_149 = arith.constant 0 : index
      %c0_150 = arith.constant 0 : index
      %123 = vector.load %arg2[%c0_148, %122, %c0_149, %c0_150] : memref<1x8x16x8xf32, #tpu.memory_space<vmem>>, vector<1x1x16x8xf32>
      %124 = vector.shape_cast %123 : vector<1x1x16x8xf32> to vector<1x16x8xf32>
      %125 = vector.shape_cast %124 : vector<1x16x8xf32> to vector<1x16x8xf32>
      %126 = vector.broadcast %125 : vector<1x16x8xf32> to vector<2x16x8xf32>
      %c10 = arith.constant 10 : index
      %c1_151 = arith.constant 1 : index
      %c0_152 = arith.constant 0 : index
      %127 = vector.load %arg17[%c10, %c1_151, %c0_152] : memref<12x18x128xf32, #tpu.memory_space<vmem>>, vector<2x16x8xf32>
      tpu.vector_store %arg17[%c10, %c1_151, %c0_152], %126 {strides = array<i32>} : memref<12x18x128xf32, #tpu.memory_space<vmem>>, vector<2x16x8xf32>,
      %c8_i32_153 = arith.constant 8 : i32
      %128 = arith.addi %1, %c8_i32_153 : i32
      %c0_154 = arith.constant 0 : index
      %129 = arith.index_cast %128 : i32 to index
      %c0_155 = arith.constant 0 : index
      %c0_156 = arith.constant 0 : index
      %130 = vector.load %arg3[%c0_154, %129, %c0_155, %c0_156] : memref<1x16x16x8xf32, #tpu.memory_space<vmem>>, vector<1x2x16x8xf32>
      %131 = vector.shape_cast %130 : vector<1x2x16x8xf32> to vector<2x16x8xf32>
      %c10_157 = arith.constant 10 : index
      %c1_158 = arith.constant 1 : index
      %c8_159 = arith.constant 8 : index
      %132 = vector.load %arg17[%c10_157, %c1_158, %c8_159] : memref<12x18x128xf32, #tpu.memory_space<vmem>>, vector<2x16x8xf32>
      tpu.vector_store %arg17[%c10_157, %c1_158, %c8_159], %131 {strides = array<i32>} : memref<12x18x128xf32, #tpu.memory_space<vmem>>, vector<2x16x8xf32>,
    } else {
    }
    %c1_i32_12 = arith.constant 1 : i32
    %24 = arith.cmpi eq, %arg1, %c1_i32_12 : i32
    %25 = arith.extui %24 : i1 to i32
    %c0_i32_13 = arith.constant 0 : i32
    %26 = arith.cmpi ne, %25, %c0_i32_13 : i32
    scf.if %26 {
      %cst_147 = arith.constant 0.000000e+00 : f32
      %121 = vector.broadcast %cst_147 : f32 to vector<2x18x128xf32>
      %c10 = arith.constant 10 : index
      %c0_148 = arith.constant 0 : index
      %c0_149 = arith.constant 0 : index
      %122 = vector.load %arg17[%c10, %c0_148, %c0_149] : memref<12x18x128xf32, #tpu.memory_space<vmem>>, vector<2x18x128xf32>
      tpu.vector_store %arg17[%c10, %c0_148, %c0_149], %121 {strides = array<i32>} : memref<12x18x128xf32, #tpu.memory_space<vmem>>, vector<2x18x128xf32>,
    } else {
    }
    %c0_14 = arith.constant 0 : index
    %c0_15 = arith.constant 0 : index
    %c0_16 = arith.constant 0 : index
    %27 = vector.load %arg17[%c0_14, %c0_15, %c0_16] : memref<12x18x128xf32, #tpu.memory_space<vmem>>, vector<10x16x128xf32>
    %28 = arith.truncf %27 : vector<10x16x128xf32> to vector<10x16x128xbf16>
    %c0_17 = arith.constant 0 : index
    %c0_18 = arith.constant 0 : index
    %c0_19 = arith.constant 0 : index
    %29 = vector.load %arg19[%c0_17, %c0_18, %c0_19] : memref<10x16x1152xbf16, #tpu.memory_space<vmem>>, vector<10x16x128xbf16>
    tpu.vector_store %arg19[%c0_17, %c0_18, %c0_19], %28 {strides = array<i32>} : memref<10x16x1152xbf16, #tpu.memory_space<vmem>>, vector<10x16x128xbf16>,
    %c0_20 = arith.constant 0 : index
    %c1_21 = arith.constant 1 : index
    %c0_22 = arith.constant 0 : index
    %30 = vector.load %arg17[%c0_20, %c1_21, %c0_22] : memref<12x18x128xf32, #tpu.memory_space<vmem>>, vector<10x16x128xf32>
    %31 = arith.truncf %30 : vector<10x16x128xf32> to vector<10x16x128xbf16>
    %c0_23 = arith.constant 0 : index
    %c0_24 = arith.constant 0 : index
    %c128 = arith.constant 128 : index
    %32 = vector.load %arg19[%c0_23, %c0_24, %c128] : memref<10x16x1152xbf16, #tpu.memory_space<vmem>>, vector<10x16x128xbf16>
    tpu.vector_store %arg19[%c0_23, %c0_24, %c128], %31 {strides = array<i32>} : memref<10x16x1152xbf16, #tpu.memory_space<vmem>>, vector<10x16x128xbf16>,
    %c0_25 = arith.constant 0 : index
    %c2_26 = arith.constant 2 : index
    %c0_27 = arith.constant 0 : index
    %33 = vector.load %arg17[%c0_25, %c2_26, %c0_27] : memref<12x18x128xf32, #tpu.memory_space<vmem>>, vector<10x16x128xf32>
    %34 = arith.truncf %33 : vector<10x16x128xf32> to vector<10x16x128xbf16>
    %c0_28 = arith.constant 0 : index
    %c0_29 = arith.constant 0 : index
    %c256 = arith.constant 256 : index
    %35 = vector.load %arg19[%c0_28, %c0_29, %c256] : memref<10x16x1152xbf16, #tpu.memory_space<vmem>>, vector<10x16x128xbf16>
    tpu.vector_store %arg19[%c0_28, %c0_29, %c256], %34 {strides = array<i32>} : memref<10x16x1152xbf16, #tpu.memory_space<vmem>>, vector<10x16x128xbf16>,
    %c1_30 = arith.constant 1 : index
    %c0_31 = arith.constant 0 : index
    %c0_32 = arith.constant 0 : index
    %36 = vector.load %arg17[%c1_30, %c0_31, %c0_32] : memref<12x18x128xf32, #tpu.memory_space<vmem>>, vector<10x16x128xf32>
    %37 = arith.truncf %36 : vector<10x16x128xf32> to vector<10x16x128xbf16>
    %c0_33 = arith.constant 0 : index
    %c0_34 = arith.constant 0 : index
    %c384 = arith.constant 384 : index
    %38 = vector.load %arg19[%c0_33, %c0_34, %c384] : memref<10x16x1152xbf16, #tpu.memory_space<vmem>>, vector<10x16x128xbf16>
    tpu.vector_store %arg19[%c0_33, %c0_34, %c384], %37 {strides = array<i32>} : memref<10x16x1152xbf16, #tpu.memory_space<vmem>>, vector<10x16x128xbf16>,
    %c1_35 = arith.constant 1 : index
    %c1_36 = arith.constant 1 : index
    %c0_37 = arith.constant 0 : index
    %39 = vector.load %arg17[%c1_35, %c1_36, %c0_37] : memref<12x18x128xf32, #tpu.memory_space<vmem>>, vector<10x16x128xf32>
    %40 = arith.truncf %39 : vector<10x16x128xf32> to vector<10x16x128xbf16>
    %c0_38 = arith.constant 0 : index
    %c0_39 = arith.constant 0 : index
    %c512 = arith.constant 512 : index
    %41 = vector.load %arg19[%c0_38, %c0_39, %c512] : memref<10x16x1152xbf16, #tpu.memory_space<vmem>>, vector<10x16x128xbf16>
    tpu.vector_store %arg19[%c0_38, %c0_39, %c512], %40 {strides = array<i32>} : memref<10x16x1152xbf16, #tpu.memory_space<vmem>>, vector<10x16x128xbf16>,
    %c1_40 = arith.constant 1 : index
    %c2_41 = arith.constant 2 : index
    %c0_42 = arith.constant 0 : index
    %42 = vector.load %arg17[%c1_40, %c2_41, %c0_42] : memref<12x18x128xf32, #tpu.memory_space<vmem>>, vector<10x16x128xf32>
    %43 = arith.truncf %42 : vector<10x16x128xf32> to vector<10x16x128xbf16>
    %c0_43 = arith.constant 0 : index
    %c0_44 = arith.constant 0 : index
    %c640 = arith.constant 640 : index
    %44 = vector.load %arg19[%c0_43, %c0_44, %c640] : memref<10x16x1152xbf16, #tpu.memory_space<vmem>>, vector<10x16x128xbf16>
    tpu.vector_store %arg19[%c0_43, %c0_44, %c640], %43 {strides = array<i32>} : memref<10x16x1152xbf16, #tpu.memory_space<vmem>>, vector<10x16x128xbf16>,
    %c2_45 = arith.constant 2 : index
    %c0_46 = arith.constant 0 : index
    %c0_47 = arith.constant 0 : index
    %45 = vector.load %arg17[%c2_45, %c0_46, %c0_47] : memref<12x18x128xf32, #tpu.memory_space<vmem>>, vector<10x16x128xf32>
    %46 = arith.truncf %45 : vector<10x16x128xf32> to vector<10x16x128xbf16>
    %c0_48 = arith.constant 0 : index
    %c0_49 = arith.constant 0 : index
    %c768 = arith.constant 768 : index
    %47 = vector.load %arg19[%c0_48, %c0_49, %c768] : memref<10x16x1152xbf16, #tpu.memory_space<vmem>>, vector<10x16x128xbf16>
    tpu.vector_store %arg19[%c0_48, %c0_49, %c768], %46 {strides = array<i32>} : memref<10x16x1152xbf16, #tpu.memory_space<vmem>>, vector<10x16x128xbf16>,
    %c2_50 = arith.constant 2 : index
    %c1_51 = arith.constant 1 : index
    %c0_52 = arith.constant 0 : index
    %48 = vector.load %arg17[%c2_50, %c1_51, %c0_52] : memref<12x18x128xf32, #tpu.memory_space<vmem>>, vector<10x16x128xf32>
    %49 = arith.truncf %48 : vector<10x16x128xf32> to vector<10x16x128xbf16>
    %c0_53 = arith.constant 0 : index
    %c0_54 = arith.constant 0 : index
    %c896 = arith.constant 896 : index
    %50 = vector.load %arg19[%c0_53, %c0_54, %c896] : memref<10x16x1152xbf16, #tpu.memory_space<vmem>>, vector<10x16x128xbf16>
    tpu.vector_store %arg19[%c0_53, %c0_54, %c896], %49 {strides = array<i32>} : memref<10x16x1152xbf16, #tpu.memory_space<vmem>>, vector<10x16x128xbf16>,
    %c2_55 = arith.constant 2 : index
    %c2_56 = arith.constant 2 : index
    %c0_57 = arith.constant 0 : index
    %51 = vector.load %arg17[%c2_55, %c2_56, %c0_57] : memref<12x18x128xf32, #tpu.memory_space<vmem>>, vector<10x16x128xf32>
    %52 = arith.truncf %51 : vector<10x16x128xf32> to vector<10x16x128xbf16>
    %c0_58 = arith.constant 0 : index
    %c0_59 = arith.constant 0 : index
    %c1024 = arith.constant 1024 : index
    %53 = vector.load %arg19[%c0_58, %c0_59, %c1024] : memref<10x16x1152xbf16, #tpu.memory_space<vmem>>, vector<10x16x128xbf16>
    tpu.vector_store %arg19[%c0_58, %c0_59, %c1024], %52 {strides = array<i32>} : memref<10x16x1152xbf16, #tpu.memory_space<vmem>>, vector<10x16x128xbf16>,
    %c0_60 = arith.constant 0 : index
    %c0_61 = arith.constant 0 : index
    %c0_62 = arith.constant 0 : index
    %54 = vector.load %arg19[%c0_60, %c0_61, %c0_62] : memref<10x16x1152xbf16, #tpu.memory_space<vmem>>, vector<10x16x1152xbf16>
    %55 = vector.shape_cast %54 : vector<10x16x1152xbf16> to vector<160x1152xbf16>
    %c0_63 = arith.constant 0 : index
    %c0_64 = arith.constant 0 : index
    %56 = vector.load %arg4[%c0_63, %c0_64] : memref<1152x32xbf16, #tpu.memory_space<vmem>>, vector<1152x32xbf16>
    %cst = arith.constant dense<0.000000e+00> : vector<160x32xf32>
    %57 = tpu.matmul %55, %56, %cst {dimension_numbers = #tpu.dot_dimension_numbers<[1], [0], [0], [1], [0, 0, 1, 1], [], []>} : vector<160x1152xbf16>, vector<1152x32xbf16>, vector<160x32xf32> -> vector<160x32xf32>
    %c0_65 = arith.constant 0 : index
    %c0_66 = arith.constant 0 : index
    %58 = vector.load %arg5[%c0_65, %c0_66] : memref<1x32xf32, #tpu.memory_space<vmem>>, vector<1x32xf32>
    %59 = vector.broadcast %58 : vector<1x32xf32> to vector<160x32xf32>
    %60 = arith.mulf %57, %59 : vector<160x32xf32>
    %c0_67 = arith.constant 0 : index
    %c0_68 = arith.constant 0 : index
    %61 = vector.load %arg6[%c0_67, %c0_68] : memref<1x32xf32, #tpu.memory_space<vmem>>, vector<1x32xf32>
    %62 = vector.broadcast %61 : vector<1x32xf32> to vector<160x32xf32>
    %63 = arith.addf %60, %62 : vector<160x32xf32>
    %cst_69 = arith.constant 0.000000e+00 : f32
    %64 = vector.broadcast %cst_69 : f32 to vector<160x32xf32>
    %65 = arith.maximumf %63, %64 : vector<160x32xf32>
    %66 = vector.shape_cast %65 : vector<160x32xf32> to vector<10x16x32xf32>
    %c0_70 = arith.constant 0 : index
    %c1_71 = arith.constant 1 : index
    %c0_72 = arith.constant 0 : index
    %67 = vector.load %arg18[%c0_70, %c1_71, %c0_72] : memref<10x18x128xf32, #tpu.memory_space<vmem>>, vector<10x16x32xf32>
    tpu.vector_store %arg18[%c0_70, %c1_71, %c0_72], %66 {strides = array<i32>} : memref<10x18x128xf32, #tpu.memory_space<vmem>>, vector<10x16x32xf32>,
    %c0_i32_73 = arith.constant 0 : i32
    %68 = arith.cmpi eq, %arg1, %c0_i32_73 : i32
    %69 = arith.extui %68 : i1 to i32
    %c0_i32_74 = arith.constant 0 : i32
    %70 = arith.cmpi ne, %69, %c0_i32_74 : i32
    scf.if %70 {
      %cst_147 = arith.constant 0.000000e+00 : f32
      %121 = vector.broadcast %cst_147 : f32 to vector<1x18x128xf32>
      %c0_148 = arith.constant 0 : index
      %c0_149 = arith.constant 0 : index
      %c0_150 = arith.constant 0 : index
      %122 = vector.load %arg18[%c0_148, %c0_149, %c0_150] : memref<10x18x128xf32, #tpu.memory_space<vmem>>, vector<1x18x128xf32>
      tpu.vector_store %arg18[%c0_148, %c0_149, %c0_150], %121 {strides = array<i32>} : memref<10x18x128xf32, #tpu.memory_space<vmem>>, vector<1x18x128xf32>,
    } else {
    }
    %c1_i32_75 = arith.constant 1 : i32
    %71 = arith.cmpi eq, %arg1, %c1_i32_75 : i32
    %72 = arith.extui %71 : i1 to i32
    %c0_i32_76 = arith.constant 0 : i32
    %73 = arith.cmpi ne, %72, %c0_i32_76 : i32
    scf.if %73 {
      %cst_147 = arith.constant 0.000000e+00 : f32
      %121 = vector.broadcast %cst_147 : f32 to vector<1x18x128xf32>
      %c9 = arith.constant 9 : index
      %c0_148 = arith.constant 0 : index
      %c0_149 = arith.constant 0 : index
      %122 = vector.load %arg18[%c9, %c0_148, %c0_149] : memref<10x18x128xf32, #tpu.memory_space<vmem>>, vector<1x18x128xf32>
      tpu.vector_store %arg18[%c9, %c0_148, %c0_149], %121 {strides = array<i32>} : memref<10x18x128xf32, #tpu.memory_space<vmem>>, vector<1x18x128xf32>,
    } else {
    }
    %c0_77 = arith.constant 0 : index
    %c0_78 = arith.constant 0 : index
    %c0_79 = arith.constant 0 : index
    %74 = vector.load %arg18[%c0_77, %c0_78, %c0_79] : memref<10x18x128xf32, #tpu.memory_space<vmem>>, vector<8x16x128xf32>
    %75 = arith.truncf %74 : vector<8x16x128xf32> to vector<8x16x128xbf16>
    %c0_80 = arith.constant 0 : index
    %c0_81 = arith.constant 0 : index
    %c0_82 = arith.constant 0 : index
    %76 = vector.load %arg20[%c0_80, %c0_81, %c0_82] : memref<8x16x1152xbf16, #tpu.memory_space<vmem>>, vector<8x16x128xbf16>
    tpu.vector_store %arg20[%c0_80, %c0_81, %c0_82], %75 {strides = array<i32>} : memref<8x16x1152xbf16, #tpu.memory_space<vmem>>, vector<8x16x128xbf16>,
    %c0_83 = arith.constant 0 : index
    %c1_84 = arith.constant 1 : index
    %c0_85 = arith.constant 0 : index
    %77 = vector.load %arg18[%c0_83, %c1_84, %c0_85] : memref<10x18x128xf32, #tpu.memory_space<vmem>>, vector<8x16x128xf32>
    %78 = arith.truncf %77 : vector<8x16x128xf32> to vector<8x16x128xbf16>
    %c0_86 = arith.constant 0 : index
    %c0_87 = arith.constant 0 : index
    %c128_88 = arith.constant 128 : index
    %79 = vector.load %arg20[%c0_86, %c0_87, %c128_88] : memref<8x16x1152xbf16, #tpu.memory_space<vmem>>, vector<8x16x128xbf16>
    tpu.vector_store %arg20[%c0_86, %c0_87, %c128_88], %78 {strides = array<i32>} : memref<8x16x1152xbf16, #tpu.memory_space<vmem>>, vector<8x16x128xbf16>,
    %c0_89 = arith.constant 0 : index
    %c2_90 = arith.constant 2 : index
    %c0_91 = arith.constant 0 : index
    %80 = vector.load %arg18[%c0_89, %c2_90, %c0_91] : memref<10x18x128xf32, #tpu.memory_space<vmem>>, vector<8x16x128xf32>
    %81 = arith.truncf %80 : vector<8x16x128xf32> to vector<8x16x128xbf16>
    %c0_92 = arith.constant 0 : index
    %c0_93 = arith.constant 0 : index
    %c256_94 = arith.constant 256 : index
    %82 = vector.load %arg20[%c0_92, %c0_93, %c256_94] : memref<8x16x1152xbf16, #tpu.memory_space<vmem>>, vector<8x16x128xbf16>
    tpu.vector_store %arg20[%c0_92, %c0_93, %c256_94], %81 {strides = array<i32>} : memref<8x16x1152xbf16, #tpu.memory_space<vmem>>, vector<8x16x128xbf16>,
    %c1_95 = arith.constant 1 : index
    %c0_96 = arith.constant 0 : index
    %c0_97 = arith.constant 0 : index
    %83 = vector.load %arg18[%c1_95, %c0_96, %c0_97] : memref<10x18x128xf32, #tpu.memory_space<vmem>>, vector<8x16x128xf32>
    %84 = arith.truncf %83 : vector<8x16x128xf32> to vector<8x16x128xbf16>
    %c0_98 = arith.constant 0 : index
    %c0_99 = arith.constant 0 : index
    %c384_100 = arith.constant 384 : index
    %85 = vector.load %arg20[%c0_98, %c0_99, %c384_100] : memref<8x16x1152xbf16, #tpu.memory_space<vmem>>, vector<8x16x128xbf16>
    tpu.vector_store %arg20[%c0_98, %c0_99, %c384_100], %84 {strides = array<i32>} : memref<8x16x1152xbf16, #tpu.memory_space<vmem>>, vector<8x16x128xbf16>,
    %c1_101 = arith.constant 1 : index
    %c1_102 = arith.constant 1 : index
    %c0_103 = arith.constant 0 : index
    %86 = vector.load %arg18[%c1_101, %c1_102, %c0_103] : memref<10x18x128xf32, #tpu.memory_space<vmem>>, vector<8x16x128xf32>
    %87 = arith.truncf %86 : vector<8x16x128xf32> to vector<8x16x128xbf16>
    %c0_104 = arith.constant 0 : index
    %c0_105 = arith.constant 0 : index
    %c512_106 = arith.constant 512 : index
    %88 = vector.load %arg20[%c0_104, %c0_105, %c512_106] : memref<8x16x1152xbf16, #tpu.memory_space<vmem>>, vector<8x16x128xbf16>
    tpu.vector_store %arg20[%c0_104, %c0_105, %c512_106], %87 {strides = array<i32>} : memref<8x16x1152xbf16, #tpu.memory_space<vmem>>, vector<8x16x128xbf16>,
    %c1_107 = arith.constant 1 : index
    %c2_108 = arith.constant 2 : index
    %c0_109 = arith.constant 0 : index
    %89 = vector.load %arg18[%c1_107, %c2_108, %c0_109] : memref<10x18x128xf32, #tpu.memory_space<vmem>>, vector<8x16x128xf32>
    %90 = arith.truncf %89 : vector<8x16x128xf32> to vector<8x16x128xbf16>
    %c0_110 = arith.constant 0 : index
    %c0_111 = arith.constant 0 : index
    %c640_112 = arith.constant 640 : index
    %91 = vector.load %arg20[%c0_110, %c0_111, %c640_112] : memref<8x16x1152xbf16, #tpu.memory_space<vmem>>, vector<8x16x128xbf16>
    tpu.vector_store %arg20[%c0_110, %c0_111, %c640_112], %90 {strides = array<i32>} : memref<8x16x1152xbf16, #tpu.memory_space<vmem>>, vector<8x16x128xbf16>,
    %c2_113 = arith.constant 2 : index
    %c0_114 = arith.constant 0 : index
    %c0_115 = arith.constant 0 : index
    %92 = vector.load %arg18[%c2_113, %c0_114, %c0_115] : memref<10x18x128xf32, #tpu.memory_space<vmem>>, vector<8x16x128xf32>
    %93 = arith.truncf %92 : vector<8x16x128xf32> to vector<8x16x128xbf16>
    %c0_116 = arith.constant 0 : index
    %c0_117 = arith.constant 0 : index
    %c768_118 = arith.constant 768 : index
    %94 = vector.load %arg20[%c0_116, %c0_117, %c768_118] : memref<8x16x1152xbf16, #tpu.memory_space<vmem>>, vector<8x16x128xbf16>
    tpu.vector_store %arg20[%c0_116, %c0_117, %c768_118], %93 {strides = array<i32>} : memref<8x16x1152xbf16, #tpu.memory_space<vmem>>, vector<8x16x128xbf16>,
    %c2_119 = arith.constant 2 : index
    %c1_120 = arith.constant 1 : index
    %c0_121 = arith.constant 0 : index
    %95 = vector.load %arg18[%c2_119, %c1_120, %c0_121] : memref<10x18x128xf32, #tpu.memory_space<vmem>>, vector<8x16x128xf32>
    %96 = arith.truncf %95 : vector<8x16x128xf32> to vector<8x16x128xbf16>
    %c0_122 = arith.constant 0 : index
    %c0_123 = arith.constant 0 : index
    %c896_124 = arith.constant 896 : index
    %97 = vector.load %arg20[%c0_122, %c0_123, %c896_124] : memref<8x16x1152xbf16, #tpu.memory_space<vmem>>, vector<8x16x128xbf16>
    tpu.vector_store %arg20[%c0_122, %c0_123, %c896_124], %96 {strides = array<i32>} : memref<8x16x1152xbf16, #tpu.memory_space<vmem>>, vector<8x16x128xbf16>,
    %c2_125 = arith.constant 2 : index
    %c2_126 = arith.constant 2 : index
    %c0_127 = arith.constant 0 : index
    %98 = vector.load %arg18[%c2_125, %c2_126, %c0_127] : memref<10x18x128xf32, #tpu.memory_space<vmem>>, vector<8x16x128xf32>
    %99 = arith.truncf %98 : vector<8x16x128xf32> to vector<8x16x128xbf16>
    %c0_128 = arith.constant 0 : index
    %c0_129 = arith.constant 0 : index
    %c1024_130 = arith.constant 1024 : index
    %100 = vector.load %arg20[%c0_128, %c0_129, %c1024_130] : memref<8x16x1152xbf16, #tpu.memory_space<vmem>>, vector<8x16x128xbf16>
    tpu.vector_store %arg20[%c0_128, %c0_129, %c1024_130], %99 {strides = array<i32>} : memref<8x16x1152xbf16, #tpu.memory_space<vmem>>, vector<8x16x128xbf16>,
    %c0_131 = arith.constant 0 : index
    %c0_132 = arith.constant 0 : index
    %c0_133 = arith.constant 0 : index
    %101 = vector.load %arg20[%c0_131, %c0_132, %c0_133] : memref<8x16x1152xbf16, #tpu.memory_space<vmem>>, vector<8x16x1152xbf16>
    %102 = vector.shape_cast %101 : vector<8x16x1152xbf16> to vector<128x1152xbf16>
    %c0_134 = arith.constant 0 : index
    %c0_135 = arith.constant 0 : index
    %103 = vector.load %arg7[%c0_134, %c0_135] : memref<1152x32xbf16, #tpu.memory_space<vmem>>, vector<1152x32xbf16>
    %cst_136 = arith.constant dense<0.000000e+00> : vector<128x32xf32>
    %104 = tpu.matmul %102, %103, %cst_136 {dimension_numbers = #tpu.dot_dimension_numbers<[1], [0], [0], [1], [0, 0, 1, 1], [], []>} : vector<128x1152xbf16>, vector<1152x32xbf16>, vector<128x32xf32> -> vector<128x32xf32>
    %c0_137 = arith.constant 0 : index
    %c0_138 = arith.constant 0 : index
    %105 = vector.load %arg8[%c0_137, %c0_138] : memref<1x32xf32, #tpu.memory_space<vmem>>, vector<1x32xf32>
    %106 = vector.broadcast %105 : vector<1x32xf32> to vector<128x32xf32>
    %107 = arith.mulf %104, %106 : vector<128x32xf32>
    %c0_139 = arith.constant 0 : index
    %c0_140 = arith.constant 0 : index
    %108 = vector.load %arg9[%c0_139, %c0_140] : memref<1x32xf32, #tpu.memory_space<vmem>>, vector<1x32xf32>
    %109 = vector.broadcast %108 : vector<1x32xf32> to vector<128x32xf32>
    %110 = arith.addf %107, %109 : vector<128x32xf32>
    %cst_141 = arith.constant 0.000000e+00 : f32
    %111 = vector.broadcast %cst_141 : f32 to vector<128x32xf32>
    %112 = arith.maximumf %110, %111 : vector<128x32xf32>
    %113 = vector.shape_cast %112 : vector<128x32xf32> to vector<8x16x32xf32>
    %c0_142 = arith.constant 0 : index
    %114 = arith.index_cast %1 : i32 to index
    %c0_143 = arith.constant 0 : index
    %c0_144 = arith.constant 0 : index
    %115 = vector.load %arg16[%c0_142, %114, %c0_143, %c0_144] : memref<1x16x16x32xf32, #tpu.memory_space<vmem>>, vector<1x8x16x32xf32>
    %116 = vector.shape_cast %115 : vector<1x8x16x32xf32> to vector<8x16x32xf32>
    %117 = vector.shape_cast %113 : vector<8x16x32xf32> to vector<1x8x16x32xf32>
    tpu.vector_store %arg16[%c0_142, %114, %c0_143, %c0_144], %117 {strides = array<i32>} : memref<1x16x16x32xf32, #tpu.memory_space<vmem>>, vector<1x8x16x32xf32>,
    %c1_i32_145 = arith.constant 1 : i32
    %118 = arith.cmpi eq, %arg1, %c1_i32_145 : i32
    %119 = arith.extui %118 : i1 to i32
    %c0_i32_146 = arith.constant 0 : i32
    %120 = arith.cmpi ne, %119, %c0_i32_146 : i32
    scf.if %120 {
      %c0_147 = arith.constant 0 : index
      %c0_148 = arith.constant 0 : index
      %c0_149 = arith.constant 0 : index
      %c0_150 = arith.constant 0 : index
      %121 = vector.load %arg16[%c0_147, %c0_148, %c0_149, %c0_150] : memref<1x16x16x32xf32, #tpu.memory_space<vmem>>, vector<1x16x16x32xf32>
      %122 = vector.shape_cast %121 : vector<1x16x16x32xf32> to vector<16x16x32xf32>
      %123 = vector.shape_cast %122 : vector<16x16x32xf32> to vector<256x32xf32>
      %cst_151 = arith.constant dense<0.000000e+00> : vector<32xf32>
      %124 = vector.multi_reduction <add>, %123, %cst_151 [0] : vector<256x32xf32> to vector<32xf32>
      %125 = vector.shape_cast %124 : vector<32xf32> to vector<1x32xf32>
      %cst_152 = arith.constant 2.560000e+02 : f32
      %126 = vector.broadcast %cst_152 : f32 to vector<1x32xf32>
      %127 = arith.divf %125, %126 : vector<1x32xf32>
      %c0_153 = arith.constant 0 : index
      %c0_154 = arith.constant 0 : index
      %128 = vector.load %arg10[%c0_153, %c0_154] : memref<32x2xf32, #tpu.memory_space<vmem>>, vector<32x2xf32>
      %cst_155 = arith.constant dense<0.000000e+00> : vector<1x2xf32>
      %129 = tpu.matmul %127, %128, %cst_155 {dimension_numbers = #tpu.dot_dimension_numbers<[1], [0], [0], [1], [0, 0, 1, 1], [], []>} : vector<1x32xf32>, vector<32x2xf32>, vector<1x2xf32> -> vector<1x2xf32>
      %c0_156 = arith.constant 0 : index
      %c0_157 = arith.constant 0 : index
      %130 = vector.load %arg11[%c0_156, %c0_157] : memref<1x2xf32, #tpu.memory_space<vmem>>, vector<1x2xf32>
      %131 = arith.addf %129, %130 : vector<1x2xf32>
      %cst_158 = arith.constant 0.000000e+00 : f32
      %132 = vector.broadcast %cst_158 : f32 to vector<1x2xf32>
      %133 = arith.maximumf %131, %132 : vector<1x2xf32>
      %c0_159 = arith.constant 0 : index
      %c0_160 = arith.constant 0 : index
      %134 = vector.load %arg12[%c0_159, %c0_160] : memref<2x32xf32, #tpu.memory_space<vmem>>, vector<2x32xf32>
      %cst_161 = arith.constant dense<0.000000e+00> : vector<1x32xf32>
      %135 = tpu.matmul %133, %134, %cst_161 {dimension_numbers = #tpu.dot_dimension_numbers<[1], [0], [0], [1], [0, 0, 1, 1], [], []>} : vector<1x2xf32>, vector<2x32xf32>, vector<1x32xf32> -> vector<1x32xf32>
      %c0_162 = arith.constant 0 : index
      %c0_163 = arith.constant 0 : index
      %136 = vector.load %arg13[%c0_162, %c0_163] : memref<1x32xf32, #tpu.memory_space<vmem>>, vector<1x32xf32>
      %137 = arith.addf %135, %136 : vector<1x32xf32>
      %138 = arith.negf %137 : vector<1x32xf32>
      %139 = math.exp %138 : vector<1x32xf32>
      %cst_164 = arith.constant 1.000000e+00 : f32
      %140 = vector.broadcast %cst_164 : f32 to vector<1x32xf32>
      %141 = arith.addf %140, %139 : vector<1x32xf32>
      %142 = arith.divf %140, %141 : vector<1x32xf32>
      %c0_165 = arith.constant 0 : index
      %c0_166 = arith.constant 0 : index
      %143 = vector.load %arg14[%c0_165, %c0_166] : memref<1x32xf32, #tpu.memory_space<vmem>>, vector<1x32xf32>
      %144 = vector.broadcast %143 : vector<1x32xf32> to vector<256x32xf32>
      %145 = arith.mulf %123, %144 : vector<256x32xf32>
      %cst_167 = arith.constant dense<0.000000e+00> : vector<256xf32>
      %146 = vector.multi_reduction <add>, %145, %cst_167 [1] : vector<256x32xf32> to vector<256xf32>
      %147 = vector.shape_cast %146 : vector<256xf32> to vector<256x1xf32>
      %c0_168 = arith.constant 0 : index
      %c0_169 = arith.constant 0 : index
      %148 = vector.load %arg15[%c0_168, %c0_169] : memref<1x1xf32, #tpu.memory_space<vmem>>, vector<1x1xf32>
      %149 = vector.broadcast %148 : vector<1x1xf32> to vector<256x1xf32>
      %150 = arith.addf %147, %149 : vector<256x1xf32>
      %151 = arith.negf %150 : vector<256x1xf32>
      %152 = math.exp %151 : vector<256x1xf32>
      %cst_170 = arith.constant 1.000000e+00 : f32
      %153 = vector.broadcast %cst_170 : f32 to vector<256x1xf32>
      %154 = arith.addf %153, %152 : vector<256x1xf32>
      %155 = arith.divf %153, %154 : vector<256x1xf32>
      %156 = vector.broadcast %142 : vector<1x32xf32> to vector<256x32xf32>
      %157 = vector.broadcast %155 : vector<256x1xf32> to vector<256x32xf32>
      %158 = arith.addf %156, %157 : vector<256x32xf32>
      %159 = arith.mulf %123, %158 : vector<256x32xf32>
      %160 = vector.shape_cast %159 : vector<256x32xf32> to vector<16x16x32xf32>
      %c0_171 = arith.constant 0 : index
      %c0_172 = arith.constant 0 : index
      %c0_173 = arith.constant 0 : index
      %c0_174 = arith.constant 0 : index
      %161 = vector.load %arg16[%c0_171, %c0_172, %c0_173, %c0_174] : memref<1x16x16x32xf32, #tpu.memory_space<vmem>>, vector<1x16x16x32xf32>
      %162 = vector.shape_cast %161 : vector<1x16x16x32xf32> to vector<16x16x32xf32>
      %163 = vector.shape_cast %160 : vector<16x16x32xf32> to vector<1x16x16x32xf32>
      tpu.vector_store %arg16[%c0_171, %c0_172, %c0_173, %c0_174], %163 {strides = array<i32>} : memref<1x16x16x32xf32, #tpu.memory_space<vmem>>, vector<1x16x16x32xf32>,
    } else {
    }
    return
  }
  func.func @transform_0(%arg0: i32, %arg1: i32) -> (i32, i32, i32, i32) {
    %c0_i32 = arith.constant 0 : i32
    %c0_i32_0 = arith.constant 0 : i32
    %c0_i32_1 = arith.constant 0 : i32
    %c0_i32_2 = arith.constant 0 : i32
    return %arg0, %c0_i32, %c0_i32_0, %c0_i32_1 : i32, i32, i32, i32
  }
  func.func @transform_1(%arg0: i32, %arg1: i32) -> (i32, i32, i32, i32) {
    %c0_i32 = arith.constant 0 : i32
    %c0_i32_0 = arith.constant 0 : i32
    %c0_i32_1 = arith.constant 0 : i32
    %c0_i32_2 = arith.constant 0 : i32
    return %arg0, %c0_i32, %c0_i32_0, %c0_i32_1 : i32, i32, i32, i32
  }
  func.func @transform_2(%arg0: i32, %arg1: i32) -> (i32, i32) {
    %c0_i32 = arith.constant 0 : i32
    %c0_i32_0 = arith.constant 0 : i32
    %c0_i32_1 = arith.constant 0 : i32
    return %c0_i32, %c0_i32_0 : i32, i32
  }
  func.func @transform_3(%arg0: i32, %arg1: i32) -> (i32, i32) {
    %c0_i32 = arith.constant 0 : i32
    %c0_i32_0 = arith.constant 0 : i32
    %c0_i32_1 = arith.constant 0 : i32
    return %c0_i32, %c0_i32_0 : i32, i32
  }
  func.func @transform_4(%arg0: i32, %arg1: i32) -> (i32, i32) {
    %c0_i32 = arith.constant 0 : i32
    %c0_i32_0 = arith.constant 0 : i32
    %c0_i32_1 = arith.constant 0 : i32
    return %c0_i32, %c0_i32_0 : i32, i32
  }
  func.func @transform_5(%arg0: i32, %arg1: i32) -> (i32, i32) {
    %c0_i32 = arith.constant 0 : i32
    %c0_i32_0 = arith.constant 0 : i32
    %c0_i32_1 = arith.constant 0 : i32
    return %c0_i32, %c0_i32_0 : i32, i32
  }
  func.func @transform_6(%arg0: i32, %arg1: i32) -> (i32, i32) {
    %c0_i32 = arith.constant 0 : i32
    %c0_i32_0 = arith.constant 0 : i32
    %c0_i32_1 = arith.constant 0 : i32
    return %c0_i32, %c0_i32_0 : i32, i32
  }
  func.func @transform_7(%arg0: i32, %arg1: i32) -> (i32, i32) {
    %c0_i32 = arith.constant 0 : i32
    %c0_i32_0 = arith.constant 0 : i32
    %c0_i32_1 = arith.constant 0 : i32
    return %c0_i32, %c0_i32_0 : i32, i32
  }
  func.func @transform_8(%arg0: i32, %arg1: i32) -> (i32, i32) {
    %c0_i32 = arith.constant 0 : i32
    %c0_i32_0 = arith.constant 0 : i32
    %c0_i32_1 = arith.constant 0 : i32
    return %c0_i32, %c0_i32_0 : i32, i32
  }
  func.func @transform_9(%arg0: i32, %arg1: i32) -> (i32, i32) {
    %c0_i32 = arith.constant 0 : i32
    %c0_i32_0 = arith.constant 0 : i32
    %c0_i32_1 = arith.constant 0 : i32
    return %c0_i32, %c0_i32_0 : i32, i32
  }
  func.func @transform_10(%arg0: i32, %arg1: i32) -> (i32, i32) {
    %c0_i32 = arith.constant 0 : i32
    %c0_i32_0 = arith.constant 0 : i32
    %c0_i32_1 = arith.constant 0 : i32
    return %c0_i32, %c0_i32_0 : i32, i32
  }
  func.func @transform_11(%arg0: i32, %arg1: i32) -> (i32, i32) {
    %c0_i32 = arith.constant 0 : i32
    %c0_i32_0 = arith.constant 0 : i32
    %c0_i32_1 = arith.constant 0 : i32
    return %c0_i32, %c0_i32_0 : i32, i32
  }
  func.func @transform_12(%arg0: i32, %arg1: i32) -> (i32, i32) {
    %c0_i32 = arith.constant 0 : i32
    %c0_i32_0 = arith.constant 0 : i32
    %c0_i32_1 = arith.constant 0 : i32
    return %c0_i32, %c0_i32_0 : i32, i32
  }
  func.func @transform_13(%arg0: i32, %arg1: i32) -> (i32, i32) {
    %c0_i32 = arith.constant 0 : i32
    %c0_i32_0 = arith.constant 0 : i32
    %c0_i32_1 = arith.constant 0 : i32
    return %c0_i32, %c0_i32_0 : i32, i32
  }
  func.func @transform_14(%arg0: i32, %arg1: i32) -> (i32, i32, i32, i32) {
    %c0_i32 = arith.constant 0 : i32
    %c0_i32_0 = arith.constant 0 : i32
    %c0_i32_1 = arith.constant 0 : i32
    %c0_i32_2 = arith.constant 0 : i32
    return %arg0, %c0_i32, %c0_i32_0, %c0_i32_1 : i32, i32, i32, i32
  }
}

</mosaic_0001>

<bundles_post_ra>
// kernel: tpu_custom_call.1
= control target key start
LH: loop header
LB: loop body
LE: loop exit
PB: predicated region body
PF: predicated region fallthrough
CT: control target
= control target key end

     0   :  { %s8236_s0 = inlined_call_operand.vmem [shape: f32[2,8,16,8], index: 0, kind: input, shape index: {}]   ;;  %s8237_s1 = inlined_call_operand.vmem [shape: f32[2,16,16,8], index: 1, kind: input, shape index: {}]   ;;  %s8238_s2 = inlined_call_operand.vmem [shape: bf16[1152,32], index: 2, kind: input, shape index: {}]   ;;  %s8239_s3 = inlined_call_operand.vmem [shape: f32[1,32], index: 3, kind: input, shape index: {}]   ;;  %s8240_s4 = inlined_call_operand.vmem [shape: f32[1,32], index: 4, kind: input, shape index: {}]   ;;  %s8241_s5 = inlined_call_operand.vmem [shape: bf16[1152,32], index: 5, kind: input, shape index: {}]   ;;  %s8242_s6 = inlined_call_operand.vmem [shape: f32[1,32], index: 6, kind: input, shape index: {}]   ;;  %s8243_s7 = inlined_call_operand.vmem [shape: f32[1,32], index: 7, kind: input, shape index: {}]   ;;  %s8244_s8 = inlined_call_operand.vmem [shape: f32[32,2], index: 8, kind: input, shape index: {}]   ;;  %s8245_s9 = inlined_call_operand.vmem [shape: f32[1,2], index: 9, kind: input, shape index: {}]   ;;  %s8246_s10 = inlined_call_operand.vmem [shape: f32[2,32], index: 10, kind: input, shape index: {}]   ;;  %s8247_s11 = inlined_call_operand.vmem [shape: f32[1,32], index: 11, kind: input, shape index: {}]   ;;  %s8248_s12 = inlined_call_operand.vmem [shape: f32[1,32], index: 12, kind: input, shape index: {}]   ;;  %s8249_s13 = inlined_call_operand.<no memory space> [shape: f32[1,1], index: 13, kind: input, shape index: {}]   ;;  %s8250_s14 = inlined_call_operand.hbm [shape: f32[2,16,16,32], index: 14, kind: output, shape index: {}]  }
   0x1   :  { %8263 = sst [smem:[#allocation19_spill]] %s8250_s14  ;;  %v19_v0 = vstv %s8249_s13 }
   0x2   :  { %20 = vst [vmem:[#allocation6] sm:$0x1] %v19_v0 }
   0x3   :  { %21 = vsyncpa [#allocation8], 0 }
   0x4   :  { %23 = vsyncpa [#allocation8 + $0x1], 0  ;;  %s6502_s15 = smov 0   ;;  %s6504_s16 = smov 0  }
   0x5   :  { %s6506_s17 = smov 0   ;;  %s6508_s18 = smov 0  }
   0x6   :  { %s6510_s19 = smov 0   ;;  %s6512_s20 = smov 0  }
   0x7   :  { %s6514_s21 = smov 0   ;;  %s6516_s22 = smov 0  }
   0x8 LB: > { %8264 = sst [smem:[#allocation10_spill]] %s6381_s15  ;;  %s5008_s13 = sadd.s32 4294967295, %s6409_s22   ;;  %s6409_s22 = sphi %s6516_s22, %s29_s22   ;;  %s6405_s21 = sphi %s6514_s21, %s8288_s21   ;;  %s6401_s20 = sphi %s6512_s20, %s8287_s20   ;;  %s6397_s19 = sphi %s6510_s19, %s8286_s19   ;;  %s6393_s18 = sphi %s6508_s18, %s8285_s18   ;;  %s6389_s17 = sphi %s6506_s17, %s8284_s17   ;;  %s6385_s16 = sphi %s6504_s16, %s8290_s16   ;;  %s6381_s15 = sphi %s6502_s15, %s8289_s15  }
   0x9   : > { %8265 = sst [smem:[#allocation11_spill]] %s6389_s17  ;;  %s5009_s23 = sadd.s32 4294967294, %s6409_s22  }
   0xa   : > { %8266 = sst [smem:[#allocation12_spill]] %s6401_s20  ;;  %s38_s24 = sadd.s32 1, %s6401_s20 }
   0xb   : > { %8267 = sst [smem:[#allocation13_spill]] %s6405_s21  ;;  %p39_p0 = scmp.ge.s32.totalorder %s38_s24, 2 }
   0xc   : > { %8268 = sst [smem:[#allocation14_spill]] %s6409_s22  ;;  %s41_s25 = sadd.s32 1, %s6405_s21 }
   0xd   : > { %p362_p1 = scmp.ne.s32.totalorder %s6389_s17, %s6385_s16  ;;  %p363_p2 = scmp.eq.s32.totalorder %s5008_s13, 3 }
   0xe   : > { %s8292_s24 = smov (%p39_p0, %s38_s24), 0  ;;  %s8294_s25 = smov (!%p39_p0, %s41_s25), %s6405_s21 }
   0xf   : > { %8269 = sst [smem:[#allocation15_spill]] %s8292_s24  ;;  %p6551_p3 = por %p363_p2, %p362_p1 }
  0x10   : > { %p368_p4 = scmp.ne.s32.totalorder %s6385_s16, %s6381_s15  ;;  %p43_p5 = scmp.ge.s32.totalorder %s8294_s25, 2 }
  0x11   : > { %p369_p6 = scmp.eq.s32.totalorder %s5009_s23, 3  ;;  %p5012_p7 = scmp.ge.s32.totalorder %s6409_s22, 1 }
  0x12   : > { %p439_p8 = scmp.lt.s32.totalorder %s6409_s22, 5  ;;  %s8296_s25 = smov (%p43_p5, %s8294_s25), 0 }
  0x13   : > { %8271 = sst [smem:[#allocation16_spill]] %s8296_s25  ;;  %p6561_p9 = por %p369_p6, %p368_p4 }
  0x14   : > { %p440_p10 = pnand %p5012_p7, %p439_p8  ;;  %s349_s28 = ssub.s32 %s6405_s21, %s8296_s25 }
  0x15   : > { %s8272_s27 = scalar_select %p6561_p9, 1, 0 }
  0x16   : > { %s352_s29 = sadd.s32 1, %s6389_s17  ;;  %p350_p11 = scmp.eq.s32.totalorder %s349_s28, 0 }
  0x17   : > { %8273 = sst [smem:[#allocation17_spill]] %s8272_s27  ;;  %443 = sbr.rel (%p440_p10) target bundleno = 1815 (0x717), region = 76 }
  0x18   : > { %s6569_s30 = scalar_select %p350_p11, %s6389_s17, %s352_s29  }
  0x19   : > { %s8261_s13 = sand.u32 (!%p440_p10), 1, %s6385_s16   ;;  %p490_p12 = scmp.lt.s32.totalorder (!%p440_p10), %s6397_s19, 1 }
  0x1a   : > { %8274 = sst [smem:[#allocation18_spill]] %s6569_s30  ;;  %s5013_s23 = sshll.u32 (!%p440_p10), %s8261_s13, 8 }
  0x1b   : > { %s5018_s24 = sshll.u32 (!%p440_p10), %s6393_s18, 3  ;;  %s5019_s20 = sshll.u32 (!%p440_p10), %s6393_s18, 2 }
  0x1c   : > { %s6588_s14 = scalar_lea.vmem (!%p440_p10), [#allocation7], %s5013_s23  ;;  %p5020_p13 = scmp.ne.s32.totalorder (!%p440_p10), %s6393_s18, 0 }
  0x1e   : > { %s491_s27 = scalar_select %p490_p12, %s6397_s19, 1 }
  0x1f   : > { %506 = sbr.rel (%p5020_p13) target bundleno = 65 (0x41), region = 80  ;;  %v6411_v1 = vmov (!%p5020_p13), 0.0  }
  0x20   : > { %s5234_s15 = sshll.u32 %s491_s27, 7  ;;  %s5235_s25 = sshll.u32 %s491_s27, 8  ;;  %507 = vst [vmem:[#allocation2] sm:$0xff] (!%p5020_p13), %v6411_v1  ;;  %508 = vst [vmem:[#allocation2 + $0x8] sm:$0xff] (!%p5020_p13), %v6411_v1 }
  0x21   : > { %s6581_s29 = scalar_lea.vmem %s8236_s0, %s5234_s15  ;;  %s6586_s22 = scalar_lea.vmem %s8237_s1, %s5235_s25  ;;  %509 = vst [vmem:[#allocation2 + $0x10] sm:$0x3] (!%p5020_p13), %v6411_v1  ;;  %510 = vst [vmem:[#allocation2 + $0x18] sm:$0xff] (!%p5020_p13), %v6411_v1 }
  0x22   : > { %511 = vst [vmem:[#allocation2 + $0x20] sm:$0xff] (!%p5020_p13), %v6411_v1  ;;  %512 = vst [vmem:[#allocation2 + $0x28] sm:$0x3] (!%p5020_p13), %v6411_v1 }
  0x23   : > { %513 = vst [vmem:[#allocation2 + $0x30] sm:$0xff] (!%p5020_p13), %v6411_v1  ;;  %514 = vst [vmem:[#allocation2 + $0x38] sm:$0xff] (!%p5020_p13), %v6411_v1 }
  0x24   : > { %515 = vst [vmem:[#allocation2 + $0x40] sm:$0x3] (!%p5020_p13), %v6411_v1  ;;  %516 = vst [vmem:[#allocation2 + $0x48] sm:$0xff] (!%p5020_p13), %v6411_v1 }
  0x25   : > { %517 = vst [vmem:[#allocation2 + $0x50] sm:$0xff] (!%p5020_p13), %v6411_v1  ;;  %518 = vst [vmem:[#allocation2 + $0x58] sm:$0x3] (!%p5020_p13), %v6411_v1 }
  0x26   : > { %519 = vst [vmem:[#allocation2 + $0x60] sm:$0xff] %v6411_v1  ;;  %520 = vst [vmem:[#allocation2 + $0x68] sm:$0xff] %v6411_v1 }
  0x27   : > { %521 = vst [vmem:[#allocation2 + $0x70] sm:$0x3] %v6411_v1  ;;  %522 = vst [vmem:[#allocation2 + $0x78] sm:$0xff] %v6411_v1 }
  0x28   : > { %523 = vst [vmem:[#allocation2 + $0x80] sm:$0xff] %v6411_v1  ;;  %524 = vst [vmem:[#allocation2 + $0x88] sm:$0x3] %v6411_v1 }
  0x29   : > { %525 = vst [vmem:[#allocation2 + $0x90] sm:$0xff] %v6411_v1  ;;  %526 = vst [vmem:[#allocation2 + $0x98] sm:$0xff] %v6411_v1 }
  0x2a   : > { %527 = vst [vmem:[#allocation2 + $0xa0] sm:$0x3] %v6411_v1  ;;  %528 = vst [vmem:[#allocation2 + $0xa8] sm:$0xff] %v6411_v1 }
  0x2b   : > { %529 = vst [vmem:[#allocation2 + $0xb0] sm:$0xff] %v6411_v1  ;;  %530 = vst [vmem:[#allocation2 + $0xb8] sm:$0x3] %v6411_v1 }
  0x2c   : > { %531 = vst [vmem:[#allocation2 + $0xc0] sm:$0xff] %v6411_v1  ;;  %532 = vst [vmem:[#allocation2 + $0xc8] sm:$0xff] %v6411_v1 }
  0x2d   : > { %533 = vst [vmem:[#allocation2 + $0xd0] sm:$0x3] %v6411_v1  ;;  %534 = vst [vmem:[#allocation2 + $0xd8] sm:$0xff] %v6411_v1 }
  0x2e   : > { %535 = vst [vmem:[#allocation2 + $0xe0] sm:$0xff] %v6411_v1  ;;  %536 = vst [vmem:[#allocation2 + $0xe8] sm:$0x3] %v6411_v1 }
  0x2f   : > { %537 = vst [vmem:[#allocation2 + $0xf0] sm:$0xff] %v6411_v1  ;;  %538 = vst [vmem:[#allocation2 + $0xf8] sm:$0xff] %v6411_v1 }
  0x30   : > { %539 = vst [vmem:[#allocation2 + $0x100] sm:$0x3] %v6411_v1  ;;  %540 = vst [vmem:[#allocation2 + $0x108] sm:$0xff] %v6411_v1 }
  0x31   : > { %541 = vst [vmem:[#allocation2 + $0x110] sm:$0xff] %v6411_v1  ;;  %542 = vst [vmem:[#allocation2 + $0x118] sm:$0x3] %v6411_v1 }
  0x32   : > { %543 = vst [vmem:[#allocation3] sm:$0xff] %v6411_v1  ;;  %544 = vst [vmem:[#allocation3 + $0x8] sm:$0xff] %v6411_v1 }
  0x33   : > { %545 = vst [vmem:[#allocation3 + $0x10] sm:$0x3] %v6411_v1  ;;  %546 = vst [vmem:[#allocation3 + $0x18] sm:$0xff] %v6411_v1 }
  0x34   : > { %547 = vst [vmem:[#allocation3 + $0x20] sm:$0xff] %v6411_v1  ;;  %548 = vst [vmem:[#allocation3 + $0x28] sm:$0x3] %v6411_v1 }
  0x35   : > { %549 = vst [vmem:[#allocation3 + $0x30] sm:$0xff] %v6411_v1  ;;  %550 = vst [vmem:[#allocation3 + $0x38] sm:$0xff] %v6411_v1 }
  0x36   : > { %551 = vst [vmem:[#allocation3 + $0x40] sm:$0x3] %v6411_v1  ;;  %552 = vst [vmem:[#allocation3 + $0x48] sm:$0xff] %v6411_v1 }
  0x37   : > { %553 = vst [vmem:[#allocation3 + $0x50] sm:$0xff] %v6411_v1  ;;  %554 = vst [vmem:[#allocation3 + $0x58] sm:$0x3] %v6411_v1 }
  0x38   : > { %555 = vst [vmem:[#allocation3 + $0x60] sm:$0xff] %v6411_v1  ;;  %556 = vst [vmem:[#allocation3 + $0x68] sm:$0xff] %v6411_v1 }
  0x39   : > { %557 = vst [vmem:[#allocation3 + $0x70] sm:$0x3] %v6411_v1  ;;  %558 = vst [vmem:[#allocation3 + $0x78] sm:$0xff] %v6411_v1 }
  0x3a   : > { %559 = vst [vmem:[#allocation3 + $0x80] sm:$0xff] %v6411_v1  ;;  %560 = vst [vmem:[#allocation3 + $0x88] sm:$0x3] %v6411_v1 }
  0x3b   : > { %561 = vst [vmem:[#allocation3 + $0x90] sm:$0xff] %v6411_v1  ;;  %562 = vst [vmem:[#allocation3 + $0x98] sm:$0xff] %v6411_v1 }
  0x3c   : > { %563 = vst [vmem:[#allocation3 + $0xa0] sm:$0x3] %v6411_v1  ;;  %564 = vst [vmem:[#allocation3 + $0xa8] sm:$0xff] %v6411_v1 }
  0x3d   : > { %565 = vst [vmem:[#allocation3 + $0xb0] sm:$0xff] %v6411_v1  ;;  %566 = vst [vmem:[#allocation3 + $0xb8] sm:$0x3] %v6411_v1 }
  0x3e   : > { %567 = vst [vmem:[#allocation3 + $0xc0] sm:$0xff] %v6411_v1  ;;  %568 = vst [vmem:[#allocation3 + $0xc8] sm:$0xff] %v6411_v1 }
  0x3f   : > { %569 = vst [vmem:[#allocation3 + $0xd0] sm:$0x3] %v6411_v1  ;;  %570 = vst [vmem:[#allocation3 + $0xd8] sm:$0xff] %v6411_v1 }
  0x40   : > { %571 = vst [vmem:[#allocation3 + $0xe0] sm:$0xff] %v6411_v1  ;;  %572 = vst [vmem:[#allocation3 + $0xe8] sm:$0x3] %v6411_v1 }
  0x41 PF: > { %s8262_s15 = sshll.u32 %s6393_s18, 7  ;;  %s5236_s21 = sshll.u32 %s6393_s18, 6  ;;  %vm584_vm0 = vcmask 64512   ;;  %vm683_vm1 = vcmask 130112  }
  0x42   : > { %s6663_s17 = scalar_lea.vmem %s6586_s22, %s8262_s15  ;;  %s8260_s25 = smov 8  }
  0x43   : > { %v605_v2 = vld [vmem:[%s6663_s17 + $0x10] sm:$0xff]  ;;  %v603_v3 = vld [vmem:[%s6663_s17] sm:$0xff]  ;;  %v606_v4 = vld [vmem:[%s6663_s17 + $0x18] sm:$0xff]  ;;  %s6673_s27 = scalar_lea.vmem %s6581_s29, %s5236_s21  ;;  %p5023_p0 = scmp.le.s32.totalorder %s6393_s18, 0 }
  0x44   : > { %639 = vrot.lane.b32.xlu1 %v605_v2, %s8260_s25  ;;  %635 = vrot.lane.b32.xlu0 %v603_v3, %s8260_s25  ;;  %v604_v5 = vld [vmem:[%s6663_s17 + $0x8] sm:$0xff]  ;;  %v607_v7 = vld [vmem:[%s6663_s17 + $0x20] sm:$0xff]  ;;  %s5026_s30 = sadd.s32 (!%p5023_p0), 4294967294, %s5018_s24  ;;  %s5024_s28 = sadd.s32 (!%p5023_p0), 4294967295, %s5019_s20 }
  0x45   : > { %v608_v6 = vld [vmem:[%s6663_s17 + $0x28] sm:$0xff]  ;;  %v575_v8 = vld [vmem:[%s6673_s27] sm:$0xff]  ;;  %v578_v10 = vld [vmem:[%s6673_s27 + $0x18] sm:$0xff]  ;;  %s5027_s23 = sshll.u32 (!%p5023_p0), %s5026_s30, 4  ;;  %s6413_s15 = smov (!%p5023_p0), 8  }
  0x46   : > { %v576_v9 = vld [vmem:[%s6673_s27 + $0x8] sm:$0xff]  ;;  %587 = vst.msk [vmem:[#allocation2 + $0x49] sm:$0xff] %vm584_vm0, %v575_v8  ;;  %585 = vst.msk [vmem:[#allocation2 + $0x31] sm:$0xff] %vm584_vm0, %v575_v8  ;;  %v577_v11 = vld [vmem:[%s6673_s27 + $0x10] sm:$0xff]  ;;  %s715_s21 = scalar_lea.vmem (!%p5023_p0), %s6586_s22, %s5027_s23 }
  0x47   : > { %588 = vst.msk [vmem:[#allocation2 + $0x51] sm:$0xff] %vm584_vm0, %v576_v9  ;;  %586 = vst.msk [vmem:[#allocation2 + $0x39] sm:$0xff] %vm584_vm0, %v576_v9  ;;  %v580_v12 = vld [vmem:[%s6673_s27 + $0x28] sm:$0xff]  ;;  %v579_v13 = vld [vmem:[%s6673_s27 + $0x20] sm:$0xff] }
  0x48   : > { %641 = vrot.lane.b32.xlu1 %v606_v4, %s8260_s25  ;;  %637 = vrot.lane.b32.xlu0 %v604_v5, %s8260_s25  ;;  %590 = vst.msk [vmem:[#allocation2 + $0x69] sm:$0xff] %vm584_vm0, %v578_v10  ;;  %592 = vst.msk [vmem:[#allocation2 + $0x81] sm:$0xff] %vm584_vm0, %v578_v10  ;;  %v610_v14 = vld [vmem:[%s6663_s17 + $0x38] sm:$0xff]  ;;  %v609_v15 = vld [vmem:[%s6663_s17 + $0x30] sm:$0xff] }
  0x49   : > { %589 = vst.msk [vmem:[#allocation2 + $0x61] sm:$0xff] %vm584_vm0, %v577_v11  ;;  %591 = vst.msk [vmem:[#allocation2 + $0x79] sm:$0xff] %vm584_vm0, %v577_v11  ;;  %v582_v16 = vld [vmem:[%s6673_s27 + $0x38] sm:$0xff]  ;;  %v581_v17 = vld [vmem:[%s6673_s27 + $0x30] sm:$0xff] }
  0x4a   : > { %594 = vst.msk [vmem:[#allocation2 + $0x99] sm:$0xff] %vm584_vm0, %v580_v12  ;;  %596 = vst.msk [vmem:[#allocation2 + $0xb1] sm:$0xff] %vm584_vm0, %v580_v12  ;;  %v612_v18 = vld [vmem:[%s6663_s17 + $0x48] sm:$0xff]  ;;  %v611_v19 = vld [vmem:[%s6663_s17 + $0x40] sm:$0xff] }
  0x4b   : > { %593 = vst.msk [vmem:[#allocation2 + $0x91] sm:$0xff] %vm584_vm0, %v579_v13  ;;  %595 = vst.msk [vmem:[#allocation2 + $0xa9] sm:$0xff] %vm584_vm0, %v579_v13  ;;  %v614_v20 = vld [vmem:[%s6663_s17 + $0x58] sm:$0xff]  ;;  %v613_v21 = vld [vmem:[%s6663_s17 + $0x50] sm:$0xff] }
  0x4c   : > { %645 = vrot.lane.b32.xlu1 %v608_v6, %s8260_s25  ;;  %643 = vrot.lane.b32.xlu0 %v607_v7, %s8260_s25  ;;  %598 = vst.msk [vmem:[#allocation2 + $0xc9] sm:$0xff] %vm584_vm0, %v582_v16  ;;  %600 = vst.msk [vmem:[#allocation2 + $0xe1] sm:$0xff] %vm584_vm0, %v582_v16  ;;  %v616_v22 = vld [vmem:[%s6663_s17 + $0x68] sm:$0xff]  ;;  %v615_v23 = vld [vmem:[%s6663_s17 + $0x60] sm:$0xff] }
  0x4d   : > { %597 = vst.msk [vmem:[#allocation2 + $0xc1] sm:$0xff] %vm584_vm0, %v581_v17  ;;  %599 = vst.msk [vmem:[#allocation2 + $0xd9] sm:$0xff] %vm584_vm0, %v581_v17  ;;  %v618_v24 = vld [vmem:[%s6663_s17 + $0x78] sm:$0xff]  ;;  %v617_v25 = vld [vmem:[%s6663_s17 + $0x70] sm:$0xff] }
  0x4e   : > { %v718_v42 = vld [vmem:[%s715_s21 + $0x10] sm:$0xff] (!%p5023_p0)  ;;  %v716_v43 = vld [vmem:[%s715_s21] sm:$0xff] (!%p5023_p0)  ;;  %v719_v45 = vld [vmem:[%s715_s21 + $0x18] sm:$0xff] (!%p5023_p0) }
  0x4f   : > { %v717_v46 = vld [vmem:[%s715_s21 + $0x8] sm:$0xff] (!%p5023_p0) }
  0x50   : > { %649 = vrot.lane.b32.xlu1 %v610_v14, %s8260_s25  ;;  %647 = vrot.lane.b32.xlu0 %v609_v15, %s8260_s25 }
  0x54   : > { %653 = vrot.lane.b32.xlu1 %v612_v18, %s8260_s25  ;;  %651 = vrot.lane.b32.xlu0 %v611_v19, %s8260_s25 }
  0x58   : > { %657 = vrot.lane.b32.xlu1 %v614_v20, %s8260_s25  ;;  %655 = vrot.lane.b32.xlu0 %v613_v21, %s8260_s25 }
  0x5c   : > { %661 = vrot.lane.b32.xlu1 %v616_v22, %s8260_s25  ;;  %659 = vrot.lane.b32.xlu0 %v615_v23, %s8260_s25 }
  0x60   : > { %665 = vrot.lane.b32.xlu1 %v618_v24, %s8260_s25  ;;  %663 = vrot.lane.b32.xlu0 %v617_v25, %s8260_s25  ;;  %s5025_s25 = sshll.u32 (!%p5023_p0), %s5024_s28, 4 }
  0x61   : > { %s706_s13 = scalar_lea.vmem (!%p5023_p0), %s6581_s29, %s5025_s25 }
  0x62   : > { %v707_v44 = vld [vmem:[%s706_s13] sm:$0xff] (!%p5023_p0)  ;;  %v708_v47 = vld [vmem:[%s706_s13 + $0x8] sm:$0xff] (!%p5023_p0) }
  0x63   : > { %711 = vst.msk [vmem:[#allocation2 + $0x19] sm:$0xff] (!%p5023_p0), %vm584_vm0, %v707_v44  ;;  %709 = vst.msk [vmem:[#allocation2 + $0x1] sm:$0xff] (!%p5023_p0), %vm584_vm0, %v707_v44 }
  0x64   : > { %728 = vrot.lane.b32.xlu1 (!%p5023_p0), %v718_v42, %s6413_s15  ;;  %724 = vrot.lane.b32.xlu0 (!%p5023_p0), %v716_v43, %s6413_s15  ;;  %712 = vst.msk [vmem:[#allocation2 + $0x21] sm:$0xff] (!%p5023_p0), %vm584_vm0, %v708_v47  ;;  %710 = vst.msk [vmem:[#allocation2 + $0x9] sm:$0xff] (!%p5023_p0), %vm584_vm0, %v708_v47 }
  0x68   : > { %730 = vrot.lane.b32.xlu1 (!%p5023_p0), %v719_v45, %s6413_s15  ;;  %726 = vrot.lane.b32.xlu0 (!%p5023_p0), %v717_v46, %s6413_s15 }
  0xb6   : > { %v640_v26 = vpop.permute.xlu1 %639  ;;  %v636_v27 = vpop.permute.xlu0 %635 }
  0xb7   : > { %686 = vst.msk [vmem:[#allocation2 + $0x49] sm:$0xff] %vm683_vm1, %v640_v26  ;;  %684 = vst.msk [vmem:[#allocation2 + $0x31] sm:$0xff] %vm683_vm1, %v636_v27 }
  0xba   : > { %v642_v28 = vpop.permute.xlu1 %641  ;;  %v638_v29 = vpop.permute.xlu0 %637 }
  0xbb   : > { %687 = vst.msk [vmem:[#allocation2 + $0x51] sm:$0xff] %vm683_vm1, %v642_v28  ;;  %685 = vst.msk [vmem:[#allocation2 + $0x39] sm:$0xff] %vm683_vm1, %v638_v29 }
  0xbe   : > { %v646_v30 = vpop.permute.xlu1 %645  ;;  %v644_v31 = vpop.permute.xlu0 %643 }
  0xbf   : > { %689 = vst.msk [vmem:[#allocation2 + $0x69] sm:$0xff] %vm683_vm1, %v646_v30  ;;  %688 = vst.msk [vmem:[#allocation2 + $0x61] sm:$0xff] %vm683_vm1, %v644_v31 }
  0xc2   : > { %v650_v32 = vpop.permute.xlu1 %649  ;;  %v648_v33 = vpop.permute.xlu0 %647 }
  0xc3   : > { %691 = vst.msk [vmem:[#allocation2 + $0x81] sm:$0xff] %vm683_vm1, %v650_v32  ;;  %690 = vst.msk [vmem:[#allocation2 + $0x79] sm:$0xff] %vm683_vm1, %v648_v33 }
  0xc6   : > { %v654_v34 = vpop.permute.xlu1 %653  ;;  %v652_v35 = vpop.permute.xlu0 %651 }
  0xc7   : > { %693 = vst.msk [vmem:[#allocation2 + $0x99] sm:$0xff] %vm683_vm1, %v654_v34  ;;  %692 = vst.msk [vmem:[#allocation2 + $0x91] sm:$0xff] %vm683_vm1, %v652_v35 }
  0xca   : > { %v658_v36 = vpop.permute.xlu1 %657  ;;  %v656_v37 = vpop.permute.xlu0 %655 }
  0xcb   : > { %695 = vst.msk [vmem:[#allocation2 + $0xb1] sm:$0xff] %vm683_vm1, %v658_v36  ;;  %694 = vst.msk [vmem:[#allocation2 + $0xa9] sm:$0xff] %vm683_vm1, %v656_v37 }
  0xcd   : > { %703 = sbr.rel (%p5023_p0) target bundleno = 220 (0xdc), region = 84 }
  0xce   : > { %v662_v38 = vpop.permute.xlu1 %661  ;;  %v660_v39 = vpop.permute.xlu0 %659 }
  0xcf   : > { %697 = vst.msk [vmem:[#allocation2 + $0xc9] sm:$0xff] %vm683_vm1, %v662_v38  ;;  %696 = vst.msk [vmem:[#allocation2 + $0xc1] sm:$0xff] %vm683_vm1, %v660_v39 }
  0xd2   : > { %v666_v40 = vpop.permute.xlu1 %665  ;;  %v664_v41 = vpop.permute.xlu0 %663 }
  0xd3   : > { %699 = vst.msk [vmem:[#allocation2 + $0xe1] sm:$0xff] %vm683_vm1, %v666_v40  ;;  %698 = vst.msk [vmem:[#allocation2 + $0xd9] sm:$0xff] %vm683_vm1, %v664_v41 }
  0xd6   : > { %v729_v48 = vpop.permute.xlu1 %728  ;;  %v725_v49 = vpop.permute.xlu0 %724 }
  0xd7   : > { %738 = vst.msk [vmem:[#allocation2 + $0x19] sm:$0xff] %vm683_vm1, %v729_v48  ;;  %736 = vst.msk [vmem:[#allocation2 + $0x1] sm:$0xff] %vm683_vm1, %v725_v49 }
  0xda   : > { %v731_v50 = vpop.permute.xlu1 %730  ;;  %v727_v51 = vpop.permute.xlu0 %726 }
  0xdb   : > { %739 = vst.msk [vmem:[#allocation2 + $0x21] sm:$0xff] %vm683_vm1, %v731_v50  ;;  %737 = vst.msk [vmem:[#allocation2 + $0x9] sm:$0xff] %vm683_vm1, %v727_v51 }
  0xdc PF: > { %p5028_p1 = scmp.ge.s32.totalorder %s6393_s18, 1 }
  0xdd   : > { %v5037_v52 = vld [vmem:[%s6663_s17 + $0x90] sm:$0xff] (!%p5028_p1)  ;;  %v5035_v53 = vld [vmem:[%s6663_s17 + $0x80] sm:$0xff] (!%p5028_p1)  ;;  %s6414_s20 = smov (!%p5028_p1), 8   ;;  %v5038_v55 = vld [vmem:[%s6663_s17 + $0x98] sm:$0xff] (!%p5028_p1) }
  0xde   : > { %743 = sbr.rel (%p5028_p1) target bundleno = 342 (0x156), region = 88  ;;  %769 = vrot.lane.b32.xlu1 (!%p5028_p1), %v5037_v52, %s6414_s20  ;;  %765 = vrot.lane.b32.xlu0 (!%p5028_p1), %v5035_v53, %s6414_s20  ;;  %v5031_v54 = vld [vmem:[%s6673_s27 + $0x40] sm:$0xff] (!%p5028_p1)  ;;  %v5036_v56 = vld [vmem:[%s6663_s17 + $0x88] sm:$0xff] (!%p5028_p1) }
  0xdf   : > { %752 = vst.msk [vmem:[#allocation2 + $0x109] sm:$0xff] (!%p5028_p1), %vm584_vm0, %v5031_v54  ;;  %750 = vst.msk [vmem:[#allocation2 + $0xf1] sm:$0xff] (!%p5028_p1), %vm584_vm0, %v5031_v54  ;;  %v5032_v57 = vld [vmem:[%s6673_s27 + $0x48] sm:$0xff] (!%p5028_p1) }
  0xe0   : > { %753 = vst.msk [vmem:[#allocation2 + $0x111] sm:$0xff] (!%p5028_p1), %vm584_vm0, %v5032_v57  ;;  %751 = vst.msk [vmem:[#allocation2 + $0xf9] sm:$0xff] (!%p5028_p1), %vm584_vm0, %v5032_v57 }
  0xe2   : > { %771 = vrot.lane.b32.xlu1 (!%p5028_p1), %v5038_v55, %s6414_s20  ;;  %767 = vrot.lane.b32.xlu0 (!%p5028_p1), %v5036_v56, %s6414_s20 }
 0x150   : > { %v770_v58 = vpop.permute.xlu1 %769  ;;  %v766_v59 = vpop.permute.xlu0 %765 }
 0x151   : > { %779 = vst.msk [vmem:[#allocation2 + $0x109] sm:$0xff] %vm683_vm1, %v770_v58  ;;  %777 = vst.msk [vmem:[#allocation2 + $0xf1] sm:$0xff] %vm683_vm1, %v766_v59 }
 0x154   : > { %v772_v60 = vpop.permute.xlu1 %771  ;;  %v768_v61 = vpop.permute.xlu0 %767 }
 0x155   : > { %780 = vst.msk [vmem:[#allocation2 + $0x111] sm:$0xff] %vm683_vm1, %v772_v60  ;;  %778 = vst.msk [vmem:[#allocation2 + $0xf9] sm:$0xff] %vm683_vm1, %v768_v61 }
 0x156 PF: > { %p5039_p2 = scmp.ne.s32.totalorder %s6393_s18, 1 }
 0x157   : > { %v6415_v62 = vmov (!%p5039_p2), 0.0  }
 0x158   : > { %784 = sbr.rel (%p5039_p2) target bundleno = 351 (0x15f), region = 92  ;;  %786 = vst [vmem:[#allocation2 + $0xf0] sm:$0xff] (!%p5039_p2), %v6415_v62  ;;  %787 = vst [vmem:[#allocation2 + $0xf8] sm:$0xff] (!%p5039_p2), %v6415_v62 }
 0x159   : > { %788 = vst [vmem:[#allocation2 + $0x100] sm:$0x3] (!%p5039_p2), %v6415_v62  ;;  %789 = vst [vmem:[#allocation2 + $0x108] sm:$0xff] (!%p5039_p2), %v6415_v62 }
 0x15a   : > { %790 = vst [vmem:[#allocation2 + $0x110] sm:$0xff] (!%p5039_p2), %v6415_v62  ;;  %791 = vst [vmem:[#allocation2 + $0x118] sm:$0x3] (!%p5039_p2), %v6415_v62 }
 0x15f PF: > { %v6015_v63 = vld [vmem:[%s8238_s2 + $0x40] sm:$0xff]   ;;  %v6019_v3 = vld [vmem:[%s8238_s2 + $0x48] sm:$0xff]   ;;  %v6023_v7 = vld [vmem:[%s8238_s2 + $0x50] sm:$0xff]   ;;  %vm2458_vm2 = vcmask 261120  }
 0x160   : > { %v6016_v0 = vld [vmem:[%s8238_s2 + $0xc0] sm:$0xff]   ;;  %5241 = vmatprep.subr.bf16.mxu0 %v6015_v63  ;;  %v6020_v4 = vld [vmem:[%s8238_s2 + $0xc8] sm:$0xff]   ;;  %v6024_v8 = vld [vmem:[%s8238_s2 + $0xd0] sm:$0xff]  }
 0x161   : > { %v6017_v1 = vld [vmem:[%s8238_s2] sm:$0xff]   ;;  %5317 = vmatprep.subr.bf16.mxu1 %v6016_v0  ;;  %v6021_v5 = vld [vmem:[%s8238_s2 + $0x8] sm:$0xff]   ;;  %v6025_v9 = vld [vmem:[%s8238_s2 + $0x10] sm:$0xff]  }
 0x162   : > { %v6018_v2 = vld [vmem:[%s8238_s2 + $0x80] sm:$0xff]   ;;  %5242 = vmatpush3.bf16.msra.mxu0 %v6017_v1  ;;  %v6022_v6 = vld [vmem:[%s8238_s2 + $0x88] sm:$0xff]   ;;  %v6026_v10 = vld [vmem:[%s8238_s2 + $0x90] sm:$0xff]  }
 0x163   : > { %5318 = vmatpush3.bf16.msra.mxu1 %v6018_v2  ;;  %5243 = vmatprep.subr.bf16.mxu0 %v6019_v3  ;;  %v6027_v11 = vld [vmem:[%s8238_s2 + $0x58] sm:$0xff]   ;;  %v6031_v15 = vld [vmem:[%s8238_s2 + $0x60] sm:$0xff]   ;;  %v6035_v19 = vld [vmem:[%s8238_s2 + $0x68] sm:$0xff]  }
 0x164   : > { %5319 = vmatprep.subr.bf16.mxu1 %v6020_v4  ;;  %v6028_v12 = vld [vmem:[%s8238_s2 + $0xd8] sm:$0xff]   ;;  %v6032_v16 = vld [vmem:[%s8238_s2 + $0xe0] sm:$0xff]   ;;  %v6036_v20 = vld [vmem:[%s8238_s2 + $0xe8] sm:$0xff]  }
 0x165   : > { %v6029_v13 = vld [vmem:[%s8238_s2 + $0x18] sm:$0xff]   ;;  %v6033_v17 = vld [vmem:[%s8238_s2 + $0x20] sm:$0xff]   ;;  %v6037_v21 = vld [vmem:[%s8238_s2 + $0x28] sm:$0xff]  }
 0x166   : > { %5244 = vmatpush3.bf16.msra.mxu0 %v6021_v5  ;;  %v6030_v14 = vld [vmem:[%s8238_s2 + $0x98] sm:$0xff]   ;;  %v6034_v18 = vld [vmem:[%s8238_s2 + $0xa0] sm:$0xff]   ;;  %v6038_v22 = vld [vmem:[%s8238_s2 + $0xa8] sm:$0xff]  }
 0x167   : > { %5320 = vmatpush3.bf16.msra.mxu1 %v6022_v6  ;;  %5245 = vmatprep.subr.bf16.mxu0 %v6023_v7  ;;  %v6039_v23 = vld [vmem:[%s8238_s2 + $0x70] sm:$0xff]   ;;  %v6043_v27 = vld [vmem:[%s8238_s2 + $0x78] sm:$0xff]   ;;  %v832_v31 = vld [vmem:[#allocation2 + $0x1] sm:$0xff] }
 0x168   : > { %5321 = vmatprep.subr.bf16.mxu1 %v6024_v8  ;;  %v6040_v24 = vld [vmem:[%s8238_s2 + $0xf0] sm:$0xff]   ;;  %v6044_v28 = vld [vmem:[%s8238_s2 + $0xf8] sm:$0xff]   ;;  %v914_v35 = vld [vmem:[#allocation2 + $0x20] sm:$0xff] }
 0x169   : > { %v6041_v25 = vld [vmem:[%s8238_s2 + $0x30] sm:$0xff]   ;;  %v6045_v29 = vld [vmem:[%s8238_s2 + $0x38] sm:$0xff]   ;;  %v792_v36 = vld [vmem:[#allocation2] sm:$0xff] }
 0x16a   : > { %5246 = vmatpush3.bf16.msra.mxu0 %v6025_v9  ;;  %v6042_v26 = vld [vmem:[%s8238_s2 + $0xb0] sm:$0xff]   ;;  %v6046_v30 = vld [vmem:[%s8238_s2 + $0xb8] sm:$0xff]   ;;  %v793_v37 = vld [vmem:[#allocation2 + $0x8] sm:$0xff] }
 0x16b   : > { %5322 = vmatpush3.bf16.msra.mxu1 %v6026_v10  ;;  %5247 = vmatprep.subr.bf16.mxu0 %v6027_v11  ;;  %v833_v32 = vld [vmem:[#allocation2 + $0x9] sm:$0xff]  ;;  %v913_v33 = vld [vmem:[#allocation2 + $0x18] sm:$0xff]  ;;  %v812_v39 = vpack.c.bf16 %v793_v37, %v792_v36  ;;  %v6047_v43 = vld [vmem:[%s8238_s2 + $0x140] sm:$0xff]  }
 0x16c   : > { %5323 = vmatprep.subr.bf16.mxu1 %v6028_v12  ;;  %v852_v34 = vpack.c.bf16 %v833_v32, %v832_v31  ;;  %v933_v38 = vpack.c.bf16 %v914_v35, %v913_v33  ;;  %v872_v40 = vld [vmem:[#allocation2 + $0x2] sm:$0xff]  ;;  %v873_v41 = vld [vmem:[#allocation2 + $0xa] sm:$0xff]  ;;  %v834_v45 = vld [vmem:[#allocation2 + $0x19] sm:$0xff] }
 0x16d   : > { %v892_v42 = vpack.c.bf16 %v873_v41, %v872_v40  ;;  %v6048_v44 = vld [vmem:[%s8238_s2 + $0x100] sm:$0xff]   ;;  %v915_v47 = vld [vmem:[#allocation2 + $0x30] sm:$0xff]  ;;  %v916_v48 = vld [vmem:[#allocation2 + $0x38] sm:$0xff] }
 0x16e   : > { %5248 = vmatpush3.bf16.msra.mxu0 %v6029_v13  ;;  %1851 = vmatprep.mubr.bf16.mxu0 %v852_v34  ;;  %v835_v46 = vld [vmem:[#allocation2 + $0x21] sm:$0xff]  ;;  %v6878_v50 = vpack.c.bf16 %v916_v48, %v915_v47  ;;  %v836_v55 = vld [vmem:[#allocation2 + $0x31] sm:$0xff]  ;;  %v837_v57 = vld [vmem:[#allocation2 + $0x39] sm:$0xff] }
 0x16f   : > { %5324 = vmatpush3.bf16.msra.mxu1 %v6030_v14  ;;  %5249 = vmatprep.subr.bf16.mxu0 %v6031_v15  ;;  %v6876_v49 = vpack.c.bf16 %v835_v46, %v834_v45  ;;  %v874_v51 = vld [vmem:[#allocation2 + $0x1a] sm:$0xff]  ;;  %v875_v52 = vld [vmem:[#allocation2 + $0x22] sm:$0xff]  ;;  %v918_v59 = vld [vmem:[#allocation2 + $0x50] sm:$0xff]  ;;  %v6890_v60 = vpack.c.bf16 %v837_v57, %v836_v55 }
 0x170   : > { %5325 = vmatprep.subr.bf16.mxu1 %v6032_v16  ;;  %1964 = vmatprep.mubr.bf16.mxu1 %v933_v38  ;;  %v6049_v53 = vld [vmem:[%s8238_s2 + $0x148] sm:$0xff]   ;;  %v6888_v56 = vpack.c.bf16 %v875_v52, %v874_v51  ;;  %v6051_v62 = vld [vmem:[%s8238_s2 + $0x150] sm:$0xff]   ;;  %v877_v1 = vld [vmem:[#allocation2 + $0x3a] sm:$0xff] }
 0x171   : > { %v6050_v54 = vld [vmem:[%s8238_s2 + $0x108] sm:$0xff]   ;;  %v6052_v63 = vld [vmem:[%s8238_s2 + $0x110] sm:$0xff]   ;;  %v919_v4 = vld [vmem:[#allocation2 + $0x60] sm:$0xff] }
 0x172   : > { %5250 = vmatpush3.bf16.msra.mxu0 %v6033_v17  ;;  %v917_v58 = vld [vmem:[#allocation2 + $0x48] sm:$0xff]  ;;  %v876_v0 = vld [vmem:[#allocation2 + $0x32] sm:$0xff]  ;;  %v6055_v11 = vld [vmem:[%s8238_s2 + $0x1c0] sm:$0xff]  }
 0x173   : > { %5326 = vmatpush3.bf16.msra.mxu1 %v6034_v18  ;;  %5251 = vmatprep.subr.bf16.mxu0 %v6035_v19  ;;  %v6892_v61 = vpack.c.bf16 %v918_v59, %v917_v58  ;;  %v838_v2 = vld [vmem:[#allocation2 + $0x49] sm:$0xff]  ;;  %v839_v3 = vld [vmem:[#allocation2 + $0x51] sm:$0xff]  ;;  %v6906_v7 = vpack.c.bf16 %v877_v1, %v876_v0  ;;  %v6056_v13 = vld [vmem:[%s8238_s2 + $0x180] sm:$0xff]  }
 0x174   : > { %5327 = vmatprep.subr.bf16.mxu1 %v6036_v20  ;;  %v920_v5 = vld [vmem:[#allocation2 + $0x68] sm:$0xff]  ;;  %v6053_v6 = vld [vmem:[%s8238_s2 + $0x158] sm:$0xff]   ;;  %v6908_v8 = vpack.c.bf16 %v839_v3, %v838_v2  ;;  %v922_v18 = vld [vmem:[#allocation2 + $0x80] sm:$0xff] }
 0x175   : > { %v6054_v9 = vld [vmem:[%s8238_s2 + $0x118] sm:$0xff]   ;;  %v6913_v10 = vpack.c.bf16 %v920_v5, %v919_v4  ;;  %v878_v12 = vld [vmem:[#allocation2 + $0x4a] sm:$0xff]  ;;  %v840_v15 = vld [vmem:[#allocation2 + $0x61] sm:$0xff] }
 0x176   : > { %5252 = vmatpush3.bf16.msra.mxu0 %v6037_v21  ;;  %v879_v14 = vld [vmem:[#allocation2 + $0x52] sm:$0xff]  ;;  %v841_v16 = vld [vmem:[#allocation2 + $0x69] sm:$0xff]  ;;  %v6057_v19 = vld [vmem:[%s8238_s2 + $0x160] sm:$0xff]  }
 0x177   : > { %5328 = vmatpush3.bf16.msra.mxu1 %v6038_v22  ;;  %5253 = vmatprep.subr.bf16.mxu0 %v6039_v23  ;;  %v921_v17 = vld [vmem:[#allocation2 + $0x78] sm:$0xff]  ;;  %v6058_v20 = vld [vmem:[%s8238_s2 + $0x120] sm:$0xff]   ;;  %v6931_v21 = vpack.c.bf16 %v879_v14, %v878_v12  ;;  %v6933_v22 = vpack.c.bf16 %v841_v16, %v840_v15  ;;  %v6059_v23 = vld [vmem:[%s8238_s2 + $0x1c8] sm:$0xff]  }
 0x178   : > { %5329 = vmatprep.subr.bf16.mxu1 %v6040_v24  ;;  %v6938_v24 = vpack.c.bf16 %v922_v18, %v921_v17  ;;  %v6062_v31 = vld [vmem:[%s8238_s2 + $0x128] sm:$0xff]   ;;  %v923_v32 = vld [vmem:[#allocation2 + $0x90] sm:$0xff]  ;;  %v924_v33 = vld [vmem:[#allocation2 + $0x98] sm:$0xff] }
 0x179   : > { %v6063_v36 = vld [vmem:[%s8238_s2 + $0x1d0] sm:$0xff]   ;;  %v6960_v37 = vpack.c.bf16 %v924_v33, %v923_v32  ;;  %v882_v40 = vld [vmem:[#allocation2 + $0x7a] sm:$0xff]  ;;  %v883_v41 = vld [vmem:[#allocation2 + $0x82] sm:$0xff] }
 0x17a   : > { %5254 = vmatpush3.bf16.msra.mxu0 %v6041_v25  ;;  %v6060_v25 = vld [vmem:[%s8238_s2 + $0x188] sm:$0xff]   ;;  %v845_v45 = vld [vmem:[#allocation2 + $0x99] sm:$0xff]  ;;  %v926_v47 = vld [vmem:[#allocation2 + $0xb0] sm:$0xff]  ;;  %v6981_v51 = vpack.c.bf16 %v883_v41, %v882_v40 }
 0x17b   : > { %5330 = vmatpush3.bf16.msra.mxu1 %v6042_v26  ;;  %5255 = vmatprep.subr.bf16.mxu0 %v6043_v27  ;;  %v880_v26 = vld [vmem:[#allocation2 + $0x62] sm:$0xff]  ;;  %v881_v27 = vld [vmem:[#allocation2 + $0x6a] sm:$0xff]  ;;  %v6068_v48 = vld [vmem:[%s8238_s2 + $0x198] sm:$0xff]  }
 0x17c   : > { %5331 = vmatprep.subr.bf16.mxu1 %v6044_v28  ;;  %v842_v28 = vld [vmem:[#allocation2 + $0x79] sm:$0xff]  ;;  %v6953_v34 = vpack.c.bf16 %v881_v27, %v880_v26  ;;  %v925_v46 = vld [vmem:[#allocation2 + $0xa8] sm:$0xff]  ;;  %v847_v0 = vld [vmem:[#allocation2 + $0xb1] sm:$0xff] }
 0x17d   : > { %v6070_v55 = vld [vmem:[%s8238_s2 + $0x1a0] sm:$0xff]   ;;  %v6071_v57 = vld [vmem:[%s8238_s2 + $0x178] sm:$0xff]   ;;  %v928_v2 = vld [vmem:[#allocation2 + $0xc8] sm:$0xff] }
 0x17e   : > { %5256 = vmatpush3.bf16.msra.mxu0 %v6045_v29  ;;  %v6061_v29 = vld [vmem:[%s8238_s2 + $0x168] sm:$0xff]   ;;  %v884_v58 = vld [vmem:[#allocation2 + $0x92] sm:$0xff]  ;;  %v885_v59 = vld [vmem:[#allocation2 + $0x9a] sm:$0xff] }
 0x17f   : > { %5332 = vmatpush3.bf16.msra.mxu1 %v6046_v30  ;;  %5393 = vmatprep.subr.bf16.mxu0 %v6047_v43  ;;  %v843_v30 = vld [vmem:[#allocation2 + $0x81] sm:$0xff]  ;;  %v844_v43 = vld [vmem:[#allocation2 + $0x91] sm:$0xff]  ;;  %v7009_v5 = vpack.c.bf16 %v885_v59, %v884_v58  ;;  %v849_v17 = vld [vmem:[#allocation2 + $0xc9] sm:$0xff] }
 0x180   : > { %5469 = vmatprep.subr.bf16.mxu1 %v6055_v11  ;;  %v6955_v35 = vpack.c.bf16 %v843_v30, %v842_v28  ;;  %v6983_v52 = vpack.c.bf16 %v845_v45, %v844_v43  ;;  %v927_v1 = vld [vmem:[#allocation2 + $0xc0] sm:$0xff]  ;;  %v6073_v3 = vld [vmem:[%s8238_s2 + $0x138] sm:$0xff]   ;;  %v6074_v4 = vld [vmem:[%s8238_s2 + $0x1a8] sm:$0xff]  }
 0x181   : > { %1852 = vmatmul.mubr.bf16.vlgmr.msra.gmra.mrb[0].mxu0 %v812_v39  ;;  %v6065_v39 = vld [vmem:[%s8238_s2 + $0x170] sm:$0xff]   ;;  %v7016_v11 = vpack.c.bf16 %v928_v2, %v927_v1  ;;  %v848_v16 = vld [vmem:[#allocation2 + $0xc1] sm:$0xff]  ;;  %v929_v18 = vld [vmem:[#allocation2 + $0xd8] sm:$0xff] }
 0x182   : > { %1965 = vmatmul.mubr.bf16.vlgmr.msra.gmra.mrb[0].mxu1 %v892_v42  ;;  %5394 = vmatpush3.bf16.msra.mxu0 %v6048_v44  ;;  %v6066_v42 = vld [vmem:[%s8238_s2 + $0x130] sm:$0xff]   ;;  %v6067_v44 = vld [vmem:[%s8238_s2 + $0x1d8] sm:$0xff]   ;;  %v7036_v26 = vpack.c.bf16 %v849_v17, %v848_v16  ;;  %v888_v28 = vld [vmem:[#allocation2 + $0xc2] sm:$0xff] }
 0x183   : > { %1859 = vmatprep.mubr.bf16.mxu0 %v6876_v49  ;;  %1972 = vmatprep.mubr.bf16.mxu1 %v6878_v50  ;;  %v6076_v12 = vld [vmem:[%s8238_s2 + $0x1b0] sm:$0xff]   ;;  %v850_v30 = vld [vmem:[#allocation2 + $0xd9] sm:$0xff]  ;;  %v891_v41 = vld [vmem:[#allocation2 + $0xe2] sm:$0xff] }
 0x184   : > { %5395 = vmatprep.subr.bf16.mxu0 %v6049_v53  ;;  %5470 = vmatpush3.bf16.msra.mxu1 %v6056_v13  ;;  %v6069_v53 = vld [vmem:[%s8238_s2 + $0x1e0] sm:$0xff]   ;;  %v6077_v13 = vld [vmem:[%s8238_s2 + $0x1f8] sm:$0xff]   ;;  %v886_v14 = vld [vmem:[#allocation2 + $0xaa] sm:$0xff] }
 0x185   : > { %5471 = vmatprep.subr.bf16.mxu1 %v6059_v23  ;;  %v887_v15 = vld [vmem:[#allocation2 + $0xb2] sm:$0xff]  ;;  %v930_v23 = vld [vmem:[#allocation2 + $0xe0] sm:$0xff]  ;;  %v6080_v43 = vld [vmem:[%s8238_s2 + $0x208] sm:$0xff]  }
 0x186   : > { %5396 = vmatpush3.bf16.msra.mxu0 %v6050_v54  ;;  %v6988_v54 = vpack.c.bf16 %v926_v47, %v925_v46  ;;  %v7038_v27 = vpack.c.bf16 %v930_v23, %v929_v18  ;;  %v931_v32 = vld [vmem:[#allocation2 + $0xf0] sm:$0xff]  ;;  %v932_v33 = vld [vmem:[#allocation2 + $0xf8] sm:$0xff] }
 0x187   : > { %5397 = vmatprep.subr.bf16.mxu0 %v6051_v62  ;;  %v846_v62 = vld [vmem:[#allocation2 + $0xa9] sm:$0xff]  ;;  %v890_v40 = vld [vmem:[#allocation2 + $0xda] sm:$0xff]  ;;  %v1092_v45 = vld [vmem:[#allocation2 + $0x111] sm:$0xff] }
 0x188   : > { %5472 = vmatpush3.bf16.msra.mxu1 %v6060_v25  ;;  %v7034_v25 = vpack.c.bf16 %v887_v15, %v886_v14 }
 0x189   : > { %1860 = vmatmul.mubr.bf16.gmra.mrb[4].mxu0 %v933_v38  ;;  %v6064_v38 = vld [vmem:[%s8238_s2 + $0x190] sm:$0xff]   ;;  %5473 = vmatprep.subr.bf16.mxu1 %v6063_v36 }
 0x18a   : > { %1973 = vmatmul.mubr.bf16.gmra.mrb[4].mxu1 %v6888_v56  ;;  %1867 = vmatprep.mubr.bf16.mxu0 %v6890_v60 }
 0x18b   : > { %1980 = vmatprep.mubr.bf16.mxu1 %v6892_v61  ;;  %5398 = vmatpush3.bf16.msra.mxu0 %v6052_v63  ;;  %v6072_v63 = vld [vmem:[%s8238_s2 + $0x1e8] sm:$0xff]  }
 0x18c   : > { %5399 = vmatprep.subr.bf16.mxu0 %v6053_v6  ;;  %5474 = vmatpush3.bf16.msra.mxu1 %v6064_v38  ;;  %v7011_v6 = vpack.c.bf16 %v847_v0, %v846_v62 }
 0x18d   : > { %5475 = vmatprep.subr.bf16.mxu1 %v6067_v44  ;;  %v6081_v44 = vld [vmem:[%s8238_s2 + $0x210] sm:$0xff]  }
 0x18f   : > { %5400 = vmatpush3.bf16.msra.mxu0 %v6054_v9  ;;  %v6075_v9 = vld [vmem:[%s8238_s2 + $0x1f0] sm:$0xff]  }
 0x190   : > { %5401 = vmatprep.subr.bf16.mxu0 %v6057_v19  ;;  %5476 = vmatpush3.bf16.msra.mxu1 %v6068_v48  ;;  %v6079_v19 = vld [vmem:[%s8238_s2 + $0x200] sm:$0xff]   ;;  %v1051_v48 = vld [vmem:[#allocation2 + $0x108] sm:$0xff] }
 0x191   : > { %1868 = vmatmul.mubr.bf16.gmra.mrb[8].mxu0 %v6878_v50  ;;  %5477 = vmatprep.subr.bf16.mxu1 %v6069_v53 }
 0x192   : > { %1981 = vmatmul.mubr.bf16.gmra.mrb[8].mxu1 %v6906_v7  ;;  %1875 = vmatprep.mubr.bf16.mxu0 %v6908_v8 }
 0x193   : > { %1988 = vmatprep.mubr.bf16.mxu1 %v6913_v10  ;;  %5402 = vmatpush3.bf16.msra.mxu0 %v6058_v20  ;;  %v6078_v20 = vld [vmem:[%s8238_s2 + $0x1b8] sm:$0xff]  }
 0x194   : > { %5403 = vmatprep.subr.bf16.mxu0 %v6061_v29  ;;  %5478 = vmatpush3.bf16.msra.mxu1 %v6070_v55  ;;  %v889_v29 = vld [vmem:[#allocation2 + $0xca] sm:$0xff]  ;;  %v1132_v55 = vld [vmem:[#allocation2 + $0x112] sm:$0xff] }
 0x195   : > { %5479 = vmatprep.subr.bf16.mxu1 %v6072_v63  ;;  %v7044_v36 = vpack.c.bf16 %v889_v29, %v888_v28 }
 0x197   : > { %5404 = vmatpush3.bf16.msra.mxu0 %v6062_v31  ;;  %v851_v31 = vld [vmem:[#allocation2 + $0xe1] sm:$0xff] }
 0x198   : > { %5405 = vmatprep.subr.bf16.mxu0 %v6065_v39  ;;  %5480 = vmatpush3.bf16.msra.mxu1 %v6074_v4  ;;  %v7046_v38 = vpack.c.bf16 %v851_v31, %v850_v30  ;;  %v7048_v39 = vpack.c.bf16 %v932_v33, %v931_v32 }
 0x199   : > { %1876 = vmatmul.mubr.bf16.gmra.mrb[12].mxu0 %v6892_v61  ;;  %5481 = vmatprep.subr.bf16.mxu1 %v6075_v9 }
 0x19a   : > { %1989 = vmatmul.mubr.bf16.gmra.mrb[12].mxu1 %v6931_v21  ;;  %1883 = vmatprep.mubr.bf16.mxu0 %v6933_v22 }
 0x19b   : > { %1996 = vmatprep.mubr.bf16.mxu1 %v6938_v24  ;;  %5406 = vmatpush3.bf16.msra.mxu0 %v6066_v42  ;;  %v7054_v42 = vpack.c.bf16 %v891_v41, %v890_v40 }
 0x19c   : > { %5407 = vmatprep.subr.bf16.mxu0 %v6071_v57  ;;  %5482 = vmatpush3.bf16.msra.mxu1 %v6076_v12 }
 0x19d   : > { %5483 = vmatprep.subr.bf16.mxu1 %v6077_v13 }
 0x19f   : > { %5408 = vmatpush3.bf16.msra.mxu0 %v6073_v3 }
 0x1a0   : > { %5842 = vmatprep.subr.bf16.mxu0 %v6079_v19  ;;  %5484 = vmatpush3.bf16.msra.mxu1 %v6078_v20 }
 0x1a1   : > { %1884 = vmatmul.mubr.bf16.gmra.mrb[16].mxu0 %v6913_v10 }
 0x1a2   : > { %1997 = vmatmul.mubr.bf16.gmra.mrb[16].mxu1 %v6953_v34  ;;  %1891 = vmatprep.mubr.bf16.mxu0 %v6955_v35 }
 0x1a3   : > { %2004 = vmatprep.mubr.bf16.mxu1 %v6960_v37 }
 0x1a9   : > { %1892 = vmatmul.mubr.bf16.gmra.mrb[20].mxu0 %v6938_v24 }
 0x1aa   : > { %2005 = vmatmul.mubr.bf16.gmra.mrb[20].mxu1 %v6981_v51  ;;  %1899 = vmatprep.mubr.bf16.mxu0 %v6983_v52 }
 0x1ab   : > { %2012 = vmatprep.mubr.bf16.mxu1 %v6988_v54 }
 0x1b1   : > { %1900 = vmatmul.mubr.bf16.gmra.mrb[24].mxu0 %v6960_v37 }
 0x1b2   : > { %2013 = vmatmul.mubr.bf16.gmra.mrb[24].mxu1 %v7009_v5  ;;  %1907 = vmatprep.mubr.bf16.mxu0 %v7011_v6 }
 0x1b3   : > { %2020 = vmatprep.mubr.bf16.mxu1 %v7016_v11 }
 0x1b9   : > { %1908 = vmatmul.mubr.bf16.gmra.mrb[28].mxu0 %v6988_v54 }
 0x1ba   : > { %2021 = vmatmul.mubr.bf16.gmra.mrb[28].mxu1 %v7034_v25  ;;  %1915 = vmatprep.mubr.bf16.mxu0 %v7036_v26 }
 0x1bb   : > { %2028 = vmatprep.mubr.bf16.mxu1 %v7038_v27 }
 0x1c1   : > { %1916 = vmatmul.mubr.bf16.gmra.mrb[32].mxu0 %v7016_v11 }
 0x1c2   : > { %2029 = vmatmul.mubr.bf16.gmra.mrb[32].mxu1 %v7044_v36  ;;  %1923 = vmatprep.mubr.bf16.mxu0 %v7046_v38 }
 0x1c3   : > { %2036 = vmatprep.mubr.bf16.mxu1 %v7048_v39 }
 0x1c9   : > { %1924 = vmatmul.mubr.bf16.gmra.mrb[36].mxu0 %v7038_v27 }
 0x1ca   : > { %2037 = vmatmul.mubr.bf16.gmra.mrb[36].mxu1 %v7054_v42  ;;  %2077 = vmatprep.mubr.bf16.mxu0 %v6888_v56  ;;  %v6082_v56 = vld [vmem:[%s8238_s2 + $0x218] sm:$0xff]  }
 0x1cb   : > { %2190 = vmatprep.mubr.bf16.mxu1 %v6890_v60 }
 0x1d1   : > { %2078 = vmatmul.mubr.bf16.vlgmr.msra.gmra.mrb[40].mxu0 %v6876_v49  ;;  %v6083_v49 = vld [vmem:[%s8238_s2 + $0x220] sm:$0xff]  }
 0x1d2   : > { %5843 = vmatpush3.bf16.msra.mxu0 %v6079_v19  ;;  %2191 = vmatmul.mubr.bf16.vlgmr.msra.gmra.mrb[40].mxu1 %v6878_v50  ;;  %v6084_v50 = vld [vmem:[%s8238_s2 + $0x228] sm:$0xff]  }
 0x1d3   : > { %2085 = vmatprep.mubr.bf16.mxu0 %v6906_v7  ;;  %2198 = vmatprep.mubr.bf16.mxu1 %v6908_v8 }
 0x1d4   : > { %5844 = vmatprep.subr.bf16.mxu0 %v6080_v43 }
 0x1d6   : > { %5845 = vmatpush3.bf16.msra.mxu0 %v6080_v43 }
 0x1d7   : > { %5846 = vmatprep.subr.bf16.mxu0 %v6081_v44 }
 0x1d9   : > { %2086 = vmatmul.mubr.bf16.gmra.mrb[44].mxu0 %v6890_v60  ;;  %v6085_v60 = vld [vmem:[%s8238_s2 + $0x230] sm:$0xff]  }
 0x1da   : > { %2199 = vmatmul.mubr.bf16.gmra.mrb[44].mxu1 %v6892_v61  ;;  %2093 = vmatprep.mubr.bf16.mxu0 %v6931_v21  ;;  %v6086_v61 = vld [vmem:[%s8238_s2 + $0x238] sm:$0xff]  }
 0x1db   : > { %2206 = vmatprep.mubr.bf16.mxu1 %v6933_v22  ;;  %5847 = vmatpush3.bf16.msra.mxu0 %v6081_v44 }
 0x1dc   : > { %5848 = vmatprep.subr.bf16.mxu0 %v6082_v56 }
 0x1df   : > { %5849 = vmatpush3.bf16.msra.mxu0 %v6082_v56 }
 0x1e0   : > { %5850 = vmatprep.subr.bf16.mxu0 %v6083_v49 }
 0x1e1   : > { %2094 = vmatmul.mubr.bf16.gmra.mrb[48].mxu0 %v6908_v8  ;;  %v1089_v8 = vld [vmem:[#allocation2 + $0xf1] sm:$0xff] }
 0x1e2   : > { %2207 = vmatmul.mubr.bf16.gmra.mrb[48].mxu1 %v6913_v10  ;;  %2101 = vmatprep.mubr.bf16.mxu0 %v6953_v34  ;;  %v1090_v10 = vld [vmem:[#allocation2 + $0xf9] sm:$0xff] }
 0x1e3   : > { %2214 = vmatprep.mubr.bf16.mxu1 %v6955_v35  ;;  %5851 = vmatpush3.bf16.msra.mxu0 %v6083_v49 }
 0x1e4   : > { %5852 = vmatprep.subr.bf16.mxu0 %v6084_v50 }
 0x1e7   : > { %5853 = vmatpush3.bf16.msra.mxu0 %v6084_v50 }
 0x1e8   : > { %5854 = vmatprep.subr.bf16.mxu0 %v6085_v60 }
 0x1e9   : > { %2102 = vmatmul.mubr.bf16.gmra.mrb[52].mxu0 %v6933_v22  ;;  %v1101_v22 = vpack.c.bf16 %v1090_v10, %v1089_v8 }
 0x1ea   : > { %2215 = vmatmul.mubr.bf16.gmra.mrb[52].mxu1 %v6938_v24  ;;  %2109 = vmatprep.mubr.bf16.mxu0 %v6981_v51  ;;  %v1011_v24 = vld [vmem:[#allocation2 + $0xf2] sm:$0xff] }
 0x1eb   : > { %2222 = vmatprep.mubr.bf16.mxu1 %v6983_v52  ;;  %5855 = vmatpush3.bf16.msra.mxu0 %v6085_v60 }
 0x1ec   : > { %5856 = vmatprep.subr.bf16.mxu0 %v6086_v61 }
 0x1ef   : > { %5857 = vmatpush3.bf16.msra.mxu0 %v6086_v61 }
 0x1f1   : > { %2110 = vmatmul.mubr.bf16.gmra.mrb[56].mxu0 %v6955_v35  ;;  %v1012_v35 = vld [vmem:[#allocation2 + $0xfa] sm:$0xff] }
 0x1f2   : > { %2223 = vmatmul.mubr.bf16.gmra.mrb[56].mxu1 %v6960_v37  ;;  %2117 = vmatprep.mubr.bf16.mxu0 %v7009_v5  ;;  %v1091_v37 = vld [vmem:[#allocation2 + $0x109] sm:$0xff]  ;;  %v1022_v46 = vpack.c.bf16 %v1012_v35, %v1011_v24 }
 0x1f3   : > { %2230 = vmatprep.mubr.bf16.mxu1 %v7011_v6  ;;  %v1102_v47 = vpack.c.bf16 %v1092_v45, %v1091_v37 }
 0x1f9   : > { %2118 = vmatmul.mubr.bf16.gmra.mrb[60].mxu0 %v6983_v52  ;;  %v1052_v52 = vld [vmem:[#allocation2 + $0x110] sm:$0xff] }
 0x1fa   : > { %2231 = vmatmul.mubr.bf16.gmra.mrb[60].mxu1 %v6988_v54  ;;  %2125 = vmatprep.mubr.bf16.mxu0 %v7034_v25  ;;  %v1062_v53 = vpack.c.bf16 %v1052_v52, %v1051_v48  ;;  %v1131_v54 = vld [vmem:[#allocation2 + $0x10a] sm:$0xff] }
 0x1fb   : > { %2238 = vmatprep.mubr.bf16.mxu1 %v7036_v26  ;;  %v1142_v57 = vpack.c.bf16 %v1132_v55, %v1131_v54 }
 0x201   : > { %2126 = vmatmul.mubr.bf16.gmra.mrb[64].mxu0 %v7011_v6 }
 0x202   : > { %2239 = vmatmul.mubr.bf16.gmra.mrb[64].mxu1 %v7016_v11  ;;  %2133 = vmatprep.mubr.bf16.mxu0 %v7044_v36 }
 0x203   : > { %2246 = vmatprep.mubr.bf16.mxu1 %v7046_v38 }
 0x209   : > { %2134 = vmatmul.mubr.bf16.gmra.mrb[68].mxu0 %v7036_v26 }
 0x20a   : > { %2247 = vmatmul.mubr.bf16.gmra.mrb[68].mxu1 %v7038_v27  ;;  %2141 = vmatprep.mubr.bf16.mxu0 %v7054_v42 }
 0x20b   : > { %2254 = vmatprep.mubr.bf16.mxu1 %v1101_v22 }
 0x211   : > { %2142 = vmatmul.mubr.bf16.gmra.mrb[72].mxu0 %v7046_v38 }
 0x212   : > { %2255 = vmatmul.mubr.bf16.gmra.mrb[72].mxu1 %v7048_v39  ;;  %2149 = vmatprep.mubr.bf16.mxu0 %v1022_v46 }
 0x213   : > { %2262 = vmatprep.mubr.bf16.mxu1 %v1102_v47 }
 0x219   : > { %2150 = vmatmul.mubr.bf16.gmra.mrb[76].mxu0 %v1101_v22 }
 0x21a   : > { %2263 = vmatmul.mubr.bf16.gmra.mrb[76].mxu1 %v1062_v53  ;;  %5858 = vmatprep.mubr.bf16.mxu0 %v6906_v7 }
 0x221   : > { %5859 = vmatmul.mubr.bf16.vlgmr.msra.gmra.mrb[80].mxu0 %v6931_v21 }
 0x222   : > { %5862 = vmatprep.mubr.bf16.mxu0 %v6953_v34 }
 0x229   : > { %5863 = vmatmul.mubr.bf16.gmra.mrb[84].mxu0 %v6981_v51 }
 0x22a   : > { %5866 = vmatprep.mubr.bf16.mxu0 %v7009_v5 }
 0x231   : > { %5867 = vmatmul.mubr.bf16.gmra.mrb[88].mxu0 %v7034_v25 }
 0x232   : > { %5870 = vmatprep.mubr.bf16.mxu0 %v7044_v36 }
 0x239   : > { %5871 = vmatmul.mubr.bf16.gmra.mrb[92].mxu0 %v7054_v42 }
 0x23a   : > { %5874 = vmatprep.mubr.bf16.mxu0 %v1022_v46 }
 0x241   : > { %5875 = vmatmul.mubr.bf16.gmra.mrb[96].mxu0 %v1142_v57 }
 0x254   : > { %v5257_v7 = vpop.f32.mrb[0].mxu0 }
 0x255   : > { %v5333_v58 = vpop.f32.mrb[0].mxu1  ;;  %v5258_v21 = vpop.f32.mrb[1].mxu0 }
 0x256   : > { %v5259_v59 = vadd.f32 %v5258_v21, %v5257_v7  ;;  %v5334_v34 = vpop.f32.mrb[1].mxu1  ;;  %v5260_v62 = vpop.f32.mrb[2].mxu0 }
 0x257   : > { %v5335_v51 = vadd.f32 %v5334_v34, %v5333_v58  ;;  %v5336_v63 = vpop.f32.mrb[2].mxu1  ;;  %v5261_v0 = vpop.f32.mrb[3].mxu0 }
 0x258   : > { %v5262_v1 = vadd.f32 %v5261_v0, %v5260_v62  ;;  %v5337_v2 = vpop.f32.mrb[3].mxu1 }
 0x259   : > { %v7122_v3 = vadd.f32 %v5335_v51, %v5259_v59  ;;  %v5338_v4 = vadd.f32 %v5337_v2, %v5336_v63 }
 0x25b   : > { %v7124_v5 = vadd.f32 %v5338_v4, %v5262_v1 }
 0x25c   : > { %v5263_v6 = vpop.f32.mrb[4].mxu0 }
 0x25d   : > { %v5339_v9 = vpop.f32.mrb[4].mxu1  ;;  %v5264_v11 = vpop.f32.mrb[5].mxu0 }
 0x25e   : > { %v5265_v12 = vadd.f32 %v5264_v11, %v5263_v6  ;;  %v5340_v13 = vpop.f32.mrb[5].mxu1  ;;  %v5266_v14 = vpop.f32.mrb[6].mxu0 }
 0x25f   : > { %v5341_v15 = vadd.f32 %v5340_v13, %v5339_v9  ;;  %v5342_v16 = vpop.f32.mrb[6].mxu1  ;;  %v5267_v17 = vpop.f32.mrb[7].mxu0 }
 0x260   : > { %v5268_v18 = vadd.f32 %v5267_v17, %v5266_v14  ;;  %v5343_v19 = vpop.f32.mrb[7].mxu1 }
 0x261   : > { %v7126_v20 = vadd.f32 %v5341_v15, %v5265_v12  ;;  %v5344_v23 = vadd.f32 %v5343_v19, %v5342_v16 }
 0x263   : > { %v7128_v25 = vadd.f32 %v5344_v23, %v5268_v18 }
 0x264   : > { %v5269_v26 = vpop.f32.mrb[8].mxu0 }
 0x265   : > { %v5345_v27 = vpop.f32.mrb[8].mxu1  ;;  %v5270_v28 = vpop.f32.mrb[9].mxu0 }
 0x266   : > { %v5271_v29 = vadd.f32 %v5270_v28, %v5269_v26  ;;  %v5346_v30 = vpop.f32.mrb[9].mxu1  ;;  %v5272_v31 = vpop.f32.mrb[10].mxu0 }
 0x267   : > { %v5347_v32 = vadd.f32 %v5346_v30, %v5345_v27  ;;  %v5348_v33 = vpop.f32.mrb[10].mxu1  ;;  %v5273_v36 = vpop.f32.mrb[11].mxu0 }
 0x268   : > { %v5274_v38 = vadd.f32 %v5273_v36, %v5272_v31  ;;  %v5349_v39 = vpop.f32.mrb[11].mxu1 }
 0x269   : > { %v7130_v40 = vadd.f32 %v5347_v32, %v5271_v29  ;;  %v5350_v41 = vadd.f32 %v5349_v39, %v5348_v33 }
 0x26b   : > { %v7132_v42 = vadd.f32 %v5350_v41, %v5274_v38 }
 0x26c   : > { %v5275_v43 = vpop.f32.mrb[12].mxu0 }
 0x26d   : > { %v5351_v44 = vpop.f32.mrb[12].mxu1  ;;  %v5276_v56 = vpop.f32.mrb[13].mxu0 }
 0x26e   : > { %v5277_v49 = vadd.f32 %v5276_v56, %v5275_v43  ;;  %v5352_v50 = vpop.f32.mrb[13].mxu1  ;;  %v5278_v60 = vpop.f32.mrb[14].mxu0 }
 0x26f   : > { %v5353_v61 = vadd.f32 %v5352_v50, %v5351_v44  ;;  %v5354_v8 = vpop.f32.mrb[14].mxu1  ;;  %v5279_v10 = vpop.f32.mrb[15].mxu0 }
 0x270   : > { %v5280_v22 = vadd.f32 %v5279_v10, %v5278_v60  ;;  %v5355_v24 = vpop.f32.mrb[15].mxu1 }
 0x271   : > { %v7134_v35 = vadd.f32 %v5353_v61, %v5277_v49  ;;  %v5356_v37 = vadd.f32 %v5355_v24, %v5354_v8 }
 0x273   : > { %v7136_v45 = vadd.f32 %v5356_v37, %v5280_v22 }
 0x274   : > { %v5281_v46 = vpop.f32.mrb[16].mxu0 }
 0x275   : > { %v5357_v47 = vpop.f32.mrb[16].mxu1  ;;  %v5282_v48 = vpop.f32.mrb[17].mxu0 }
 0x276   : > { %v5283_v52 = vadd.f32 %v5282_v48, %v5281_v46  ;;  %v5358_v53 = vpop.f32.mrb[17].mxu1  ;;  %v5284_v54 = vpop.f32.mrb[18].mxu0 }
 0x277   : > { %v5359_v55 = vadd.f32 %v5358_v53, %v5357_v47  ;;  %v5360_v57 = vpop.f32.mrb[18].mxu1  ;;  %v5285_v7 = vpop.f32.mrb[19].mxu0 }
 0x278   : > { %v5286_v58 = vadd.f32 %v5285_v7, %v5284_v54  ;;  %v5361_v21 = vpop.f32.mrb[19].mxu1 }
 0x279   : > { %v7138_v59 = vadd.f32 %v5359_v55, %v5283_v52  ;;  %v5362_v34 = vadd.f32 %v5361_v21, %v5360_v57 }
 0x27b   : > { %v7140_v62 = vadd.f32 %v5362_v34, %v5286_v58 }
 0x27c   : > { %v5287_v51 = vpop.f32.mrb[20].mxu0 }
 0x27d   : > { %v5363_v63 = vpop.f32.mrb[20].mxu1  ;;  %v5288_v0 = vpop.f32.mrb[21].mxu0 }
 0x27e   : > { %v5289_v1 = vadd.f32 %v5288_v0, %v5287_v51  ;;  %v5364_v2 = vpop.f32.mrb[21].mxu1  ;;  %v5290_v4 = vpop.f32.mrb[22].mxu0 }
 0x27f   : > { %v5365_v6 = vadd.f32 %v5364_v2, %v5363_v63  ;;  %v5366_v9 = vpop.f32.mrb[22].mxu1  ;;  %v5291_v11 = vpop.f32.mrb[23].mxu0 }
 0x280   : > { %v5292_v12 = vadd.f32 %v5291_v11, %v5290_v4  ;;  %v5367_v13 = vpop.f32.mrb[23].mxu1 }
 0x281   : > { %v7142_v14 = vadd.f32 %v5365_v6, %v5289_v1  ;;  %v5368_v15 = vadd.f32 %v5367_v13, %v5366_v9 }
 0x283   : > { %v7144_v16 = vadd.f32 %v5368_v15, %v5292_v12 }
 0x284   : > { %v5293_v17 = vpop.f32.mrb[24].mxu0 }
 0x285   : > { %v5369_v18 = vpop.f32.mrb[24].mxu1  ;;  %v5294_v19 = vpop.f32.mrb[25].mxu0 }
 0x286   : > { %v5295_v23 = vadd.f32 %v5294_v19, %v5293_v17  ;;  %v5370_v26 = vpop.f32.mrb[25].mxu1  ;;  %v5296_v27 = vpop.f32.mrb[26].mxu0 }
 0x287   : > { %v5371_v28 = vadd.f32 %v5370_v26, %v5369_v18  ;;  %v5372_v29 = vpop.f32.mrb[26].mxu1  ;;  %v5297_v30 = vpop.f32.mrb[27].mxu0 }
 0x288   : > { %v5298_v31 = vadd.f32 %v5297_v30, %v5296_v27  ;;  %v5373_v32 = vpop.f32.mrb[27].mxu1 }
 0x289   : > { %v7146_v33 = vadd.f32 %v5371_v28, %v5295_v23  ;;  %v5374_v36 = vadd.f32 %v5373_v32, %v5372_v29 }
 0x28b   : > { %v7148_v38 = vadd.f32 %v5374_v36, %v5298_v31 }
 0x28c   : > { %v5299_v39 = vpop.f32.mrb[28].mxu0 }
 0x28d   : > { %v5375_v41 = vpop.f32.mrb[28].mxu1  ;;  %v5300_v43 = vpop.f32.mrb[29].mxu0 }
 0x28e   : > { %v5301_v44 = vadd.f32 %v5300_v43, %v5299_v39  ;;  %v5376_v56 = vpop.f32.mrb[29].mxu1  ;;  %v5302_v49 = vpop.f32.mrb[30].mxu0 }
 0x28f   : > { %v5377_v50 = vadd.f32 %v5376_v56, %v5375_v41  ;;  %v5378_v60 = vpop.f32.mrb[30].mxu1  ;;  %v5303_v61 = vpop.f32.mrb[31].mxu0 }
 0x290   : > { %v5304_v8 = vadd.f32 %v5303_v61, %v5302_v49  ;;  %v5379_v10 = vpop.f32.mrb[31].mxu1 }
 0x291   : > { %v7150_v22 = vadd.f32 %v5377_v50, %v5301_v44  ;;  %v5380_v24 = vadd.f32 %v5379_v10, %v5378_v60 }
 0x293   : > { %v7152_v37 = vadd.f32 %v5380_v24, %v5304_v8 }
 0x294   : > { %v5305_v46 = vpop.f32.mrb[32].mxu0 }
 0x295   : > { %v5381_v47 = vpop.f32.mrb[32].mxu1  ;;  %v5306_v48 = vpop.f32.mrb[33].mxu0 }
 0x296   : > { %v5307_v52 = vadd.f32 %v5306_v48, %v5305_v46  ;;  %v5382_v53 = vpop.f32.mrb[33].mxu1  ;;  %v5308_v54 = vpop.f32.mrb[34].mxu0 }
 0x297   : > { %v5383_v55 = vadd.f32 %v5382_v53, %v5381_v47  ;;  %v5384_v57 = vpop.f32.mrb[34].mxu1  ;;  %v5309_v7 = vpop.f32.mrb[35].mxu0 }
 0x298   : > { %v5310_v58 = vadd.f32 %v5309_v7, %v5308_v54  ;;  %v5385_v21 = vpop.f32.mrb[35].mxu1 }
 0x299   : > { %v7154_v34 = vadd.f32 %v5383_v55, %v5307_v52  ;;  %v5386_v51 = vadd.f32 %v5385_v21, %v5384_v57 }
 0x29b   : > { %v7156_v63 = vadd.f32 %v5386_v51, %v5310_v58 }
 0x29c   : > { %v5311_v0 = vpop.f32.mrb[36].mxu0 }
 0x29d   : > { %v5387_v1 = vpop.f32.mrb[36].mxu1  ;;  %v5312_v2 = vpop.f32.mrb[37].mxu0 }
 0x29e   : > { %v5313_v4 = vadd.f32 %v5312_v2, %v5311_v0  ;;  %v5388_v6 = vpop.f32.mrb[37].mxu1  ;;  %v5314_v9 = vpop.f32.mrb[38].mxu0 }
 0x29f   : > { %v5389_v11 = vadd.f32 %v5388_v6, %v5387_v1  ;;  %v5390_v12 = vpop.f32.mrb[38].mxu1  ;;  %v5315_v13 = vpop.f32.mrb[39].mxu0 }
 0x2a0   : > { %v5316_v15 = vadd.f32 %v5315_v13, %v5314_v9  ;;  %v5391_v17 = vpop.f32.mrb[39].mxu1 }
 0x2a1   : > { %v7158_v18 = vadd.f32 %v5389_v11, %v5313_v4  ;;  %v5392_v19 = vadd.f32 %v5391_v17, %v5390_v12 }
 0x2a3   : > { %v7160_v23 = vadd.f32 %v5392_v19, %v5316_v15 }
 0x2a4   : > { %v5409_v26 = vpop.f32.mrb[40].mxu0 }
 0x2a5   : > { %v5410_v27 = vpop.f32.mrb[41].mxu0  ;;  %v5485_v28 = vpop.f32.mrb[40].mxu1 }
 0x2a6   : > { %v5411_v29 = vadd.f32 %v5410_v27, %v5409_v26  ;;  %v5412_v30 = vpop.f32.mrb[42].mxu0  ;;  %v5486_v31 = vpop.f32.mrb[41].mxu1 }
 0x2a7   : > { %v5413_v32 = vpop.f32.mrb[43].mxu0  ;;  %v5487_v36 = vadd.f32 %v5486_v31, %v5485_v28  ;;  %v5488_v39 = vpop.f32.mrb[42].mxu1 }
 0x2a8   : > { %v2080_v41 = vadd.f32 %v5411_v29, %v7122_v3  ;;  %v5414_v43 = vadd.f32 %v5413_v32, %v5412_v30  ;;  %v5489_v44 = vpop.f32.mrb[43].mxu1 }
 0x2a9   : > { %v5490_v56 = vadd.f32 %v5489_v44, %v5488_v39 }
 0x2aa   : > { %v2083_v49 = vadd.f32 %v5414_v43, %v7124_v5  ;;  %v7164_v50 = vadd.f32 %v5487_v36, %v2080_v41 }
 0x2ac   : > { %v5415_v60 = vpop.f32.mrb[44].mxu0  ;;  %v7166_v61 = vadd.f32 %v5490_v56, %v2083_v49 }
 0x2ad   : > { %v5416_v8 = vpop.f32.mrb[45].mxu0  ;;  %v5491_v10 = vpop.f32.mrb[44].mxu1 }
 0x2ae   : > { %v5417_v24 = vadd.f32 %v5416_v8, %v5415_v60  ;;  %v5418_v46 = vpop.f32.mrb[46].mxu0  ;;  %v5492_v47 = vpop.f32.mrb[45].mxu1 }
 0x2af   : > { %v5419_v48 = vpop.f32.mrb[47].mxu0  ;;  %v5493_v52 = vadd.f32 %v5492_v47, %v5491_v10  ;;  %v5494_v53 = vpop.f32.mrb[46].mxu1 }
 0x2b0   : > { %v2088_v3 = vadd.f32 %v5417_v24, %v7126_v20  ;;  %v5420_v54 = vadd.f32 %v5419_v48, %v5418_v46  ;;  %v5495_v55 = vpop.f32.mrb[47].mxu1 }
 0x2b1   : > { %v5496_v57 = vadd.f32 %v5495_v55, %v5494_v53 }
 0x2b2   : > { %v2091_v5 = vadd.f32 %v5420_v54, %v7128_v25  ;;  %v7170_v7 = vadd.f32 %v5493_v52, %v2088_v3 }
 0x2b4   : > { %v5421_v58 = vpop.f32.mrb[48].mxu0  ;;  %v7172_v21 = vadd.f32 %v5496_v57, %v2091_v5 }
 0x2b5   : > { %v5422_v51 = vpop.f32.mrb[49].mxu0  ;;  %v5497_v0 = vpop.f32.mrb[48].mxu1 }
 0x2b6   : > { %v5423_v1 = vadd.f32 %v5422_v51, %v5421_v58  ;;  %v5424_v2 = vpop.f32.mrb[50].mxu0  ;;  %v5498_v4 = vpop.f32.mrb[49].mxu1 }
 0x2b7   : > { %v5425_v6 = vpop.f32.mrb[51].mxu0  ;;  %v5499_v9 = vadd.f32 %v5498_v4, %v5497_v0  ;;  %v5500_v11 = vpop.f32.mrb[50].mxu1 }
 0x2b8   : > { %v2096_v20 = vadd.f32 %v5423_v1, %v7130_v40  ;;  %v5426_v12 = vadd.f32 %v5425_v6, %v5424_v2  ;;  %v5501_v13 = vpop.f32.mrb[51].mxu1 }
 0x2b9   : > { %v5502_v15 = vadd.f32 %v5501_v13, %v5500_v11 }
 0x2ba   : > { %v2099_v25 = vadd.f32 %v5426_v12, %v7132_v42  ;;  %v7176_v17 = vadd.f32 %v5499_v9, %v2096_v20 }
 0x2bc   : > { %v5427_v19 = vpop.f32.mrb[52].mxu0  ;;  %v7178_v26 = vadd.f32 %v5502_v15, %v2099_v25 }
 0x2bd   : > { %v5428_v27 = vpop.f32.mrb[53].mxu0  ;;  %v5503_v28 = vpop.f32.mrb[52].mxu1 }
 0x2be   : > { %v5429_v29 = vadd.f32 %v5428_v27, %v5427_v19  ;;  %v5430_v30 = vpop.f32.mrb[54].mxu0  ;;  %v5504_v31 = vpop.f32.mrb[53].mxu1 }
 0x2bf   : > { %v5431_v32 = vpop.f32.mrb[55].mxu0  ;;  %v5505_v36 = vadd.f32 %v5504_v31, %v5503_v28  ;;  %v5506_v39 = vpop.f32.mrb[54].mxu1 }
 0x2c0   : > { %v2104_v40 = vadd.f32 %v5429_v29, %v7134_v35  ;;  %v5432_v41 = vadd.f32 %v5431_v32, %v5430_v30  ;;  %v5507_v43 = vpop.f32.mrb[55].mxu1 }
 0x2c1   : > { %v5508_v44 = vadd.f32 %v5507_v43, %v5506_v39 }
 0x2c2   : > { %v2107_v42 = vadd.f32 %v5432_v41, %v7136_v45  ;;  %v7182_v56 = vadd.f32 %v5505_v36, %v2104_v40 }
 0x2c4   : > { %v5433_v49 = vpop.f32.mrb[56].mxu0  ;;  %v7184_v60 = vadd.f32 %v5508_v44, %v2107_v42 }
 0x2c5   : > { %v5434_v8 = vpop.f32.mrb[57].mxu0  ;;  %v5509_v10 = vpop.f32.mrb[56].mxu1 }
 0x2c6   : > { %v5435_v24 = vadd.f32 %v5434_v8, %v5433_v49  ;;  %v5436_v46 = vpop.f32.mrb[58].mxu0  ;;  %v5510_v47 = vpop.f32.mrb[57].mxu1 }
 0x2c7   : > { %v5437_v48 = vpop.f32.mrb[59].mxu0  ;;  %v5511_v52 = vadd.f32 %v5510_v47, %v5509_v10  ;;  %v5512_v53 = vpop.f32.mrb[58].mxu1 }
 0x2c8   : > { %v2112_v35 = vadd.f32 %v5435_v24, %v7138_v59  ;;  %v5438_v3 = vadd.f32 %v5437_v48, %v5436_v46  ;;  %v5513_v54 = vpop.f32.mrb[59].mxu1 }
 0x2c9   : > { %v5514_v55 = vadd.f32 %v5513_v54, %v5512_v53 }
 0x2ca   : > { %v2115_v45 = vadd.f32 %v5438_v3, %v7140_v62  ;;  %v7188_v57 = vadd.f32 %v5511_v52, %v2112_v35 }
 0x2cc   : > { %v5439_v5 = vpop.f32.mrb[60].mxu0  ;;  %v7190_v58 = vadd.f32 %v5514_v55, %v2115_v45 }
 0x2cd   : > { %v5440_v51 = vpop.f32.mrb[61].mxu0  ;;  %v5515_v0 = vpop.f32.mrb[60].mxu1 }
 0x2ce   : > { %v5441_v1 = vadd.f32 %v5440_v51, %v5439_v5  ;;  %v5442_v2 = vpop.f32.mrb[62].mxu0  ;;  %v5516_v4 = vpop.f32.mrb[61].mxu1 }
 0x2cf   : > { %v5443_v6 = vpop.f32.mrb[63].mxu0  ;;  %v5517_v9 = vadd.f32 %v5516_v4, %v5515_v0  ;;  %v5518_v11 = vpop.f32.mrb[62].mxu1 }
 0x2d0   : > { %v2120_v59 = vadd.f32 %v5441_v1, %v7142_v14  ;;  %v5444_v20 = vadd.f32 %v5443_v6, %v5442_v2  ;;  %v5519_v12 = vpop.f32.mrb[63].mxu1 }
 0x2d1   : > { %v5520_v13 = vadd.f32 %v5519_v12, %v5518_v11 }
 0x2d2   : > { %v2123_v62 = vadd.f32 %v5444_v20, %v7144_v16  ;;  %v7194_v15 = vadd.f32 %v5517_v9, %v2120_v59 }
 0x2d4   : > { %v5445_v25 = vpop.f32.mrb[64].mxu0  ;;  %v7196_v19 = vadd.f32 %v5520_v13, %v2123_v62 }
 0x2d5   : > { %v5446_v27 = vpop.f32.mrb[65].mxu0  ;;  %v5521_v28 = vpop.f32.mrb[64].mxu1 }
 0x2d6   : > { %v5447_v29 = vadd.f32 %v5446_v27, %v5445_v25  ;;  %v5448_v30 = vpop.f32.mrb[66].mxu0  ;;  %v5522_v31 = vpop.f32.mrb[65].mxu1 }
 0x2d7   : > { %v5449_v32 = vpop.f32.mrb[67].mxu0  ;;  %v5523_v36 = vadd.f32 %v5522_v31, %v5521_v28  ;;  %v5524_v39 = vpop.f32.mrb[66].mxu1 }
 0x2d8   : > { %v2128_v14 = vadd.f32 %v5447_v29, %v7146_v33  ;;  %v5450_v40 = vadd.f32 %v5449_v32, %v5448_v30  ;;  %v5525_v41 = vpop.f32.mrb[67].mxu1 }
 0x2d9   : > { %v5526_v43 = vadd.f32 %v5525_v41, %v5524_v39 }
 0x2da   : > { %v2131_v16 = vadd.f32 %v5450_v40, %v7148_v38  ;;  %v7200_v44 = vadd.f32 %v5523_v36, %v2128_v14 }
 0x2dc   : > { %v5451_v42 = vpop.f32.mrb[68].mxu0  ;;  %v7202_v49 = vadd.f32 %v5526_v43, %v2131_v16 }
 0x2dd   : > { %v5452_v8 = vpop.f32.mrb[69].mxu0  ;;  %v5527_v10 = vpop.f32.mrb[68].mxu1 }
 0x2de   : > { %v5453_v24 = vadd.f32 %v5452_v8, %v5451_v42  ;;  %v5454_v46 = vpop.f32.mrb[70].mxu0  ;;  %v5528_v47 = vpop.f32.mrb[69].mxu1  ;;  %v7223_v42 = vld [vmem:[%s8239_s3] ss:$0 sm:$0xff] }
 0x2df   : > { %v5455_v48 = vpop.f32.mrb[71].mxu0  ;;  %v5529_v52 = vadd.f32 %v5528_v47, %v5527_v10  ;;  %v5530_v53 = vpop.f32.mrb[70].mxu1 }
 0x2e0   : > { %v2136_v33 = vadd.f32 %v5453_v24, %v7150_v22  ;;  %v5456_v35 = vadd.f32 %v5455_v48, %v5454_v46  ;;  %v5531_v3 = vpop.f32.mrb[71].mxu1 }
 0x2e1   : > { %v5532_v54 = vadd.f32 %v5531_v3, %v5530_v53 }
 0x2e2   : > { %v2139_v38 = vadd.f32 %v5456_v35, %v7152_v37  ;;  %v7206_v55 = vadd.f32 %v5529_v52, %v2136_v33 }
 0x2e4   : > { %v5457_v45 = vpop.f32.mrb[72].mxu0  ;;  %v7208_v5 = vadd.f32 %v5532_v54, %v2139_v38 }
 0x2e5   : > { %v5458_v51 = vpop.f32.mrb[73].mxu0  ;;  %v5533_v0 = vpop.f32.mrb[72].mxu1 }
 0x2e6   : > { %v5459_v1 = vadd.f32 %v5458_v51, %v5457_v45  ;;  %v5460_v2 = vpop.f32.mrb[74].mxu0  ;;  %v5534_v4 = vpop.f32.mrb[73].mxu1 }
 0x2e7   : > { %v5461_v6 = vpop.f32.mrb[75].mxu0  ;;  %v5535_v9 = vadd.f32 %v5534_v4, %v5533_v0  ;;  %v5536_v11 = vpop.f32.mrb[74].mxu1 }
 0x2e8   : > { %v2144_v22 = vadd.f32 %v5459_v1, %v7154_v34  ;;  %v5462_v59 = vadd.f32 %v5461_v6, %v5460_v2  ;;  %v5537_v20 = vpop.f32.mrb[75].mxu1 }
 0x2e9   : > { %v5538_v12 = vadd.f32 %v5537_v20, %v5536_v11 }
 0x2ea   : > { %v2147_v37 = vadd.f32 %v5462_v59, %v7156_v63  ;;  %v7212_v13 = vadd.f32 %v5535_v9, %v2144_v22 }
 0x2ec   : > { %v5463_v62 = vpop.f32.mrb[76].mxu0  ;;  %v7214_v25 = vadd.f32 %v5538_v12, %v2147_v37 }
 0x2ed   : > { %v5464_v27 = vpop.f32.mrb[77].mxu0  ;;  %v5539_v28 = vpop.f32.mrb[76].mxu1 }
 0x2ee   : > { %v5465_v29 = vadd.f32 %v5464_v27, %v5463_v62  ;;  %v5466_v30 = vpop.f32.mrb[78].mxu0  ;;  %v5540_v31 = vpop.f32.mrb[77].mxu1 }
 0x2ef   : > { %v5467_v32 = vpop.f32.mrb[79].mxu0  ;;  %v5541_v36 = vadd.f32 %v5540_v31, %v5539_v28  ;;  %v5542_v39 = vpop.f32.mrb[78].mxu1 }
 0x2f0   : > { %v2152_v34 = vadd.f32 %v5465_v29, %v7158_v18  ;;  %v5468_v14 = vadd.f32 %v5467_v32, %v5466_v30  ;;  %v5543_v40 = vpop.f32.mrb[79].mxu1  ;;  %v7231_v18 = vld [vmem:[%s8240_s4] ss:$0 sm:$0xff] }
 0x2f1   : > { %v5544_v41 = vadd.f32 %v5543_v40, %v5542_v39 }
 0x2f2   : > { %v2155_v63 = vadd.f32 %v5468_v14, %v7160_v23  ;;  %v7218_v43 = vadd.f32 %v5541_v36, %v2152_v34 }
 0x2f4   : > { %v5860_v16 = vpop.f32.mrb[80].mxu0  ;;  %v7225_v8 = vadd.f32 %v5544_v41, %v2155_v63 }
 0x2f5   : > { %v2314_v10 = vadd.f32 %v5860_v16, %v7170_v7  ;;  %v2305_v24 = vpop.f32.mrb[81].mxu0 }
 0x2f6   : > { %v2306_v23 = vadd.f32 %v2305_v24, %v7164_v50  ;;  %v5861_v46 = vpop.f32.mrb[82].mxu0 }
 0x2f7   : > { %v2393_v47 = vmul.f32 %v7223_v42, %v2314_v10  ;;  %v2317_v48 = vadd.f32 %v5861_v46, %v7172_v21  ;;  %v2308_v52 = vpop.f32.mrb[83].mxu0 }
 0x2f8   : > { %v2391_v53 = vmul.f32 %v7223_v42, %v2306_v23  ;;  %v2309_v33 = vadd.f32 %v2308_v52, %v7166_v61 }
 0x2f9   : > { %v2420_v7 = vadd.f32 %v7231_v18, %v2393_v47  ;;  %v2394_v35 = vmul.f32 %v7223_v42, %v2317_v48 }
 0x2fa   : > { %v2418_v3 = vadd.f32 %v7231_v18, %v2391_v53  ;;  %v2392_v54 = vmul.f32 %v7223_v42, %v2309_v33 }
 0x2fb   : > { %v2440_v50 = vmax.f32 %v2420_v7, 0.0  ;;  %v2421_v38 = vadd.f32 %v7231_v18, %v2394_v35 }
 0x2fc   : > { %v2438_v45 = vmax.f32 %v2418_v3, 0.0  ;;  %v2419_v21 = vadd.f32 %v7231_v18, %v2392_v54  ;;  %v5864_v51 = vpop.f32.mrb[84].mxu0 }
 0x2fd   : > { %2461 = vst.msk [vmem:[#allocation3 + $0x19] sm:$0xff] %vm2458_vm2, %v2440_v50  ;;  %v2441_v0 = vmax.f32 %v2421_v38, 0.0  ;;  %v2330_v61 = vadd.f32 %v5864_v51, %v7182_v56  ;;  %v2321_v1 = vpop.f32.mrb[85].mxu0 }
 0x2fe   : > { %2459 = vst.msk [vmem:[#allocation3 + $0x1] sm:$0xff] %vm2458_vm2, %v2438_v45  ;;  %v2439_v2 = vmax.f32 %v2419_v21, 0.0  ;;  %v2322_v4 = vadd.f32 %v2321_v1, %v7176_v17  ;;  %v5865_v6 = vpop.f32.mrb[86].mxu0 }
 0x2ff   : > { %2462 = vst.msk [vmem:[#allocation3 + $0x21] sm:$0xff] %vm2458_vm2, %v2441_v0  ;;  %v2397_v9 = vmul.f32 %v7223_v42, %v2330_v61  ;;  %v2333_v11 = vadd.f32 %v5865_v6, %v7184_v60  ;;  %v2324_v22 = vpop.f32.mrb[87].mxu0 }
 0x300   : > { %2460 = vst.msk [vmem:[#allocation3 + $0x9] sm:$0xff] %vm2458_vm2, %v2439_v2  ;;  %v2395_v59 = vmul.f32 %v7223_v42, %v2322_v4  ;;  %v2325_v56 = vadd.f32 %v2324_v22, %v7178_v26 }
 0x301   : > { %v2424_v20 = vadd.f32 %v7231_v18, %v2397_v9  ;;  %v2398_v12 = vmul.f32 %v7223_v42, %v2333_v11 }
 0x302   : > { %v2422_v17 = vadd.f32 %v7231_v18, %v2395_v59  ;;  %v2396_v37 = vmul.f32 %v7223_v42, %v2325_v56 }
 0x303   : > { %v2444_v62 = vmax.f32 %v2424_v20, 0.0  ;;  %v2425_v27 = vadd.f32 %v7231_v18, %v2398_v12 }
 0x304   : > { %v2442_v28 = vmax.f32 %v2422_v17, 0.0  ;;  %v2423_v60 = vadd.f32 %v7231_v18, %v2396_v37  ;;  %v5868_v29 = vpop.f32.mrb[88].mxu0 }
 0x305   : > { %2465 = vst.msk [vmem:[#allocation3 + $0x49] sm:$0xff] %vm2458_vm2, %v2444_v62  ;;  %v2445_v30 = vmax.f32 %v2425_v27, 0.0  ;;  %v2346_v26 = vadd.f32 %v5868_v29, %v7194_v15  ;;  %v2337_v31 = vpop.f32.mrb[89].mxu0 }
 0x306   : > { %2463 = vst.msk [vmem:[#allocation3 + $0x31] sm:$0xff] %vm2458_vm2, %v2442_v28  ;;  %v2443_v32 = vmax.f32 %v2423_v60, 0.0  ;;  %v2338_v36 = vadd.f32 %v2337_v31, %v7188_v57  ;;  %v5869_v39 = vpop.f32.mrb[90].mxu0 }
 0x307   : > { %2466 = vst.msk [vmem:[#allocation3 + $0x51] sm:$0xff] %vm2458_vm2, %v2445_v30  ;;  %v2401_v34 = vmul.f32 %v7223_v42, %v2346_v26  ;;  %v2349_v14 = vadd.f32 %v5869_v39, %v7196_v19  ;;  %v2340_v40 = vpop.f32.mrb[91].mxu0 }
 0x308   : > { %2464 = vst.msk [vmem:[#allocation3 + $0x39] sm:$0xff] %vm2458_vm2, %v2443_v32  ;;  %v2399_v41 = vmul.f32 %v7223_v42, %v2338_v36  ;;  %v2341_v15 = vadd.f32 %v2340_v40, %v7190_v58 }
 0x309   : > { %v2428_v63 = vadd.f32 %v7231_v18, %v2401_v34  ;;  %v2402_v16 = vmul.f32 %v7223_v42, %v2349_v14 }
 0x30a   : > { %v2426_v57 = vadd.f32 %v7231_v18, %v2399_v41  ;;  %v2400_v10 = vmul.f32 %v7223_v42, %v2341_v15 }
 0x30b   : > { %v2448_v24 = vmax.f32 %v2428_v63, 0.0  ;;  %v2429_v23 = vadd.f32 %v7231_v18, %v2402_v16 }
 0x30c   : > { %v2446_v46 = vmax.f32 %v2426_v57, 0.0  ;;  %v2427_v19 = vadd.f32 %v7231_v18, %v2400_v10  ;;  %v5872_v47 = vpop.f32.mrb[92].mxu0 }
 0x30d   : > { %2469 = vst.msk [vmem:[#allocation3 + $0x79] sm:$0xff] %vm2458_vm2, %v2448_v24  ;;  %v2449_v48 = vmax.f32 %v2429_v23, 0.0  ;;  %v2362_v58 = vadd.f32 %v5872_v47, %v7206_v55  ;;  %v2353_v52 = vpop.f32.mrb[93].mxu0 }
 0x30e   : > { %2467 = vst.msk [vmem:[#allocation3 + $0x61] sm:$0xff] %vm2458_vm2, %v2446_v46  ;;  %v2447_v53 = vmax.f32 %v2427_v19, 0.0  ;;  %v2354_v33 = vadd.f32 %v2353_v52, %v7200_v44  ;;  %v5873_v7 = vpop.f32.mrb[94].mxu0 }
 0x30f   : > { %2470 = vst.msk [vmem:[#allocation3 + $0x81] sm:$0xff] %vm2458_vm2, %v2449_v48  ;;  %v2405_v35 = vmul.f32 %v7223_v42, %v2362_v58  ;;  %v2365_v3 = vadd.f32 %v5873_v7, %v7208_v5  ;;  %v2356_v54 = vpop.f32.mrb[95].mxu0 }
 0x310   : > { %2468 = vst.msk [vmem:[#allocation3 + $0x69] sm:$0xff] %vm2458_vm2, %v2447_v53  ;;  %v2403_v50 = vmul.f32 %v7223_v42, %v2354_v33  ;;  %v2357_v55 = vadd.f32 %v2356_v54, %v7202_v49 }
 0x311   : > { %v2432_v38 = vadd.f32 %v7231_v18, %v2405_v35  ;;  %v2406_v45 = vmul.f32 %v7223_v42, %v2365_v3 }
 0x312   : > { %v2430_v44 = vadd.f32 %v7231_v18, %v2403_v50  ;;  %v2404_v21 = vmul.f32 %v7223_v42, %v2357_v55 }
 0x313   : > { %v2452_v51 = vmax.f32 %v2432_v38, 0.0  ;;  %v2433_v0 = vadd.f32 %v7231_v18, %v2406_v45 }
 0x314   : > { %v2450_v61 = vmax.f32 %v2430_v44, 0.0  ;;  %v2431_v5 = vadd.f32 %v7231_v18, %v2404_v21  ;;  %v5876_v1 = vpop.f32.mrb[96].mxu0 }
 0x315   : > { %2473 = vst.msk [vmem:[#allocation3 + $0xa9] sm:$0xff] %vm2458_vm2, %v2452_v51  ;;  %v2453_v2 = vmax.f32 %v2433_v0, 0.0  ;;  %v2378_v49 = vadd.f32 %v5876_v1, %v7218_v43  ;;  %v2369_v4 = vpop.f32.mrb[97].mxu0 }
 0x316   : > { %2471 = vst.msk [vmem:[#allocation3 + $0x91] sm:$0xff] %vm2458_vm2, %v2450_v61  ;;  %v2451_v6 = vmax.f32 %v2431_v5, 0.0  ;;  %v2370_v9 = vadd.f32 %v2369_v4, %v7212_v13  ;;  %v5877_v11 = vpop.f32.mrb[98].mxu0 }
 0x317   : > { %2474 = vst.msk [vmem:[#allocation3 + $0xb1] sm:$0xff] %vm2458_vm2, %v2453_v2  ;;  %v2409_v22 = vmul.f32 %v7223_v42, %v2378_v49  ;;  %v2381_v59 = vadd.f32 %v5877_v11, %v7225_v8  ;;  %v2372_v56 = vpop.f32.mrb[99].mxu0 }
 0x318   : > { %2472 = vst.msk [vmem:[#allocation3 + $0x99] sm:$0xff] %vm2458_vm2, %v2451_v6  ;;  %v2407_v20 = vmul.f32 %v7223_v42, %v2370_v9  ;;  %v2373_v43 = vadd.f32 %v2372_v56, %v7214_v25 }
 0x319   : > { %v2436_v12 = vadd.f32 %v7231_v18, %v2409_v22  ;;  %v2410_v17 = vmul.f32 %v7223_v42, %v2381_v59 }
 0x31a   : > { %v2434_v13 = vadd.f32 %v7231_v18, %v2407_v20  ;;  %v2408_v37 = vmul.f32 %v7223_v42, %v2373_v43  ;;  %2481 = sbr.rel (%p5020_p13) target bundleno = 801 (0x321), region = 96  ;;  %v6416_v42 = vmov (!%p5020_p13), 0.0  }
 0x31b   : > { %v2456_v62 = vmax.f32 %v2436_v12, 0.0  ;;  %v2437_v27 = vadd.f32 %v7231_v18, %v2410_v17  ;;  %2482 = vst [vmem:[#allocation3] sm:$0xff] (!%p5020_p13), %v6416_v42  ;;  %2483 = vst [vmem:[#allocation3 + $0x8] sm:$0xff] (!%p5020_p13), %v6416_v42 }
 0x31c   : > { %v2454_v28 = vmax.f32 %v2434_v13, 0.0  ;;  %v2435_v8 = vadd.f32 %v7231_v18, %v2408_v37  ;;  %2484 = vst [vmem:[#allocation3 + $0x10] sm:$0x3] (!%p5020_p13), %v6416_v42 }
 0x31d   : > { %2477 = vst.msk [vmem:[#allocation3 + $0xd9] sm:$0xff] %vm2458_vm2, %v2456_v62  ;;  %v2457_v60 = vmax.f32 %v2437_v27, 0.0 }
 0x31e   : > { %2475 = vst.msk [vmem:[#allocation3 + $0xc1] sm:$0xff] %vm2458_vm2, %v2454_v28  ;;  %v2455_v25 = vmax.f32 %v2435_v8, 0.0 }
 0x31f   : > { %2478 = vst.msk [vmem:[#allocation3 + $0xe1] sm:$0xff] %vm2458_vm2, %v2457_v60 }
 0x320   : > { %2476 = vst.msk [vmem:[#allocation3 + $0xc9] sm:$0xff] %vm2458_vm2, %v2455_v25 }
 0x321 PF: > { %2487 = sbr.rel (%p5039_p2) target bundleno = 808 (0x328), region = 100  ;;  %v6417_v18 = vmov (!%p5039_p2), 0.0  }
 0x322   : > { %2489 = vst [vmem:[#allocation3 + $0xd8] sm:$0xff] (!%p5039_p2), %v6417_v18  ;;  %2490 = vst [vmem:[#allocation3 + $0xe0] sm:$0xff] (!%p5039_p2), %v6417_v18 }
 0x323   : > { %2491 = vst [vmem:[#allocation3 + $0xe8] sm:$0x3] (!%p5039_p2), %v6417_v18 }
 0x328 PF: > { %v6087_v29 = vld [vmem:[%s8241_s5 + $0x40] sm:$0xff]   ;;  %v6091_v32 = vld [vmem:[%s8241_s5 + $0x48] sm:$0xff]   ;;  %v6095_v14 = vld [vmem:[%s8241_s5 + $0x50] sm:$0xff]   ;;  %s8275_s28 = sshll.u32 %s6393_s18, 7  ;;  %vm6419_vm3 = vmmov (!%p5039_p2), 0   ;;  %vm4185_vm4 = vcmask (!%p5039_p2), 1041408  }
 0x329   : > { %v6088_v30 = vld [vmem:[%s8241_s5 + $0xc0] sm:$0xff]   ;;  %5563 = vmatprep.subr.bf16.mxu1 %v6087_v29  ;;  %v6092_v36 = vld [vmem:[%s8241_s5 + $0xc8] sm:$0xff]   ;;  %v6096_v40 = vld [vmem:[%s8241_s5 + $0xd0] sm:$0xff]   ;;  %s7735_s21 = scalar_lea.vmem %s6588_s14, %s8275_s28 [#allocation7]  ;;  %vm4181_vm5 = vcmask (!%p5039_p2), 15360  }
 0x32a   : > { %v6089_v26 = vld [vmem:[%s8241_s5] sm:$0xff]   ;;  %5627 = vmatprep.subr.bf16.mxu0 %v6088_v30  ;;  %v6093_v39 = vld [vmem:[%s8241_s5 + $0x8] sm:$0xff]   ;;  %v6097_v41 = vld [vmem:[%s8241_s5 + $0x10] sm:$0xff]  }
 0x32b   : > { %v6090_v31 = vld [vmem:[%s8241_s5 + $0x80] sm:$0xff]   ;;  %5564 = vmatpush3.bf16.msra.mxu1 %v6089_v26  ;;  %v6094_v34 = vld [vmem:[%s8241_s5 + $0x88] sm:$0xff]   ;;  %v6098_v15 = vld [vmem:[%s8241_s5 + $0x90] sm:$0xff]  }
 0x32c   : > { %5628 = vmatpush3.bf16.msra.mxu0 %v6090_v31  ;;  %5565 = vmatprep.subr.bf16.mxu1 %v6091_v32  ;;  %v6099_v63 = vld [vmem:[%s8241_s5 + $0x58] sm:$0xff]   ;;  %v6103_v24 = vld [vmem:[%s8241_s5 + $0x60] sm:$0xff]   ;;  %v6107_v47 = vld [vmem:[%s8241_s5 + $0x68] sm:$0xff]  }
 0x32d   : > { %5629 = vmatprep.subr.bf16.mxu0 %v6092_v36  ;;  %v6100_v16 = vld [vmem:[%s8241_s5 + $0xd8] sm:$0xff]   ;;  %v6104_v23 = vld [vmem:[%s8241_s5 + $0xe0] sm:$0xff]   ;;  %v6108_v48 = vld [vmem:[%s8241_s5 + $0xe8] sm:$0xff]  }
 0x32e   : > { %v6101_v57 = vld [vmem:[%s8241_s5 + $0x18] sm:$0xff]   ;;  %v6105_v46 = vld [vmem:[%s8241_s5 + $0x20] sm:$0xff]   ;;  %v6109_v58 = vld [vmem:[%s8241_s5 + $0x28] sm:$0xff]  }
 0x32f   : > { %5566 = vmatpush3.bf16.msra.mxu1 %v6093_v39  ;;  %v6102_v10 = vld [vmem:[%s8241_s5 + $0x98] sm:$0xff]   ;;  %v6106_v19 = vld [vmem:[%s8241_s5 + $0xa0] sm:$0xff]   ;;  %v6110_v52 = vld [vmem:[%s8241_s5 + $0xa8] sm:$0xff]  }
 0x330   : > { %5630 = vmatpush3.bf16.msra.mxu0 %v6094_v34  ;;  %5567 = vmatprep.subr.bf16.mxu1 %v6095_v14  ;;  %v6111_v53 = vld [vmem:[%s8241_s5 + $0x70] sm:$0xff]   ;;  %v6115_v3 = vld [vmem:[%s8241_s5 + $0x78] sm:$0xff]   ;;  %v2524_v38 = vld [vmem:[#allocation3 + $0x1] sm:$0xff] }
 0x331   : > { %5631 = vmatprep.subr.bf16.mxu0 %v6096_v40  ;;  %v6112_v33 = vld [vmem:[%s8241_s5 + $0xf0] sm:$0xff]   ;;  %v6116_v54 = vld [vmem:[%s8241_s5 + $0xf8] sm:$0xff]   ;;  %v2590_v51 = vld [vmem:[#allocation3 + $0x20] sm:$0xff] }
 0x332   : > { %v6113_v7 = vld [vmem:[%s8241_s5 + $0x30] sm:$0xff]   ;;  %v6117_v50 = vld [vmem:[%s8241_s5 + $0x38] sm:$0xff]   ;;  %v2492_v0 = vld [vmem:[#allocation3] sm:$0xff] }
 0x333   : > { %5568 = vmatpush3.bf16.msra.mxu1 %v6097_v41  ;;  %v6114_v35 = vld [vmem:[%s8241_s5 + $0xb0] sm:$0xff]   ;;  %v6118_v55 = vld [vmem:[%s8241_s5 + $0xb8] sm:$0xff]   ;;  %v2493_v61 = vld [vmem:[#allocation3 + $0x8] sm:$0xff] }
 0x334   : > { %5632 = vmatpush3.bf16.msra.mxu0 %v6098_v15  ;;  %5569 = vmatprep.subr.bf16.mxu1 %v6099_v63  ;;  %v2525_v45 = vld [vmem:[#allocation3 + $0x9] sm:$0xff]  ;;  %v2589_v44 = vld [vmem:[#allocation3 + $0x18] sm:$0xff]  ;;  %v2508_v1 = vpack.c.bf16 %v2493_v61, %v2492_v0  ;;  %v6119_v6 = vld [vmem:[%s8241_s5 + $0x140] sm:$0xff]  }
 0x335   : > { %5633 = vmatprep.subr.bf16.mxu0 %v6100_v16  ;;  %v2540_v21 = vpack.c.bf16 %v2525_v45, %v2524_v38  ;;  %v2605_v5 = vpack.c.bf16 %v2590_v51, %v2589_v44  ;;  %v2556_v2 = vld [vmem:[#allocation3 + $0x2] sm:$0xff]  ;;  %v2557_v49 = vld [vmem:[#allocation3 + $0xa] sm:$0xff]  ;;  %v2526_v11 = vld [vmem:[#allocation3 + $0x19] sm:$0xff] }
 0x336   : > { %v2572_v4 = vpack.c.bf16 %v2557_v49, %v2556_v2  ;;  %v6120_v9 = vld [vmem:[%s8241_s5 + $0x100] sm:$0xff]   ;;  %v2591_v59 = vld [vmem:[#allocation3 + $0x30] sm:$0xff]  ;;  %v2592_v56 = vld [vmem:[#allocation3 + $0x38] sm:$0xff] }
 0x337   : > { %5570 = vmatpush3.bf16.msra.mxu1 %v6101_v57  ;;  %3462 = vmatprep.mubr.bf16.mxu1 %v2540_v21  ;;  %v2527_v22 = vld [vmem:[#allocation3 + $0x21] sm:$0xff]  ;;  %v7420_v43 = vpack.c.bf16 %v2592_v56, %v2591_v59  ;;  %v2528_v62 = vld [vmem:[#allocation3 + $0x31] sm:$0xff]  ;;  %v2529_v28 = vld [vmem:[#allocation3 + $0x39] sm:$0xff] }
 0x338   : > { %5634 = vmatpush3.bf16.msra.mxu0 %v6102_v10  ;;  %5571 = vmatprep.subr.bf16.mxu1 %v6103_v24  ;;  %v7418_v20 = vpack.c.bf16 %v2527_v22, %v2526_v11  ;;  %v2558_v12 = vld [vmem:[#allocation3 + $0x1a] sm:$0xff]  ;;  %v2559_v17 = vld [vmem:[#allocation3 + $0x22] sm:$0xff]  ;;  %v2594_v60 = vld [vmem:[#allocation3 + $0x50] sm:$0xff]  ;;  %v7432_v25 = vpack.c.bf16 %v2529_v28, %v2528_v62 }
 0x339   : > { %5635 = vmatprep.subr.bf16.mxu0 %v6104_v23  ;;  %3559 = vmatprep.mubr.bf16.mxu0 %v2605_v5  ;;  %v6121_v13 = vld [vmem:[%s8241_s5 + $0x148] sm:$0xff]   ;;  %v7430_v27 = vpack.c.bf16 %v2559_v17, %v2558_v12  ;;  %v6123_v18 = vld [vmem:[%s8241_s5 + $0x150] sm:$0xff]   ;;  %v2561_v26 = vld [vmem:[#allocation3 + $0x3a] sm:$0xff] }
 0x33a   : > { %v6122_v37 = vld [vmem:[%s8241_s5 + $0x108] sm:$0xff]   ;;  %v2560_v29 = vld [vmem:[#allocation3 + $0x32] sm:$0xff]  ;;  %v2595_v36 = vld [vmem:[#allocation3 + $0x60] sm:$0xff] }
 0x33b   : > { %5572 = vmatpush3.bf16.msra.mxu1 %v6105_v46  ;;  %v2593_v8 = vld [vmem:[#allocation3 + $0x48] sm:$0xff]  ;;  %v6124_v30 = vld [vmem:[%s8241_s5 + $0x110] sm:$0xff]   ;;  %v6125_v34 = vld [vmem:[%s8241_s5 + $0x158] sm:$0xff]   ;;  %v7451_v40 = vpack.c.bf16 %v2561_v26, %v2560_v29 }
 0x33c   : > { %5636 = vmatpush3.bf16.msra.mxu0 %v6106_v19  ;;  %5573 = vmatprep.subr.bf16.mxu1 %v6107_v47  ;;  %v7434_v42 = vpack.c.bf16 %v2594_v60, %v2593_v8  ;;  %v2530_v31 = vld [vmem:[#allocation3 + $0x49] sm:$0xff]  ;;  %v2531_v32 = vld [vmem:[#allocation3 + $0x51] sm:$0xff]  ;;  %v6127_v15 = vld [vmem:[%s8241_s5 + $0x1c0] sm:$0xff]  }
 0x33d   : > { %5637 = vmatprep.subr.bf16.mxu0 %v6108_v48  ;;  %v2596_v39 = vld [vmem:[#allocation3 + $0x68] sm:$0xff]  ;;  %v6126_v14 = vld [vmem:[%s8241_s5 + $0x118] sm:$0xff]   ;;  %v7453_v41 = vpack.c.bf16 %v2531_v32, %v2530_v31  ;;  %v6128_v16 = vld [vmem:[%s8241_s5 + $0x180] sm:$0xff]  }
 0x33e   : > { %v7458_v63 = vpack.c.bf16 %v2596_v39, %v2595_v36  ;;  %v2562_v57 = vld [vmem:[#allocation3 + $0x4a] sm:$0xff]  ;;  %v2563_v10 = vld [vmem:[#allocation3 + $0x52] sm:$0xff]  ;;  %v2532_v24 = vld [vmem:[#allocation3 + $0x61] sm:$0xff] }
 0x33f   : > { %5574 = vmatpush3.bf16.msra.mxu1 %v6109_v58  ;;  %v2533_v23 = vld [vmem:[#allocation3 + $0x69] sm:$0xff]  ;;  %v2597_v46 = vld [vmem:[#allocation3 + $0x78] sm:$0xff]  ;;  %v2598_v19 = vld [vmem:[#allocation3 + $0x80] sm:$0xff] }
 0x340   : > { %5638 = vmatpush3.bf16.msra.mxu0 %v6110_v52  ;;  %5575 = vmatprep.subr.bf16.mxu1 %v6111_v53  ;;  %v6129_v47 = vld [vmem:[%s8241_s5 + $0x160] sm:$0xff]   ;;  %v6131_v58 = vld [vmem:[%s8241_s5 + $0x1c8] sm:$0xff]   ;;  %v7479_v53 = vpack.c.bf16 %v2563_v10, %v2562_v57  ;;  %v2599_v45 = vld [vmem:[#allocation3 + $0x90] sm:$0xff] }
 0x341   : > { %5639 = vmatprep.subr.bf16.mxu0 %v6112_v33  ;;  %v6130_v48 = vld [vmem:[%s8241_s5 + $0x120] sm:$0xff]   ;;  %v6132_v52 = vld [vmem:[%s8241_s5 + $0x188] sm:$0xff]   ;;  %v7481_v33 = vpack.c.bf16 %v2533_v23, %v2532_v24  ;;  %v6135_v44 = vld [vmem:[%s8241_s5 + $0x1d0] sm:$0xff]  }
 0x342   : > { %v6134_v38 = vld [vmem:[%s8241_s5 + $0x128] sm:$0xff]   ;;  %v6136_v21 = vld [vmem:[%s8241_s5 + $0x190] sm:$0xff]   ;;  %v2600_v51 = vld [vmem:[#allocation3 + $0x98] sm:$0xff] }
 0x343   : > { %5576 = vmatpush3.bf16.msra.mxu1 %v6113_v7  ;;  %v7483_v7 = vpack.c.bf16 %v2598_v19, %v2597_v46  ;;  %v6137_v0 = vld [vmem:[%s8241_s5 + $0x1d8] sm:$0xff]   ;;  %v7511_v2 = vpack.c.bf16 %v2600_v51, %v2599_v45  ;;  %v6139_v49 = vld [vmem:[%s8241_s5 + $0x170] sm:$0xff]   ;;  %v2601_v59 = vld [vmem:[#allocation3 + $0xa8] sm:$0xff] }
 0x344   : > { %5640 = vmatpush3.bf16.msra.mxu0 %v6114_v35  ;;  %5577 = vmatprep.subr.bf16.mxu1 %v6115_v3  ;;  %v6133_v35 = vld [vmem:[%s8241_s5 + $0x168] sm:$0xff]   ;;  %v2537_v11 = vld [vmem:[#allocation3 + $0x99] sm:$0xff]  ;;  %v6140_v22 = vld [vmem:[%s8241_s5 + $0x130] sm:$0xff]  }
 0x345   : > { %5641 = vmatprep.subr.bf16.mxu0 %v6116_v54  ;;  %v2564_v3 = vld [vmem:[#allocation3 + $0x62] sm:$0xff]  ;;  %v2565_v54 = vld [vmem:[#allocation3 + $0x6a] sm:$0xff]  ;;  %v6145_v60 = vld [vmem:[%s8241_s5 + $0x178] sm:$0xff]  }
 0x346   : > { %v7504_v61 = vpack.c.bf16 %v2565_v54, %v2564_v3  ;;  %v6141_v56 = vld [vmem:[%s8241_s5 + $0x1e0] sm:$0xff]   ;;  %v2602_v17 = vld [vmem:[#allocation3 + $0xb0] sm:$0xff]  ;;  %v6144_v28 = vld [vmem:[%s8241_s5 + $0x1a8] sm:$0xff]  }
 0x347   : > { %5578 = vmatpush3.bf16.msra.mxu1 %v6117_v50  ;;  %v2534_v50 = vld [vmem:[#allocation3 + $0x79] sm:$0xff]  ;;  %v7539_v8 = vpack.c.bf16 %v2602_v17, %v2601_v59  ;;  %v2539_v26 = vld [vmem:[#allocation3 + $0xb1] sm:$0xff]  ;;  %v2604_v36 = vld [vmem:[#allocation3 + $0xc8] sm:$0xff] }
 0x348   : > { %5642 = vmatpush3.bf16.msra.mxu0 %v6118_v55  ;;  %5691 = vmatprep.subr.bf16.mxu1 %v6119_v6  ;;  %v2535_v55 = vld [vmem:[#allocation3 + $0x81] sm:$0xff]  ;;  %v6146_v31 = vld [vmem:[%s8241_s5 + $0x138] sm:$0xff]   ;;  %v6147_v39 = vld [vmem:[%s8241_s5 + $0x1f0] sm:$0xff]  }
 0x349   : > { %5755 = vmatprep.subr.bf16.mxu0 %v6127_v15  ;;  %v2567_v6 = vld [vmem:[#allocation3 + $0x82] sm:$0xff]  ;;  %v2569_v29 = vld [vmem:[#allocation3 + $0x9a] sm:$0xff]  ;;  %v2570_v23 = vld [vmem:[#allocation3 + $0xaa] sm:$0xff] }
 0x34a   : > { %3463 = vmatmul.mubr.bf16.vlgmr.msra.gmra.mrb[80].mxu1 %v2508_v1  ;;  %v6138_v1 = vld [vmem:[%s8241_s5 + $0x198] sm:$0xff]   ;;  %v6142_v12 = vld [vmem:[%s8241_s5 + $0x1a0] sm:$0xff]  }
 0x34b   : > { %3560 = vmatmul.mubr.bf16.vlgmr.msra.gmra.mrb[100].mxu0 %v2572_v4  ;;  %5692 = vmatpush3.bf16.msra.mxu1 %v6120_v9  ;;  %v2566_v4 = vld [vmem:[#allocation3 + $0x7a] sm:$0xff]  ;;  %v2536_v9 = vld [vmem:[#allocation3 + $0x91] sm:$0xff] }
 0x34c   : > { %3470 = vmatprep.mubr.bf16.mxu1 %v7418_v20  ;;  %3567 = vmatprep.mubr.bf16.mxu0 %v7420_v43  ;;  %v7534_v62 = vpack.c.bf16 %v2537_v11, %v2536_v9  ;;  %v2603_v32 = vld [vmem:[#allocation3 + $0xc0] sm:$0xff]  ;;  %v6150_v15 = vld [vmem:[%s8241_s5 + $0x1b8] sm:$0xff]  }
 0x34d   : > { %5693 = vmatprep.subr.bf16.mxu1 %v6121_v13  ;;  %5756 = vmatpush3.bf16.msra.mxu0 %v6128_v16  ;;  %v6143_v13 = vld [vmem:[%s8241_s5 + $0x1e8] sm:$0xff]   ;;  %v6151_v10 = vld [vmem:[%s8241_s5 + $0x200] sm:$0xff]   ;;  %v7570_v24 = vpack.c.bf16 %v2604_v36, %v2603_v32  ;;  %v2571_v46 = vld [vmem:[#allocation3 + $0xb2] sm:$0xff] }
 0x34e   : > { %5757 = vmatprep.subr.bf16.mxu0 %v6131_v58  ;;  %v7576_v19 = vpack.c.bf16 %v2571_v46, %v2570_v23  ;;  %v2764_v45 = vld [vmem:[#allocation3 + $0xda] sm:$0xff] }
 0x34f   : > { %5694 = vmatpush3.bf16.msra.mxu1 %v6122_v37  ;;  %v7532_v37 = vpack.c.bf16 %v2567_v6, %v2566_v4 }
 0x350   : > { %5695 = vmatprep.subr.bf16.mxu1 %v6123_v18  ;;  %v2568_v18 = vld [vmem:[#allocation3 + $0x92] sm:$0xff] }
 0x351   : > { %5758 = vmatpush3.bf16.msra.mxu0 %v6132_v52  ;;  %v7563_v16 = vpack.c.bf16 %v2569_v29, %v2568_v18  ;;  %v2667_v52 = vld [vmem:[#allocation3 + $0xc2] sm:$0xff] }
 0x352   : > { %3471 = vmatmul.mubr.bf16.gmra.mrb[84].mxu1 %v2605_v5  ;;  %5759 = vmatprep.subr.bf16.mxu0 %v6135_v44  ;;  %v7506_v5 = vpack.c.bf16 %v2535_v55, %v2534_v50  ;;  %v2700_v50 = vld [vmem:[#allocation3 + $0xd8] sm:$0xff]  ;;  %v2701_v55 = vld [vmem:[#allocation3 + $0xe0] sm:$0xff] }
 0x353   : > { %3568 = vmatmul.mubr.bf16.gmra.mrb[104].mxu0 %v7430_v27  ;;  %3478 = vmatprep.mubr.bf16.mxu1 %v7432_v25  ;;  %v2765_v44 = vld [vmem:[#allocation3 + $0xe2] sm:$0xff] }
 0x354   : > { %3575 = vmatprep.mubr.bf16.mxu0 %v7434_v42  ;;  %5696 = vmatpush3.bf16.msra.mxu1 %v6124_v30  ;;  %v2538_v30 = vld [vmem:[#allocation3 + $0xa9] sm:$0xff] }
 0x355   : > { %5697 = vmatprep.subr.bf16.mxu1 %v6125_v34  ;;  %5760 = vmatpush3.bf16.msra.mxu0 %v6136_v21  ;;  %v6148_v34 = vld [vmem:[%s8241_s5 + $0x1b0] sm:$0xff]   ;;  %v7565_v57 = vpack.c.bf16 %v2539_v26, %v2538_v30  ;;  %v2773_v21 = vpack.c.bf16 %v2765_v44, %v2764_v45 }
 0x356   : > { %5761 = vmatprep.subr.bf16.mxu0 %v6137_v0 }
 0x358   : > { %5698 = vmatpush3.bf16.msra.mxu1 %v6126_v14  ;;  %v6149_v14 = vld [vmem:[%s8241_s5 + $0x1f8] sm:$0xff]  }
 0x359   : > { %5699 = vmatprep.subr.bf16.mxu1 %v6129_v47  ;;  %5762 = vmatpush3.bf16.msra.mxu0 %v6138_v1  ;;  %v6152_v47 = vld [vmem:[%s8241_s5 + $0x208] sm:$0xff]  }
 0x35a   : > { %3479 = vmatmul.mubr.bf16.gmra.mrb[88].mxu1 %v7420_v43  ;;  %5763 = vmatprep.subr.bf16.mxu0 %v6141_v56 }
 0x35b   : > { %3576 = vmatmul.mubr.bf16.gmra.mrb[108].mxu0 %v7451_v40  ;;  %3486 = vmatprep.mubr.bf16.mxu1 %v7453_v41 }
 0x35c   : > { %3583 = vmatprep.mubr.bf16.mxu0 %v7458_v63  ;;  %5700 = vmatpush3.bf16.msra.mxu1 %v6130_v48  ;;  %v6153_v48 = vld [vmem:[%s8241_s5 + $0x210] sm:$0xff]  }
 0x35d   : > { %5701 = vmatprep.subr.bf16.mxu1 %v6133_v35  ;;  %5764 = vmatpush3.bf16.msra.mxu0 %v6142_v12  ;;  %v2733_v35 = vld [vmem:[#allocation3 + $0xe1] sm:$0xff] }
 0x35e   : > { %5765 = vmatprep.subr.bf16.mxu0 %v6143_v13 }
 0x360   : > { %5702 = vmatpush3.bf16.msra.mxu1 %v6134_v38  ;;  %v2709_v38 = vpack.c.bf16 %v2701_v55, %v2700_v50 }
 0x361   : > { %5703 = vmatprep.subr.bf16.mxu1 %v6139_v49  ;;  %5766 = vmatpush3.bf16.msra.mxu0 %v6144_v28 }
 0x362   : > { %3487 = vmatmul.mubr.bf16.gmra.mrb[92].mxu1 %v7434_v42  ;;  %5767 = vmatprep.subr.bf16.mxu0 %v6147_v39 }
 0x363   : > { %3584 = vmatmul.mubr.bf16.gmra.mrb[112].mxu0 %v7479_v53  ;;  %3494 = vmatprep.mubr.bf16.mxu1 %v7481_v33 }
 0x364   : > { %3591 = vmatprep.mubr.bf16.mxu0 %v7483_v7  ;;  %5704 = vmatpush3.bf16.msra.mxu1 %v6140_v22 }
 0x365   : > { %5705 = vmatprep.subr.bf16.mxu1 %v6145_v60  ;;  %5768 = vmatpush3.bf16.msra.mxu0 %v6148_v34 }
 0x366   : > { %5769 = vmatprep.subr.bf16.mxu0 %v6149_v14 }
 0x368   : > { %5706 = vmatpush3.bf16.msra.mxu1 %v6146_v31 }
 0x369   : > { %5878 = vmatprep.subr.bf16.mxu1 %v6151_v10  ;;  %5770 = vmatpush3.bf16.msra.mxu0 %v6150_v15 }
 0x36a   : > { %3495 = vmatmul.mubr.bf16.gmra.mrb[96].mxu1 %v7458_v63 }
 0x36b   : > { %3592 = vmatmul.mubr.bf16.gmra.mrb[116].mxu0 %v7504_v61  ;;  %3502 = vmatprep.mubr.bf16.mxu1 %v7506_v5 }
 0x36c   : > { %3599 = vmatprep.mubr.bf16.mxu0 %v7511_v2 }
 0x372   : > { %3503 = vmatmul.mubr.bf16.gmra.mrb[100].mxu1 %v7483_v7 }
 0x373   : > { %3600 = vmatmul.mubr.bf16.gmra.mrb[120].mxu0 %v7532_v37  ;;  %3510 = vmatprep.mubr.bf16.mxu1 %v7534_v62 }
 0x374   : > { %3607 = vmatprep.mubr.bf16.mxu0 %v7539_v8 }
 0x37a   : > { %3511 = vmatmul.mubr.bf16.gmra.mrb[104].mxu1 %v7511_v2 }
 0x37b   : > { %3608 = vmatmul.mubr.bf16.gmra.mrb[124].mxu0 %v7563_v16  ;;  %3518 = vmatprep.mubr.bf16.mxu1 %v7565_v57 }
 0x37c   : > { %3615 = vmatprep.mubr.bf16.mxu0 %v7570_v24 }
 0x382   : > { %3519 = vmatmul.mubr.bf16.gmra.mrb[108].mxu1 %v7539_v8 }
 0x383   : > { %3616 = vmatmul.mubr.bf16.gmra.mrb[128].mxu0 %v7576_v19  ;;  %3656 = vmatprep.mubr.bf16.mxu1 %v7430_v27  ;;  %v6154_v27 = vld [vmem:[%s8241_s5 + $0x218] sm:$0xff]  }
 0x384   : > { %3753 = vmatprep.mubr.bf16.mxu0 %v7432_v25 }
 0x38a   : > { %3657 = vmatmul.mubr.bf16.vlgmr.msra.gmra.mrb[112].mxu1 %v7418_v20  ;;  %v6155_v20 = vld [vmem:[%s8241_s5 + $0x220] sm:$0xff]  }
 0x38b   : > { %5879 = vmatpush3.bf16.msra.mxu1 %v6151_v10  ;;  %3754 = vmatmul.mubr.bf16.vlgmr.msra.gmra.mrb[132].mxu0 %v7420_v43  ;;  %v6156_v43 = vld [vmem:[%s8241_s5 + $0x228] sm:$0xff]  }
 0x38c   : > { %3664 = vmatprep.mubr.bf16.mxu1 %v7451_v40  ;;  %5880 = vmatprep.subr.bf16.mxu1 %v6152_v47 }
 0x38d   : > { %3761 = vmatprep.mubr.bf16.mxu0 %v7453_v41 }
 0x38f   : > { %5881 = vmatpush3.bf16.msra.mxu1 %v6152_v47 }
 0x390   : > { %5882 = vmatprep.subr.bf16.mxu1 %v6153_v48 }
 0x392   : > { %3665 = vmatmul.mubr.bf16.gmra.mrb[116].mxu1 %v7432_v25  ;;  %v6157_v25 = vld [vmem:[%s8241_s5 + $0x230] sm:$0xff]  }
 0x393   : > { %3762 = vmatmul.mubr.bf16.gmra.mrb[136].mxu0 %v7434_v42  ;;  %3672 = vmatprep.mubr.bf16.mxu1 %v7479_v53  ;;  %v6158_v42 = vld [vmem:[%s8241_s5 + $0x238] sm:$0xff]  }
 0x394   : > { %3769 = vmatprep.mubr.bf16.mxu0 %v7481_v33  ;;  %5883 = vmatpush3.bf16.msra.mxu1 %v6153_v48 }
 0x395   : > { %5884 = vmatprep.subr.bf16.mxu1 %v6154_v27 }
 0x398   : > { %5885 = vmatpush3.bf16.msra.mxu1 %v6154_v27 }
 0x399   : > { %5886 = vmatprep.subr.bf16.mxu1 %v6155_v20 }
 0x39a   : > { %3673 = vmatmul.mubr.bf16.gmra.mrb[120].mxu1 %v7453_v41  ;;  %v2730_v41 = vld [vmem:[#allocation3 + $0xc1] sm:$0xff] }
 0x39b   : > { %3770 = vmatmul.mubr.bf16.gmra.mrb[140].mxu0 %v7458_v63  ;;  %3680 = vmatprep.mubr.bf16.mxu1 %v7504_v61  ;;  %v2731_v63 = vld [vmem:[#allocation3 + $0xc9] sm:$0xff] }
 0x39c   : > { %3777 = vmatprep.mubr.bf16.mxu0 %v7506_v5  ;;  %5887 = vmatpush3.bf16.msra.mxu1 %v6155_v20  ;;  %v2740_v58 = vpack.c.bf16 %v2731_v63, %v2730_v41 }
 0x39d   : > { %5888 = vmatprep.subr.bf16.mxu1 %v6156_v43 }
 0x3a0   : > { %5889 = vmatpush3.bf16.msra.mxu1 %v6156_v43 }
 0x3a1   : > { %5890 = vmatprep.subr.bf16.mxu1 %v6157_v25 }
 0x3a2   : > { %3681 = vmatmul.mubr.bf16.gmra.mrb[124].mxu1 %v7481_v33  ;;  %v2668_v33 = vld [vmem:[#allocation3 + $0xca] sm:$0xff] }
 0x3a3   : > { %3778 = vmatmul.mubr.bf16.gmra.mrb[144].mxu0 %v7483_v7  ;;  %3688 = vmatprep.mubr.bf16.mxu1 %v7532_v37  ;;  %v2732_v7 = vld [vmem:[#allocation3 + $0xd9] sm:$0xff]  ;;  %v2676_v3 = vpack.c.bf16 %v2668_v33, %v2667_v52 }
 0x3a4   : > { %3785 = vmatprep.mubr.bf16.mxu0 %v7534_v62  ;;  %5891 = vmatpush3.bf16.msra.mxu1 %v6157_v25  ;;  %v2741_v54 = vpack.c.bf16 %v2733_v35, %v2732_v7 }
 0x3a5   : > { %5892 = vmatprep.subr.bf16.mxu1 %v6158_v42 }
 0x3a8   : > { %5893 = vmatpush3.bf16.msra.mxu1 %v6158_v42 }
 0x3aa   : > { %3689 = vmatmul.mubr.bf16.gmra.mrb[128].mxu1 %v7506_v5 }
 0x3ab   : > { %3786 = vmatmul.mubr.bf16.gmra.mrb[148].mxu0 %v7511_v2  ;;  %3696 = vmatprep.mubr.bf16.mxu1 %v7563_v16 }
 0x3ac   : > { %3793 = vmatprep.mubr.bf16.mxu0 %v7565_v57 }
 0x3b2   : > { %3697 = vmatmul.mubr.bf16.gmra.mrb[132].mxu1 %v7534_v62 }
 0x3b3   : > { %3794 = vmatmul.mubr.bf16.gmra.mrb[152].mxu0 %v7539_v8  ;;  %3704 = vmatprep.mubr.bf16.mxu1 %v7576_v19 }
 0x3b4   : > { %3801 = vmatprep.mubr.bf16.mxu0 %v2740_v58 }
 0x3ba   : > { %3705 = vmatmul.mubr.bf16.gmra.mrb[136].mxu1 %v7565_v57 }
 0x3bb   : > { %3802 = vmatmul.mubr.bf16.gmra.mrb[156].mxu0 %v7570_v24  ;;  %3712 = vmatprep.mubr.bf16.mxu1 %v2676_v3 }
 0x3bc   : > { %3809 = vmatprep.mubr.bf16.mxu0 %v2741_v54 }
 0x3c2   : > { %3713 = vmatmul.mubr.bf16.gmra.mrb[140].mxu1 %v2740_v58 }
 0x3c3   : > { %3810 = vmatmul.mubr.bf16.gmra.mrb[160].mxu0 %v2709_v38  ;;  %5894 = vmatprep.mubr.bf16.mxu1 %v7451_v40 }
 0x3ca   : > { %5895 = vmatmul.mubr.bf16.vlgmr.msra.gmra.mrb[144].mxu1 %v7479_v53 }
 0x3cb   : > { %5898 = vmatprep.mubr.bf16.mxu1 %v7504_v61 }
 0x3d2   : > { %5899 = vmatmul.mubr.bf16.gmra.mrb[148].mxu1 %v7532_v37 }
 0x3d3   : > { %5902 = vmatprep.mubr.bf16.mxu1 %v7563_v16 }
 0x3da   : > { %5903 = vmatmul.mubr.bf16.gmra.mrb[152].mxu1 %v7576_v19 }
 0x3db   : > { %5906 = vmatprep.mubr.bf16.mxu1 %v2676_v3 }
 0x3e2   : > { %5907 = vmatmul.mubr.bf16.gmra.mrb[156].mxu1 %v2773_v21 }
 0x41d   : > { %v5579_v51 = vpop.f32.mrb[80].mxu1 }
 0x41e   : > { %v5643_v0 = vpop.f32.mrb[100].mxu0  ;;  %v5580_v5 = vpop.f32.mrb[81].mxu1 }
 0x41f   : > { %v5581_v1 = vadd.f32 %v5580_v5, %v5579_v51  ;;  %v5644_v40 = vpop.f32.mrb[101].mxu0  ;;  %v5582_v2 = vpop.f32.mrb[82].mxu1 }
 0x420   : > { %v5645_v53 = vadd.f32 %v5644_v40, %v5643_v0  ;;  %v5646_v49 = vpop.f32.mrb[102].mxu0  ;;  %v5583_v61 = vpop.f32.mrb[83].mxu1 }
 0x421   : > { %v5584_v4 = vadd.f32 %v5583_v61, %v5582_v2  ;;  %v5647_v6 = vpop.f32.mrb[103].mxu0 }
 0x422   : > { %v7634_v9 = vadd.f32 %v5645_v53, %v5581_v1  ;;  %v5648_v11 = vadd.f32 %v5647_v6, %v5646_v49 }
 0x424   : > { %v7636_v22 = vadd.f32 %v5648_v11, %v5584_v4 }
 0x425   : > { %v5585_v59 = vpop.f32.mrb[84].mxu1 }
 0x426   : > { %v5649_v56 = vpop.f32.mrb[104].mxu0  ;;  %v5586_v12 = vpop.f32.mrb[85].mxu1 }
 0x427   : > { %v5587_v17 = vadd.f32 %v5586_v12, %v5585_v59  ;;  %v5650_v13 = vpop.f32.mrb[105].mxu0  ;;  %v5588_v37 = vpop.f32.mrb[86].mxu1 }
 0x428   : > { %v5651_v62 = vadd.f32 %v5650_v13, %v5649_v56  ;;  %v5652_v28 = vpop.f32.mrb[106].mxu0  ;;  %v5589_v8 = vpop.f32.mrb[87].mxu1 }
 0x429   : > { %v5590_v60 = vadd.f32 %v5589_v8, %v5588_v37  ;;  %v5653_v18 = vpop.f32.mrb[107].mxu0 }
 0x42a   : > { %v7638_v29 = vadd.f32 %v5651_v62, %v5587_v17  ;;  %v5654_v30 = vadd.f32 %v5653_v18, %v5652_v28 }
 0x42c   : > { %v7640_v26 = vadd.f32 %v5654_v30, %v5590_v60 }
 0x42d   : > { %v5591_v31 = vpop.f32.mrb[88].mxu1 }
 0x42e   : > { %v5655_v32 = vpop.f32.mrb[108].mxu0  ;;  %v5592_v36 = vpop.f32.mrb[89].mxu1 }
 0x42f   : > { %v5593_v39 = vadd.f32 %v5592_v36, %v5591_v31  ;;  %v5656_v34 = vpop.f32.mrb[109].mxu0  ;;  %v5594_v14 = vpop.f32.mrb[90].mxu1 }
 0x430   : > { %v5657_v15 = vadd.f32 %v5656_v34, %v5655_v32  ;;  %v5658_v16 = vpop.f32.mrb[110].mxu0  ;;  %v5595_v57 = vpop.f32.mrb[91].mxu1 }
 0x431   : > { %v5596_v10 = vadd.f32 %v5595_v57, %v5594_v14  ;;  %v5659_v24 = vpop.f32.mrb[111].mxu0 }
 0x432   : > { %v7642_v23 = vadd.f32 %v5657_v15, %v5593_v39  ;;  %v5660_v46 = vadd.f32 %v5659_v24, %v5658_v16 }
 0x434   : > { %v7644_v19 = vadd.f32 %v5660_v46, %v5596_v10 }
 0x435   : > { %v5597_v47 = vpop.f32.mrb[92].mxu1 }
 0x436   : > { %v5661_v48 = vpop.f32.mrb[112].mxu0  ;;  %v5598_v27 = vpop.f32.mrb[93].mxu1 }
 0x437   : > { %v5599_v20 = vadd.f32 %v5598_v27, %v5597_v47  ;;  %v5662_v43 = vpop.f32.mrb[113].mxu0  ;;  %v5600_v25 = vpop.f32.mrb[94].mxu1 }
 0x438   : > { %v5663_v42 = vadd.f32 %v5662_v43, %v5661_v48  ;;  %v5664_v41 = vpop.f32.mrb[114].mxu0  ;;  %v5601_v63 = vpop.f32.mrb[95].mxu1 }
 0x439   : > { %v5602_v58 = vadd.f32 %v5601_v63, %v5600_v25  ;;  %v5665_v52 = vpop.f32.mrb[115].mxu0 }
 0x43a   : > { %v7646_v33 = vadd.f32 %v5663_v42, %v5599_v20  ;;  %v5666_v7 = vadd.f32 %v5665_v52, %v5664_v41 }
 0x43c   : > { %v7648_v35 = vadd.f32 %v5666_v7, %v5602_v58 }
 0x43d   : > { %v5603_v3 = vpop.f32.mrb[96].mxu1 }
 0x43e   : > { %v5667_v54 = vpop.f32.mrb[116].mxu0  ;;  %v5604_v50 = vpop.f32.mrb[97].mxu1 }
 0x43f   : > { %v5605_v55 = vadd.f32 %v5604_v50, %v5603_v3  ;;  %v5668_v38 = vpop.f32.mrb[117].mxu0  ;;  %v5606_v45 = vpop.f32.mrb[98].mxu1 }
 0x440   : > { %v5669_v44 = vadd.f32 %v5668_v38, %v5667_v54  ;;  %v5670_v21 = vpop.f32.mrb[118].mxu0  ;;  %v5607_v51 = vpop.f32.mrb[99].mxu1 }
 0x441   : > { %v5608_v0 = vadd.f32 %v5607_v51, %v5606_v45  ;;  %v5671_v5 = vpop.f32.mrb[119].mxu0 }
 0x442   : > { %v7650_v1 = vadd.f32 %v5669_v44, %v5605_v55  ;;  %v5672_v40 = vadd.f32 %v5671_v5, %v5670_v21 }
 0x444   : > { %v7652_v2 = vadd.f32 %v5672_v40, %v5608_v0 }
 0x445   : > { %v5609_v53 = vpop.f32.mrb[100].mxu1 }
 0x446   : > { %v5673_v49 = vpop.f32.mrb[120].mxu0  ;;  %v5610_v61 = vpop.f32.mrb[101].mxu1 }
 0x447   : > { %v5611_v4 = vadd.f32 %v5610_v61, %v5609_v53  ;;  %v5674_v6 = vpop.f32.mrb[121].mxu0  ;;  %v5612_v11 = vpop.f32.mrb[102].mxu1 }
 0x448   : > { %v5675_v59 = vadd.f32 %v5674_v6, %v5673_v49  ;;  %v5676_v56 = vpop.f32.mrb[122].mxu0  ;;  %v5613_v12 = vpop.f32.mrb[103].mxu1 }
 0x449   : > { %v5614_v17 = vadd.f32 %v5613_v12, %v5612_v11  ;;  %v5677_v13 = vpop.f32.mrb[123].mxu0 }
 0x44a   : > { %v7654_v37 = vadd.f32 %v5675_v59, %v5611_v4  ;;  %v5678_v62 = vadd.f32 %v5677_v13, %v5676_v56 }
 0x44c   : > { %v7656_v28 = vadd.f32 %v5678_v62, %v5614_v17 }
 0x44d   : > { %v5615_v8 = vpop.f32.mrb[104].mxu1 }
 0x44e   : > { %v5679_v60 = vpop.f32.mrb[124].mxu0  ;;  %v5616_v18 = vpop.f32.mrb[105].mxu1 }
 0x44f   : > { %v5617_v30 = vadd.f32 %v5616_v18, %v5615_v8  ;;  %v5680_v31 = vpop.f32.mrb[125].mxu0  ;;  %v5618_v32 = vpop.f32.mrb[106].mxu1 }
 0x450   : > { %v5681_v36 = vadd.f32 %v5680_v31, %v5679_v60  ;;  %v5682_v39 = vpop.f32.mrb[126].mxu0  ;;  %v5619_v34 = vpop.f32.mrb[107].mxu1 }
 0x451   : > { %v5620_v14 = vadd.f32 %v5619_v34, %v5618_v32  ;;  %v5683_v15 = vpop.f32.mrb[127].mxu0 }
 0x452   : > { %v7658_v16 = vadd.f32 %v5681_v36, %v5617_v30  ;;  %v5684_v57 = vadd.f32 %v5683_v15, %v5682_v39 }
 0x454   : > { %v7660_v10 = vadd.f32 %v5684_v57, %v5620_v14 }
 0x455   : > { %v5621_v24 = vpop.f32.mrb[108].mxu1 }
 0x456   : > { %v5685_v46 = vpop.f32.mrb[128].mxu0  ;;  %v5622_v47 = vpop.f32.mrb[109].mxu1 }
 0x457   : > { %v5623_v48 = vadd.f32 %v5622_v47, %v5621_v24  ;;  %v5686_v27 = vpop.f32.mrb[129].mxu0  ;;  %v5624_v20 = vpop.f32.mrb[110].mxu1 }
 0x458   : > { %v5687_v43 = vadd.f32 %v5686_v27, %v5685_v46  ;;  %v5688_v25 = vpop.f32.mrb[130].mxu0  ;;  %v5625_v42 = vpop.f32.mrb[111].mxu1 }
 0x459   : > { %v5626_v41 = vadd.f32 %v5625_v42, %v5624_v20  ;;  %v5689_v63 = vpop.f32.mrb[131].mxu0 }
 0x45a   : > { %v7662_v58 = vadd.f32 %v5687_v43, %v5623_v48  ;;  %v5690_v52 = vadd.f32 %v5689_v63, %v5688_v25 }
 0x45c   : > { %v7664_v7 = vadd.f32 %v5690_v52, %v5626_v41 }
 0x45d   : > { %v5707_v3 = vpop.f32.mrb[112].mxu1 }
 0x45e   : > { %v5708_v54 = vpop.f32.mrb[113].mxu1  ;;  %v5771_v50 = vpop.f32.mrb[132].mxu0 }
 0x45f   : > { %v5709_v55 = vadd.f32 %v5708_v54, %v5707_v3  ;;  %v5710_v38 = vpop.f32.mrb[114].mxu1  ;;  %v5772_v45 = vpop.f32.mrb[133].mxu0 }
 0x460   : > { %v5711_v44 = vpop.f32.mrb[115].mxu1  ;;  %v5773_v21 = vadd.f32 %v5772_v45, %v5771_v50  ;;  %v5774_v51 = vpop.f32.mrb[134].mxu0 }
 0x461   : > { %v3659_v0 = vadd.f32 %v5709_v55, %v7634_v9  ;;  %v5712_v5 = vadd.f32 %v5711_v44, %v5710_v38  ;;  %v5775_v40 = vpop.f32.mrb[135].mxu0 }
 0x462   : > { %v5776_v53 = vadd.f32 %v5775_v40, %v5774_v51 }
 0x463   : > { %v3662_v49 = vadd.f32 %v5712_v5, %v7636_v22  ;;  %v7668_v61 = vadd.f32 %v5773_v21, %v3659_v0 }
 0x465   : > { %v5713_v4 = vpop.f32.mrb[116].mxu1  ;;  %v7670_v6 = vadd.f32 %v5776_v53, %v3662_v49 }
 0x466   : > { %v5714_v11 = vpop.f32.mrb[117].mxu1  ;;  %v5777_v59 = vpop.f32.mrb[136].mxu0 }
 0x467   : > { %v5715_v56 = vadd.f32 %v5714_v11, %v5713_v4  ;;  %v5716_v12 = vpop.f32.mrb[118].mxu1  ;;  %v5778_v17 = vpop.f32.mrb[137].mxu0 }
 0x468   : > { %v5717_v13 = vpop.f32.mrb[119].mxu1  ;;  %v5779_v62 = vadd.f32 %v5778_v17, %v5777_v59  ;;  %v5780_v8 = vpop.f32.mrb[138].mxu0 }
 0x469   : > { %v3667_v9 = vadd.f32 %v5715_v56, %v7638_v29  ;;  %v5718_v60 = vadd.f32 %v5717_v13, %v5716_v12  ;;  %v5781_v18 = vpop.f32.mrb[139].mxu0 }
 0x46a   : > { %v5782_v30 = vadd.f32 %v5781_v18, %v5780_v8 }
 0x46b   : > { %v3670_v22 = vadd.f32 %v5718_v60, %v7640_v26  ;;  %v7674_v31 = vadd.f32 %v5779_v62, %v3667_v9 }
 0x46d   : > { %v5719_v32 = vpop.f32.mrb[120].mxu1  ;;  %v7676_v36 = vadd.f32 %v5782_v30, %v3670_v22 }
 0x46e   : > { %v5720_v39 = vpop.f32.mrb[121].mxu1  ;;  %v5783_v34 = vpop.f32.mrb[140].mxu0 }
 0x46f   : > { %v5721_v14 = vadd.f32 %v5720_v39, %v5719_v32  ;;  %v5722_v15 = vpop.f32.mrb[122].mxu1  ;;  %v5784_v57 = vpop.f32.mrb[141].mxu0 }
 0x470   : > { %v5723_v24 = vpop.f32.mrb[123].mxu1  ;;  %v5785_v46 = vadd.f32 %v5784_v57, %v5783_v34  ;;  %v5786_v47 = vpop.f32.mrb[142].mxu0 }
 0x471   : > { %v3675_v29 = vadd.f32 %v5721_v14, %v7642_v23  ;;  %v5724_v48 = vadd.f32 %v5723_v24, %v5722_v15  ;;  %v5787_v27 = vpop.f32.mrb[143].mxu0 }
 0x472   : > { %v5788_v20 = vadd.f32 %v5787_v27, %v5786_v47 }
 0x473   : > { %v3678_v26 = vadd.f32 %v5724_v48, %v7644_v19  ;;  %v7680_v43 = vadd.f32 %v5785_v46, %v3675_v29 }
 0x475   : > { %v5725_v25 = vpop.f32.mrb[124].mxu1  ;;  %v7682_v42 = vadd.f32 %v5788_v20, %v3678_v26 }
 0x476   : > { %v5726_v41 = vpop.f32.mrb[125].mxu1  ;;  %v5789_v63 = vpop.f32.mrb[144].mxu0 }
 0x477   : > { %v5727_v52 = vadd.f32 %v5726_v41, %v5725_v25  ;;  %v5728_v3 = vpop.f32.mrb[126].mxu1  ;;  %v5790_v54 = vpop.f32.mrb[145].mxu0 }
 0x478   : > { %v5729_v50 = vpop.f32.mrb[127].mxu1  ;;  %v5791_v55 = vadd.f32 %v5790_v54, %v5789_v63  ;;  %v5792_v38 = vpop.f32.mrb[146].mxu0 }
 0x479   : > { %v3683_v23 = vadd.f32 %v5727_v52, %v7646_v33  ;;  %v5730_v45 = vadd.f32 %v5729_v50, %v5728_v3  ;;  %v5793_v44 = vpop.f32.mrb[147].mxu0 }
 0x47a   : > { %v5794_v21 = vadd.f32 %v5793_v44, %v5792_v38 }
 0x47b   : > { %v3686_v19 = vadd.f32 %v5730_v45, %v7648_v35  ;;  %v7686_v51 = vadd.f32 %v5791_v55, %v3683_v23 }
 0x47d   : > { %v5731_v0 = vpop.f32.mrb[128].mxu1  ;;  %v7688_v5 = vadd.f32 %v5794_v21, %v3686_v19 }
 0x47e   : > { %v5732_v40 = vpop.f32.mrb[129].mxu1  ;;  %v5795_v53 = vpop.f32.mrb[148].mxu0 }
 0x47f   : > { %v5733_v49 = vadd.f32 %v5732_v40, %v5731_v0  ;;  %v5734_v4 = vpop.f32.mrb[130].mxu1  ;;  %v5796_v11 = vpop.f32.mrb[149].mxu0 }
 0x480   : > { %v5735_v59 = vpop.f32.mrb[131].mxu1  ;;  %v5797_v56 = vadd.f32 %v5796_v11, %v5795_v53  ;;  %v5798_v12 = vpop.f32.mrb[150].mxu0 }
 0x481   : > { %v3691_v33 = vadd.f32 %v5733_v49, %v7650_v1  ;;  %v5736_v17 = vadd.f32 %v5735_v59, %v5734_v4  ;;  %v5799_v13 = vpop.f32.mrb[151].mxu0 }
 0x482   : > { %v5800_v62 = vadd.f32 %v5799_v13, %v5798_v12 }
 0x483   : > { %v3694_v35 = vadd.f32 %v5736_v17, %v7652_v2  ;;  %v7692_v8 = vadd.f32 %v5797_v56, %v3691_v33  ;;  %v7715_v17 = vld [vmem:[%s8242_s6] ss:$0 sm:$0xff] }
 0x485   : > { %v5737_v9 = vpop.f32.mrb[132].mxu1  ;;  %v7694_v60 = vadd.f32 %v5800_v62, %v3694_v35  ;;  %v7723_v35 = vld [vmem:[%s8243_s7] ss:$0 sm:$0xff] }
 0x486   : > { %v5738_v18 = vpop.f32.mrb[133].mxu1  ;;  %v5801_v30 = vpop.f32.mrb[152].mxu0 }
 0x487   : > { %v5739_v22 = vadd.f32 %v5738_v18, %v5737_v9  ;;  %v5740_v32 = vpop.f32.mrb[134].mxu1  ;;  %v5802_v39 = vpop.f32.mrb[153].mxu0 }
 0x488   : > { %v5741_v34 = vpop.f32.mrb[135].mxu1  ;;  %v5803_v14 = vadd.f32 %v5802_v39, %v5801_v30  ;;  %v5804_v15 = vpop.f32.mrb[154].mxu0 }
 0x489   : > { %v3699_v1 = vadd.f32 %v5739_v22, %v7654_v37  ;;  %v5742_v57 = vadd.f32 %v5741_v34, %v5740_v32  ;;  %v5805_v24 = vpop.f32.mrb[155].mxu0 }
 0x48a   : > { %v5806_v46 = vadd.f32 %v5805_v24, %v5804_v15 }
 0x48b   : > { %v3702_v2 = vadd.f32 %v5742_v57, %v7656_v28  ;;  %v7698_v47 = vadd.f32 %v5803_v14, %v3699_v1 }
 0x48d   : > { %v5743_v29 = vpop.f32.mrb[136].mxu1  ;;  %v7700_v48 = vadd.f32 %v5806_v46, %v3702_v2 }
 0x48e   : > { %v5744_v27 = vpop.f32.mrb[137].mxu1  ;;  %v5807_v20 = vpop.f32.mrb[156].mxu0 }
 0x48f   : > { %v5745_v26 = vadd.f32 %v5744_v27, %v5743_v29  ;;  %v5746_v25 = vpop.f32.mrb[138].mxu1  ;;  %v5808_v41 = vpop.f32.mrb[157].mxu0 }
 0x490   : > { %v5747_v63 = vpop.f32.mrb[139].mxu1  ;;  %v5809_v52 = vadd.f32 %v5808_v41, %v5807_v20  ;;  %v5810_v3 = vpop.f32.mrb[158].mxu0 }
 0x491   : > { %v3707_v37 = vadd.f32 %v5745_v26, %v7658_v16  ;;  %v5748_v54 = vadd.f32 %v5747_v63, %v5746_v25  ;;  %v5811_v50 = vpop.f32.mrb[159].mxu0 }
 0x492   : > { %v5812_v55 = vadd.f32 %v5811_v50, %v5810_v3 }
 0x493   : > { %v3710_v28 = vadd.f32 %v5748_v54, %v7660_v10  ;;  %v7704_v38 = vadd.f32 %v5809_v52, %v3707_v37 }
 0x495   : > { %v5749_v23 = vpop.f32.mrb[140].mxu1  ;;  %v7706_v45 = vadd.f32 %v5812_v55, %v3710_v28 }
 0x496   : > { %v5750_v44 = vpop.f32.mrb[141].mxu1  ;;  %v5813_v21 = vpop.f32.mrb[160].mxu0 }
 0x497   : > { %v5751_v19 = vadd.f32 %v5750_v44, %v5749_v23  ;;  %v5752_v0 = vpop.f32.mrb[142].mxu1  ;;  %v5814_v40 = vpop.f32.mrb[161].mxu0 }
 0x498   : > { %v5753_v53 = vpop.f32.mrb[143].mxu1  ;;  %v5815_v49 = vadd.f32 %v5814_v40, %v5813_v21  ;;  %v5816_v4 = vpop.f32.mrb[162].mxu0 }
 0x499   : > { %v3715_v16 = vadd.f32 %v5751_v19, %v7662_v58  ;;  %v5754_v11 = vadd.f32 %v5753_v53, %v5752_v0  ;;  %v5817_v59 = vpop.f32.mrb[163].mxu0 }
 0x49a   : > { %v5818_v56 = vadd.f32 %v5817_v59, %v5816_v4 }
 0x49b   : > { %v3718_v10 = vadd.f32 %v5754_v11, %v7664_v7  ;;  %v7710_v12 = vadd.f32 %v5815_v49, %v3715_v16 }
 0x49d   : > { %v5896_v33 = vpop.f32.mrb[144].mxu1  ;;  %v7717_v13 = vadd.f32 %v5818_v56, %v3718_v10 }
 0x49e   : > { %v3861_v62 = vadd.f32 %v5896_v33, %v7674_v31  ;;  %v3852_v58 = vpop.f32.mrb[145].mxu1 }
 0x49f   : > { %v3853_v7 = vadd.f32 %v3852_v58, %v7668_v61  ;;  %v5897_v9 = vpop.f32.mrb[146].mxu1 }
 0x4a0   : > { %v3924_v18 = vmul.f32 %v7715_v17, %v3861_v62  ;;  %v3864_v30 = vadd.f32 %v5897_v9, %v7676_v36  ;;  %v3855_v22 = vpop.f32.mrb[147].mxu1 }
 0x4a1   : > { %v3922_v32 = vmul.f32 %v7715_v17, %v3853_v7  ;;  %v3856_v39 = vadd.f32 %v3855_v22, %v7670_v6 }
 0x4a2   : > { %v3947_v31 = vadd.f32 %v7723_v35, %v3924_v18  ;;  %v3925_v34 = vmul.f32 %v7715_v17, %v3864_v30 }
 0x4a3   : > { %v3945_v61 = vadd.f32 %v7723_v35, %v3922_v32  ;;  %v3923_v14 = vmul.f32 %v7715_v17, %v3856_v39 }
 0x4a4   : > { %v3963_v36 = vmax.f32 %v3947_v31, 0.0  ;;  %v3948_v15 = vadd.f32 %v7723_v35, %v3925_v34 }
 0x4a5   : > { %v3961_v1 = vmax.f32 %v3945_v61, 0.0  ;;  %v3946_v6 = vadd.f32 %v7723_v35, %v3923_v14  ;;  %v5900_v57 = vpop.f32.mrb[148].mxu1 }
 0x4a6   : > { %3980 = vst.msk [vmem:[%s7735_s21 + $0x10] sm:$0xff] %vm2458_vm2, %v3963_v36  ;;  %v3964_v24 = vmax.f32 %v3948_v15, 0.0  ;;  %v3877_v46 = vadd.f32 %v5900_v57, %v7686_v51  ;;  %v3868_v2 = vpop.f32.mrb[149].mxu1  ;;  %v4102_v57 = vld [vmem:[%s8244_s8 + $0x10] sm:$0xff] (!%p5039_p2) }
 0x4a7   : > { %3978 = vst.msk [vmem:[%s7735_s21] sm:$0xff] %vm2458_vm2, %v3961_v1  ;;  %v3962_v29 = vmax.f32 %v3946_v6, 0.0  ;;  %v3869_v27 = vadd.f32 %v3868_v2, %v7680_v43  ;;  %v5901_v20 = vpop.f32.mrb[150].mxu1  ;;  %v4103_v2 = vld [vmem:[%s8244_s8 + $0x18] sm:$0xff] (!%p5039_p2) }
 0x4a8   : > { %3981 = vst.msk [vmem:[%s7735_s21 + $0x18] sm:$0xff] %vm2458_vm2, %v3964_v24  ;;  %v3928_v26 = vmul.f32 %v7715_v17, %v3877_v46  ;;  %v3880_v25 = vadd.f32 %v5901_v20, %v7688_v5  ;;  %v3871_v41 = vpop.f32.mrb[151].mxu1  ;;  %v6418_v24 = vmov (!%p5039_p2), 0.0|0.0  }
 0x4a9   : > { %3979 = vst.msk [vmem:[%s7735_s21 + $0x8] sm:$0xff] %vm2458_vm2, %v3962_v29  ;;  %v3926_v51 = vmul.f32 %v7715_v17, %v3869_v27  ;;  %v3872_v63 = vadd.f32 %v3871_v41, %v7682_v42  ;;  %5926 = vmatprep.subr.bf16.mxu0 (!%p5039_p2), %v6418_v24  ;;  %v6420_v29 = vmov (!%p5039_p2), 0.0  }
 0x4aa   : > { %v3951_v52 = vadd.f32 %v7723_v35, %v3928_v26  ;;  %v3929_v43 = vmul.f32 %v7715_v17, %v3880_v25  ;;  %5918 = vmatprep.mubr.msk.f32.mxu0 (!%p5039_p2), %vm6419_vm3, %v6420_v29  ;;  %5921 = vmatprep.subr.mxu1 (!%p5039_p2), %v6420_v29 }
 0x4ab   : > { %v3949_v3 = vadd.f32 %v7723_v35, %v3926_v51  ;;  %v3927_v37 = vmul.f32 %v7715_v17, %v3872_v63  ;;  %5923 = vmatprep.mubr.msk.f32.mxu1 (!%p5039_p2), %vm6419_vm3, %v6420_v29  ;;  %v5930_v63 = vpack.c.bf16 (!%p5039_p2), %v4103_v2, %v4102_v57 }
 0x4ac   : > { %v3967_v54 = vmax.f32 %v3951_v52, 0.0  ;;  %v3952_v5 = vadd.f32 %v7723_v35, %v3929_v43 }
 0x4ad   : > { %v3965_v50 = vmax.f32 %v3949_v3, 0.0  ;;  %v3950_v55 = vadd.f32 %v7723_v35, %v3927_v37  ;;  %v5904_v28 = vpop.f32.mrb[152].mxu1 }
 0x4ae   : > { %3984 = vst.msk [vmem:[%s7735_s21 + $0x30] sm:$0xff] %vm2458_vm2, %v3967_v54  ;;  %v3968_v42 = vmax.f32 %v3952_v5, 0.0  ;;  %v3893_v23 = vadd.f32 %v5904_v28, %v7698_v47  ;;  %v3884_v44 = vpop.f32.mrb[153].mxu1 }
 0x4af   : > { %3982 = vst.msk [vmem:[%s7735_s21 + $0x20] sm:$0xff] %vm2458_vm2, %v3965_v50  ;;  %v3966_v21 = vmax.f32 %v3950_v55, 0.0  ;;  %v3885_v19 = vadd.f32 %v3884_v44, %v7692_v8  ;;  %v5905_v0 = vpop.f32.mrb[154].mxu1 }
 0x4b0   : > { %3985 = vst.msk [vmem:[%s7735_s21 + $0x38] sm:$0xff] %vm2458_vm2, %v3968_v42  ;;  %v3932_v40 = vmul.f32 %v7715_v17, %v3893_v23  ;;  %v3896_v53 = vadd.f32 %v5905_v0, %v7700_v48  ;;  %v3887_v49 = vpop.f32.mrb[155].mxu1 }
 0x4b1   : > { %3983 = vst.msk [vmem:[%s7735_s21 + $0x28] sm:$0xff] %vm2458_vm2, %v3966_v21  ;;  %v3930_v47 = vmul.f32 %v7715_v17, %v3885_v19  ;;  %v3888_v4 = vadd.f32 %v3887_v49, %v7694_v60 }
 0x4b2   : > { %v3955_v16 = vadd.f32 %v7723_v35, %v3932_v40  ;;  %v3933_v8 = vmul.f32 %v7715_v17, %v3896_v53  ;;  %v7843_v53 = vld [vmem:[%s8248_s12] ss:$0 sm:$0xff] (!%p5039_p2) }
 0x4b3   : > { %v3953_v11 = vadd.f32 %v7723_v35, %v3930_v47  ;;  %v3931_v59 = vmul.f32 %v7715_v17, %v3888_v4 }
 0x4b4   : > { %v3971_v56 = vmax.f32 %v3955_v16, 0.0  ;;  %v3956_v48 = vadd.f32 %v7723_v35, %v3933_v8 }
 0x4b5   : > { %v3969_v10 = vmax.f32 %v3953_v11, 0.0  ;;  %v3954_v33 = vadd.f32 %v7723_v35, %v3931_v59  ;;  %v5908_v62 = vpop.f32.mrb[156].mxu1 }
 0x4b6   : > { %3988 = vst.msk [vmem:[%s7735_s21 + $0x50] sm:$0xff] %vm2458_vm2, %v3971_v56  ;;  %v3972_v60 = vmax.f32 %v3956_v48, 0.0  ;;  %v3909_v58 = vadd.f32 %v5908_v62, %v7710_v12  ;;  %v3900_v7 = vpop.f32.mrb[157].mxu1 }
 0x4b7   : > { %3986 = vst.msk [vmem:[%s7735_s21 + $0x40] sm:$0xff] %vm2458_vm2, %v3969_v10  ;;  %v3970_v9 = vmax.f32 %v3954_v33, 0.0  ;;  %v3901_v18 = vadd.f32 %v3900_v7, %v7704_v38  ;;  %v5909_v30 = vpop.f32.mrb[158].mxu1 }
 0x4b8   : > { %3989 = vst.msk [vmem:[%s7735_s21 + $0x58] sm:$0xff] %vm2458_vm2, %v3972_v60  ;;  %v3936_v22 = vmul.f32 %v7715_v17, %v3909_v58  ;;  %v3912_v32 = vadd.f32 %v5909_v30, %v7717_v13  ;;  %v3903_v39 = vpop.f32.mrb[159].mxu1 }
 0x4b9   : > { %3987 = vst.msk [vmem:[%s7735_s21 + $0x48] sm:$0xff] %vm2458_vm2, %v3970_v9  ;;  %v3934_v12 = vmul.f32 %v7715_v17, %v3901_v18  ;;  %v3904_v31 = vadd.f32 %v3903_v39, %v7706_v45 }
 0x4ba   : > { %v3959_v38 = vadd.f32 %v7723_v35, %v3936_v22  ;;  %v3937_v34 = vmul.f32 %v7715_v17, %v3912_v32 }
 0x4bb   : > { %v3957_v61 = vadd.f32 %v7723_v35, %v3934_v12  ;;  %v3935_v14 = vmul.f32 %v7715_v17, %v3904_v31  ;;  %3996 = sbr.rel (%p5039_p2) target bundleno = 1787 (0x6fb), region = 104  ;;  %v4100_v17 = vld [vmem:[%s8244_s8] sm:$0xff] (!%p5039_p2) }
 0x4bc   : > { %v3975_v36 = vmax.f32 %v3959_v38, 0.0  ;;  %v3960_v13 = vadd.f32 %v7723_v35, %v3937_v34 }
 0x4bd   : > { %v3973_v15 = vmax.f32 %v3957_v61, 0.0  ;;  %v3958_v1 = vadd.f32 %v7723_v35, %v3935_v14  ;;  %v4101_v35 = vld [vmem:[%s8244_s8 + $0x8] sm:$0xff] (!%p5039_p2) }
 0x4be   : > { %3992 = vst.msk [vmem:[%s7735_s21 + $0x70] sm:$0xff] %vm2458_vm2, %v3975_v36  ;;  %v3976_v6 = vmax.f32 %v3960_v13, 0.0  ;;  %v5927_v46 = vpack.c.bf16 (!%p5039_p2), %v4101_v35, %v4100_v17 }
 0x4bf   : > { %3990 = vst.msk [vmem:[%s7735_s21 + $0x60] sm:$0xff] %vm2458_vm2, %v3973_v15  ;;  %v3974_v45 = vmax.f32 %v3958_v1, 0.0 }
 0x4c0   : > { %3993 = vst.msk [vmem:[%s7735_s21 + $0x78] sm:$0xff] %vm2458_vm2, %v3976_v6  ;;  %5928 = vmatpush3.bf16.msra.mxu0 (!%p5039_p2), %v5927_v46 }
 0x4c1   : > { %3991 = vst.msk [vmem:[%s7735_s21 + $0x68] sm:$0xff] %vm2458_vm2, %v3974_v45  ;;  %5929 = vmatprep.subr.bf16.mxu0 (!%p5039_p2), %v6418_v24 }
 0x4c4   : > { %5931 = vmatpush3.bf16.msra.mxu0 %v5930_v63 }
 0x4c8   : > { %v3997_v27 = vld [vmem:[%s6588_s14] sm:$0xff]  ;;  %v3998_v20 = vld [vmem:[%s6588_s14 + $0x8] sm:$0xff]  ;;  %v3999_v26 = vld [vmem:[%s6588_s14 + $0x10] sm:$0xff] }
 0x4c9   : > { %v4000_v25 = vld [vmem:[%s6588_s14 + $0x18] sm:$0xff]  ;;  %v4029_v41 = vsel %vm2458_vm2, %v3997_v27, 0.0  ;;  %v4030_v51 = vsel %vm2458_vm2, %v3998_v20, 0.0  ;;  %v4001_v52 = vld [vmem:[%s6588_s14 + $0x20] sm:$0xff]  ;;  %v4032_v3 = vsel %vm2458_vm2, %v3999_v26, 0.0  ;;  %v4002_v54 = vld [vmem:[%s6588_s14 + $0x28] sm:$0xff]  ;;  %v4272_v4 = vmul.f32 %v7843_v53, %v3997_v27 }
 0x4ca   : > { %v4031_v43 = vadd.f32 %v4030_v51, %v4029_v41  ;;  %v4034_v37 = vsel %vm2458_vm2, %v4000_v25, 0.0  ;;  %v4036_v50 = vsel %vm2458_vm2, %v4001_v52, 0.0  ;;  %v4003_v55 = vld [vmem:[%s6588_s14 + $0x30] sm:$0xff]  ;;  %v4038_v42 = vsel %vm2458_vm2, %v4002_v54, 0.0  ;;  %v4004_v23 = vld [vmem:[%s6588_s14 + $0x38] sm:$0xff]  ;;  %v4005_v19 = vld [vmem:[%s6588_s14 + $0x40] sm:$0xff] }
 0x4cb   : > { %v4040_v21 = vsel %vm2458_vm2, %v4003_v55, 0.0  ;;  %v4042_v40 = vsel %vm2458_vm2, %v4004_v23, 0.0  ;;  %v4006_v49 = vld [vmem:[%s6588_s14 + $0x48] sm:$0xff]  ;;  %v4273_v16 = vmul.f32 %v7843_v53, %v3998_v20  ;;  %v4274_v8 = vmul.f32 %v7843_v53, %v3999_v26  ;;  %v4007_v56 = vld [vmem:[%s6588_s14 + $0x50] sm:$0xff]  ;;  %v4008_v58 = vld [vmem:[%s6588_s14 + $0x58] sm:$0xff] }
 0x4cc   : > { %v4033_v5 = vadd.f32 %v4032_v3, %v4031_v43  ;;  %v4044_v11 = vsel %vm2458_vm2, %v4005_v19, 0.0  ;;  %v4275_v59 = vmul.f32 %v7843_v53, %v4000_v25  ;;  %v4304_v10 = vsel %vm2458_vm2, %v4272_v4, 0.0  ;;  %v4009_v32 = vld [vmem:[%s6588_s14 + $0x60] sm:$0xff]  ;;  %v4010_v38 = vld [vmem:[%s6588_s14 + $0x68] sm:$0xff]  ;;  %v4011_v15 = vld [vmem:[%s6588_s14 + $0x70] sm:$0xff] }
 0x4cd   : > { %v4310_v33 = vsel %vm2458_vm2, %v4274_v8, 0.0  ;;  %v4046_v62 = vsel %vm2458_vm2, %v4006_v49, 0.0  ;;  %4305 = vadd.xlane.f32.xlu0 %v4304_v10  ;;  %v4276_v60 = vmul.f32 %v7843_v53, %v4001_v52  ;;  %v4307_v9 = vsel %vm2458_vm2, %v4273_v16, 0.0  ;;  %v4012_v17 = vld [vmem:[%s6588_s14 + $0x78] sm:$0xff]  ;;  %v4013_v29 = vld [vmem:[%s6588_s14 + $0x80] sm:$0xff]  ;;  %v4014_v25 = vld [vmem:[%s6588_s14 + $0x88] sm:$0xff] }
 0x4ce   : > { %v4035_v28 = vadd.f32 %v4034_v37, %v4033_v5  ;;  %4311 = vadd.xlane.f32.xlu1 %v4310_v33  ;;  %v4313_v18 = vsel %vm2458_vm2, %v4275_v59, 0.0  ;;  %v4277_v30 = vmul.f32 %v7843_v53, %v4002_v54  ;;  %v4048_v22 = vsel %vm2458_vm2, %v4007_v56, 0.0  ;;  %v4015_v3 = vld [vmem:[%s6588_s14 + $0x90] sm:$0xff]  ;;  %v7907_v33 = vld [vmem:[%s6588_s14 + $0xb8] sm:$0xff] }
 0x4cf   : > { %v4050_v12 = vsel %vm2458_vm2, %v4008_v58, 0.0  ;;  %v4278_v31 = vmul.f32 %v7843_v53, %v4003_v55  ;;  %v4316_v61 = vsel %vm2458_vm2, %v4276_v60, 0.0  ;;  %v4279_v36 = vmul.f32 %v7843_v53, %v4004_v23  ;;  %v7902_v59 = vld [vmem:[%s6588_s14 + $0xb0] sm:$0xff] }
 0x4d0   : > { %v4037_v44 = vadd.f32 %v4036_v50, %v4035_v28  ;;  %v4319_v14 = vsel %vm2458_vm2, %v4277_v30, 0.0  ;;  %v4052_v13 = vsel %vm2458_vm2, %v4009_v32, 0.0  ;;  %v4054_v6 = vsel %vm2458_vm2, %v4010_v38, 0.0  ;;  %v4016_v50 = vld [vmem:[%s6588_s14 + $0x98] sm:$0xff] }
 0x4d1   : > { %4308 = vadd.xlane.f32.xlu0 %v4307_v9  ;;  %v4322_v45 = vsel %vm2458_vm2, %v4278_v31, 0.0  ;;  %v4325_v57 = vsel %vm2458_vm2, %v4279_v36, 0.0  ;;  %v4280_v24 = vmul.f32 %v7843_v53, %v4005_v19  ;;  %v4281_v46 = vmul.f32 %v7843_v53, %v4006_v49  ;;  %v4018_v49 = vld [vmem:[%s6588_s14 + $0xa8] sm:$0xff] }
 0x4d2   : > { %v4039_v0 = vadd.f32 %v4038_v42, %v4037_v44  ;;  %4314 = vadd.xlane.f32.xlu1 %v4313_v18  ;;  %v4056_v2 = vsel %vm2458_vm2, %v4011_v15, 0.0  ;;  %v4058_v20 = vsel %vm2458_vm2, %v4012_v17, 0.0  ;;  %v4282_v26 = vmul.f32 %v7843_v53, %v4007_v56  ;;  %v7915_v18 = vld [vmem:[%s6588_s14 + $0xc0] sm:$0xff] }
 0x4d3   : > { %v4328_v51 = vsel %vm2458_vm2, %v4280_v24, 0.0  ;;  %v4331_v63 = vsel %vm2458_vm2, %v4281_v46, 0.0  ;;  %v4283_v52 = vmul.f32 %v7843_v53, %v4008_v58  ;;  %v4060_v43 = vsel %vm2458_vm2, %v4013_v29, 0.0  ;;  %v7943_v24 = vld [vmem:[%s6588_s14 + $0xe0] sm:$0xff] }
 0x4d4   : > { %v4041_v47 = vadd.f32 %v4040_v21, %v4039_v0  ;;  %v4062_v54 = vsel %vm2458_vm2, %v4014_v25, 0.0  ;;  %v4284_v5 = vmul.f32 %v7843_v53, %v4009_v32  ;;  %v4334_v28 = vsel %vm2458_vm2, %v4282_v26, 0.0  ;;  %v4017_v21 = vld [vmem:[%s6588_s14 + $0xa0] sm:$0xff] }
 0x4d5   : > { %4317 = vadd.xlane.f32.xlu0 %v4316_v61  ;;  %v4337_v42 = vsel %vm2458_vm2, %v4283_v52, 0.0  ;;  %v4285_v23 = vmul.f32 %v7843_v53, %v4010_v38  ;;  %v4064_v44 = vsel %vm2458_vm2, %v4015_v3, 0.0  ;;  %v4066_v0 = vsel %vm2458_vm2, %v4016_v50, 0.0 }
 0x4d6   : > { %v4043_v48 = vadd.f32 %v4042_v40, %v4041_v47  ;;  %4320 = vadd.xlane.f32.xlu1 %v4319_v14  ;;  %v4286_v40 = vmul.f32 %v7843_v53, %v4011_v15  ;;  %v4340_v4 = vsel %vm2458_vm2, %v4284_v5, 0.0  ;;  %v4287_v8 = vmul.f32 %v7843_v53, %v4012_v17  ;;  %v7929_v14 = vld [vmem:[%s6588_s14 + $0xd0] sm:$0xff] }
 0x4d7   : > { %v4343_v16 = vsel %vm2458_vm2, %v4285_v23, 0.0  ;;  %v4288_v10 = vmul.f32 %v7843_v53, %v4013_v29  ;;  %v4072_v9 = vsel %vm2458_vm2, %v7902_v59, 0.0  ;;  %v4290_v32 = vmul.f32 %v7843_v53, %v4015_v3 }
 0x4d8   : > { %v4045_v7 = vadd.f32 %v4044_v11, %v4043_v48  ;;  %v4068_v11 = vsel %vm2458_vm2, %v4017_v21, 0.0  ;;  %v4070_v48 = vsel %vm2458_vm2, %v4018_v49, 0.0  ;;  %v4346_v60 = vsel %vm2458_vm2, %v4286_v40, 0.0 }
 0x4d9   : > { %4323 = vadd.xlane.f32.xlu0 %v4322_v45  ;;  %v4349_v58 = vsel %vm2458_vm2, %v4287_v8, 0.0  ;;  %v4352_v31 = vsel %vm2458_vm2, %v4288_v10, 0.0  ;;  %v4076_v61 = vsel %vm2458_vm2, %v7915_v18, 0.0  ;;  %v4358_v15 = vsel %vm2458_vm2, %v4290_v32, 0.0 }
 0x4da   : > { %v4047_v39 = vadd.f32 %v4046_v62, %v4045_v7  ;;  %4326 = vadd.xlane.f32.xlu1 %v4325_v57  ;;  %v4289_v7 = vmul.f32 %v7843_v53, %v4014_v25  ;;  %v4292_v45 = vmul.f32 %v7843_v53, %v4017_v21  ;;  %v4080_v57 = vsel %vm2458_vm2, %v7929_v14, 0.0 }
 0x4db   : > { %v4294_v29 = vmul.f32 %v7843_v53, %v7902_v59  ;;  %v4296_v3 = vmul.f32 %v7843_v53, %v7915_v18 }
 0x4dc   : > { %v4049_v34 = vadd.f32 %v4048_v22, %v4047_v39  ;;  %v4074_v22 = vsel %vm2458_vm2, %v7907_v33, 0.0  ;;  %v7921_v39 = vld [vmem:[%s6588_s14 + $0xc8] sm:$0xff]  ;;  %v4355_v38 = vsel %vm2458_vm2, %v4289_v7, 0.0  ;;  %v4364_v26 = vsel %vm2458_vm2, %v4292_v45, 0.0 }
 0x4dd   : > { %4329 = vadd.xlane.f32.xlu0 %v4328_v51  ;;  %v4084_v51 = vsel %vm2458_vm2, %v7943_v24, 0.0  ;;  %v4370_v5 = vsel %vm2458_vm2, %v4294_v29, 0.0 }
 0x4de   : > { %v4051_v1 = vadd.f32 %v4050_v12, %v4049_v34  ;;  %4332 = vadd.xlane.f32.xlu1 %v4331_v63  ;;  %v4291_v34 = vmul.f32 %v7843_v53, %v4016_v50  ;;  %v7959_v63 = vld [vmem:[%s6588_s14 + $0xf0] sm:$0xff] }
 0x4df   : > { %v4302_v10 = vmul.f32 %v7843_v53, %v7959_v63 }
 0x4e0   : > { %v4053_v35 = vadd.f32 %v4052_v13, %v4051_v1  ;;  %v4078_v13 = vsel %vm2458_vm2, %v7921_v39, 0.0  ;;  %v7935_v1 = vld [vmem:[%s6588_s14 + $0xd8] sm:$0xff]  ;;  %v4361_v17 = vsel %vm2458_vm2, %v4291_v34, 0.0 }
 0x4e1   : > { %4335 = vadd.xlane.f32.xlu0 %v4334_v28  ;;  %v4088_v28 = vsel %vm2458_vm2, %v7959_v63, 0.0  ;;  %v4299_v40 = vmul.f32 %v7843_v53, %v7935_v1 }
 0x4e2   : > { %v4055_v27 = vadd.f32 %v4054_v6, %v4053_v35  ;;  %4338 = vadd.xlane.f32.xlu1 %v4337_v42  ;;  %v4293_v35 = vmul.f32 %v7843_v53, %v4018_v49 }
 0x4e4   : > { %v4057_v41 = vadd.f32 %v4056_v2, %v4055_v27  ;;  %v4082_v2 = vsel %vm2458_vm2, %v7935_v1, 0.0  ;;  %v7950_v27 = vld [vmem:[%s6588_s14 + $0xe8] sm:$0xff]  ;;  %v4367_v25 = vsel %vm2458_vm2, %v4293_v35, 0.0 }
 0x4e5   : > { %4341 = vadd.xlane.f32.xlu0 %v4340_v4  ;;  %v4300_v4 = vmul.f32 %v7843_v53, %v7943_v24 }
 0x4e6   : > { %v4059_v37 = vadd.f32 %v4058_v20, %v4057_v41  ;;  %4344 = vadd.xlane.f32.xlu1 %v4343_v16  ;;  %v4295_v41 = vmul.f32 %v7843_v53, %v7907_v33 }
 0x4e8   : > { %v4061_v55 = vadd.f32 %v4060_v43, %v4059_v37  ;;  %v4086_v43 = vsel %vm2458_vm2, %v7950_v27, 0.0  ;;  %v7966_v37 = vld [vmem:[%s6588_s14 + $0xf8] sm:$0xff]  ;;  %v4373_v50 = vsel %vm2458_vm2, %v4295_v41, 0.0 }
 0x4e9   : > { %4347 = vadd.xlane.f32.xlu0 %v4346_v60  ;;  %v4090_v23 = vsel %vm2458_vm2, %v7966_v37, 0.0  ;;  %v4388_v60 = vsel %vm2458_vm2, %v4300_v4, 0.0  ;;  %v4303_v7 = vmul.f32 %v7843_v53, %v7966_v37 }
 0x4ea   : > { %v4063_v19 = vadd.f32 %v4062_v54, %v4061_v55  ;;  %4350 = vadd.xlane.f32.xlu1 %v4349_v58  ;;  %v4297_v55 = vmul.f32 %v7843_v53, %v7921_v39 }
 0x4eb   : > { %v4397_v32 = vsel %vm2458_vm2, %v4303_v7, 0.0 }
 0x4ec   : > { %v4065_v47 = vadd.f32 %v4064_v44, %v4063_v19  ;;  %v4376_v44 = vsel %vm2458_vm2, %v4296_v3, 0.0  ;;  %v4298_v19 = vmul.f32 %v7843_v53, %v7929_v14 }
 0x4ed   : > { %4353 = vadd.xlane.f32.xlu0 %v4352_v31 }
 0x4ee   : > { %v4067_v56 = vadd.f32 %v4066_v0, %v4065_v47  ;;  %4356 = vadd.xlane.f32.xlu1 %v4355_v38  ;;  %v4379_v0 = vsel %vm2458_vm2, %v4297_v55, 0.0  ;;  %v6421_v47 = vmov 0   ;;  %v4382_v8 = vsel %vm2458_vm2, %v4298_v19, 0.0  ;;  %v7997_v38 = vld [vmem:[#allocation6] ss:$0 sm:$0xff] }
 0x4ef   : > { %6160 = vset.pattern.permute.xlu1 %v6421_v47  ;;  %6159 = vset.pattern.permute.xlu0 %v6421_v47 }
 0x4f0   : > { %v4069_v62 = vadd.f32 %v4068_v11, %v4067_v56  ;;  %v4385_v11 = vsel %vm2458_vm2, %v4299_v40, 0.0  ;;  %v4301_v56 = vmul.f32 %v7843_v53, %v7950_v27 }
 0x4f1   : > { %4359 = vadd.xlane.f32.xlu0 %v4358_v15 }
 0x4f2   : > { %v4071_v30 = vadd.f32 %v4070_v48, %v4069_v62  ;;  %4362 = vadd.xlane.f32.xlu1 %v4361_v17  ;;  %v4391_v58 = vsel %vm2458_vm2, %v4301_v56, 0.0 }
 0x4f4   : > { %v4073_v12 = vadd.f32 %v4072_v9, %v4071_v30 }
 0x4f5   : > { %4365 = vadd.xlane.f32.xlu0 %v4364_v26 }
 0x4f6   : > { %v4075_v36 = vadd.f32 %v4074_v22, %v4073_v12  ;;  %4368 = vadd.xlane.f32.xlu1 %v4367_v25  ;;  %v4394_v22 = vsel %vm2458_vm2, %v4302_v10, 0.0 }
 0x4f8   : > { %v4077_v6 = vadd.f32 %v4076_v61, %v4075_v36 }
 0x4f9   : > { %4371 = vadd.xlane.f32.xlu0 %v4370_v5 }
 0x4fa   : > { %v4079_v46 = vadd.f32 %v4078_v13, %v4077_v6  ;;  %4374 = vadd.xlane.f32.xlu1 %v4373_v50 }
 0x4fc   : > { %v4081_v20 = vadd.f32 %v4080_v57, %v4079_v46 }
 0x4fd   : > { %4377 = vadd.xlane.f32.xlu0 %v4376_v44 }
 0x4fe   : > { %v4083_v52 = vadd.f32 %v4082_v2, %v4081_v20  ;;  %4380 = vadd.xlane.f32.xlu1 %v4379_v0  ;;  %v4179_v20 = vld [vmem:[%s8246_s10] sm:$0x3] }
 0x4ff   : > { %5922 = vmatpush3.msk.msra.mxu1 %vm4185_vm4, %v4179_v20 }
 0x500   : > { %v4085_v54 = vadd.f32 %v4084_v51, %v4083_v52 }
 0x501   : > { %4383 = vadd.xlane.f32.xlu0 %v4382_v8 }
 0x502   : > { %v4087_v42 = vadd.f32 %v4086_v43, %v4085_v54  ;;  %4386 = vadd.xlane.f32.xlu1 %v4385_v11 }
 0x504   : > { %v4089_v21 = vadd.f32 %v4088_v28, %v4087_v42 }
 0x505   : > { %4389 = vadd.xlane.f32.xlu0 %v4388_v60 }
 0x506   : > { %v4091_v49 = vadd.f32 %v4090_v23, %v4089_v21  ;;  %4392 = vadd.xlane.f32.xlu1 %v4391_v58 }
 0x508   : > { %v4092_v16 = vrot.slane %v4091_v49, 4 }
 0x509   : > { %4395 = vadd.xlane.f32.xlu0 %v4394_v22 }
 0x50a   : > { %v4093_v48 = vadd.f32 %v4092_v16, %v4091_v49  ;;  %4398 = vadd.xlane.f32.xlu1 %v4397_v32 }
 0x50c   : > { %v4094_v62 = vrot.slane %v4093_v48, 2 }
 0x50e   : > { %v4095_v9 = vadd.f32 %v4094_v62, %v4093_v48 }
 0x510   : > { %v4096_v30 = vrot.slane %v4095_v9, 1 }
 0x512   : > { %v4097_v12 = vadd.f32 %v4096_v30, %v4095_v9 }
 0x514   : > { %v4099_v31 = vmul.f32 0.00390625, %v4097_v12 }
 0x516   : > { %5919 = vmatmul.mubr.msk.f32.vlgmr.msra.gmra.mrb[0].mxu0 %vm2458_vm2, %v4099_v31 }
 0x55a   : > { %v4306_v34 = vpop.xlane.xlu0 %4305 }
 0x55b   : > { %v4312_v61 = vpop.xlane.xlu1 %4311  ;;  %v4407_v53 = vadd.f32 %v7997_v38, %v4306_v34 }
 0x55c   : > { %v4409_v36 = vadd.f32 %v7997_v38, %v4312_v61 }
 0x55d   : > { %v5197_v13 = vmul.f32 -1.442695, %v4407_v53 }
 0x55e   : > { %v5199_v15 = vmul.f32 -1.442695, %v4409_v36  ;;  %v4309_v6 = vpop.xlane.xlu0 %4308 }
 0x55f   : > { %v4315_v45 = vpop.xlane.xlu1 %4314  ;;  %6161 = vpow2.f32 %v5197_v13  ;;  %v4408_v17 = vadd.f32 %v7997_v38, %v4309_v6 }
 0x560   : > { %v4410_v35 = vadd.f32 %v7997_v38, %v4315_v45  ;;  %6163 = vpow2.f32 %v5199_v15 }
 0x561   : > { %v5198_v57 = vmul.f32 -1.442695, %v4408_v17 }
 0x562   : > { %v5200_v46 = vmul.f32 -1.442695, %v4410_v35  ;;  %v4318_v2 = vpop.xlane.xlu0 %4317 }
 0x563   : > { %v4321_v29 = vpop.xlane.xlu1 %4320  ;;  %6165 = vpow2.f32 %v5198_v57  ;;  %v4411_v26 = vadd.f32 %v7997_v38, %v4318_v2 }
 0x564   : > { %v4412_v25 = vadd.f32 %v7997_v38, %v4321_v29  ;;  %6167 = vpow2.f32 %v5200_v46 }
 0x565   : > { %v5201_v41 = vmul.f32 -1.442695, %v4411_v26 }
 0x566   : > { %v4324_v51 = vpop.xlane.xlu0 %4323  ;;  %v5202_v43 = vmul.f32 -1.442695, %v4412_v25 }
 0x567   : > { %v4327_v52 = vpop.xlane.xlu1 %4326  ;;  %v4413_v3 = vadd.f32 %v7997_v38, %v4324_v51  ;;  %6169 = vpow2.f32 %v5201_v41 }
 0x568   : > { %v4414_v54 = vadd.f32 %v7997_v38, %v4327_v52  ;;  %6171 = vpow2.f32 %v5202_v43 }
 0x569   : > { %v6162_v5 = vpop.eup %6161  ;;  %v5203_v28 = vmul.f32 -1.442695, %v4413_v3 }
 0x56a   : > { %v6164_v50 = vpop.eup %6163  ;;  %v4535_v55 = vadd.f32 1.0, %v6162_v5  ;;  %v4330_v42 = vpop.xlane.xlu0 %4329  ;;  %v5204_v44 = vmul.f32 -1.442695, %v4414_v54 }
 0x56b   : > { %v4333_v23 = vpop.xlane.xlu1 %4332  ;;  %v4415_v19 = vadd.f32 %v7997_v38, %v4330_v42  ;;  %v4537_v40 = vadd.f32 1.0, %v6164_v50 }
 0x56c   : > { %v4416_v21 = vadd.f32 %v7997_v38, %v4333_v23  ;;  %6173 = vrcp.f32 %v4535_v55 }
 0x56d   : > { %v6166_v0 = vpop.eup %6165  ;;  %6175 = vpow2.f32 %v5203_v28  ;;  %v5205_v56 = vmul.f32 -1.442695, %v4415_v19 }
 0x56e   : > { %v6168_v49 = vpop.eup %6167  ;;  %v4536_v47 = vadd.f32 1.0, %v6166_v0  ;;  %v4336_v4 = vpop.xlane.xlu0 %4335  ;;  %v5206_v16 = vmul.f32 -1.442695, %v4416_v21  ;;  %6177 = vpow2.f32 %v5204_v44 }
 0x56f   : > { %v4339_v8 = vpop.xlane.xlu1 %4338  ;;  %v4538_v48 = vadd.f32 1.0, %v6168_v49  ;;  %v4417_v7 = vadd.f32 %v7997_v38, %v4336_v4 }
 0x570   : > { %v4418_v11 = vadd.f32 %v7997_v38, %v4339_v8  ;;  %6179 = vrcp.f32 %v4536_v47 }
 0x571   : > { %6181 = vrcp.f32 %v4537_v40  ;;  %v6170_v58 = vpop.eup %6169  ;;  %v5207_v53 = vmul.f32 -1.442695, %v4417_v7 }
 0x572   : > { %v4342_v10 = vpop.xlane.xlu0 %4341  ;;  %6183 = vpow2.f32 %v5206_v16  ;;  %v5208_v62 = vmul.f32 -1.442695, %v4418_v11  ;;  %v6172_v30 = vpop.eup %6171  ;;  %v4539_v31 = vadd.f32 1.0, %v6170_v58 }
 0x573   : > { %v4345_v60 = vpop.xlane.xlu1 %4344  ;;  %6185 = vpow2.f32 %v5205_v56  ;;  %v4419_v22 = vadd.f32 %v7997_v38, %v4342_v10  ;;  %v4540_v15 = vadd.f32 1.0, %v6172_v30 }
 0x574   : > { %v4420_v9 = vadd.f32 %v7997_v38, %v4345_v60  ;;  %6187 = vrcp.f32 %v4538_v48 }
 0x575   : > { %6189 = vpow2.f32 %v5208_v62  ;;  %v5209_v45 = vmul.f32 -1.442695, %v4419_v22 }
 0x576   : > { %v5210_v32 = vmul.f32 -1.442695, %v4420_v9  ;;  %v6174_v12 = vpop.eup %6173  ;;  %v4348_v34 = vpop.xlane.xlu0 %4347 }
 0x577   : > { %v4351_v61 = vpop.xlane.xlu1 %4350  ;;  %4637 = vperm.xlu0 %6159, %v6174_v12   ;;  %v6176_v13 = vpop.eup %6175  ;;  %v4421_v20 = vadd.f32 %v7997_v38, %v4348_v34 }
 0x578   : > { %v4422_v36 = vadd.f32 %v7997_v38, %v4351_v61  ;;  %v6178_v6 = vpop.eup %6177  ;;  %6191 = vpow2.f32 %v5210_v32  ;;  %v4541_v29 = vadd.f32 1.0, %v6176_v13 }
 0x579   : > { %6193 = vrcp.f32 %v4539_v31  ;;  %v4542_v41 = vadd.f32 1.0, %v6178_v6  ;;  %v5211_v55 = vmul.f32 -1.442695, %v4421_v20 }
 0x57a   : > { %v6180_v17 = vpop.eup %6179  ;;  %v4354_v35 = vpop.xlane.xlu0 %4353  ;;  %v5212_v57 = vmul.f32 -1.442695, %v4422_v36  ;;  %6195 = vpow2.f32 %v5207_v53 }
 0x57b   : > { %v4357_v46 = vpop.xlane.xlu1 %4356  ;;  %v6182_v2 = vpop.eup %6181  ;;  %4642 = vperm.xlu1 %6160, %v6180_v17   ;;  %6197 = vrcp.f32 %v4540_v15  ;;  %v4423_v51 = vadd.f32 %v7997_v38, %v4354_v35 }
 0x57c   : > { %v4424_v26 = vadd.f32 %v7997_v38, %v4357_v46  ;;  %v6184_v25 = vpop.eup %6183  ;;  %6199 = vpow2.f32 %v5209_v45 }
 0x57d   : > { %v4544_v52 = vadd.f32 1.0, %v6184_v25  ;;  %v6186_v43 = vpop.eup %6185  ;;  %6201 = vpow2.f32 %v5212_v57  ;;  %v5213_v42 = vmul.f32 -1.442695, %v4423_v51 }
 0x57e   : > { %v4360_v3 = vpop.xlane.xlu0 %4359  ;;  %v5214_v54 = vmul.f32 -1.442695, %v4424_v26  ;;  %v6188_v50 = vpop.eup %6187  ;;  %6203 = vrcp.f32 %v4541_v29  ;;  %v4543_v21 = vadd.f32 1.0, %v6186_v43 }
 0x57f   : > { %v4363_v5 = vpop.xlane.xlu1 %4362  ;;  %4647 = vperm.xlu1 %6160, %v6182_v2   ;;  %v6190_v28 = vpop.eup %6189  ;;  %6205 = vrcp.f32 %v4542_v41  ;;  %v4425_v19 = vadd.f32 %v7997_v38, %v4360_v3 }
 0x580   : > { %v4426_v23 = vadd.f32 %v7997_v38, %v4363_v5  ;;  %6207 = vrcp.f32 %v4544_v52  ;;  %v4546_v44 = vadd.f32 1.0, %v6190_v28 }
 0x581   : > { %6209 = vpow2.f32 %v5214_v54  ;;  %v5215_v10 = vmul.f32 -1.442695, %v4425_v19 }
 0x582   : > { %v4366_v0 = vpop.xlane.xlu0 %4365  ;;  %v6192_v49 = vpop.eup %6191  ;;  %6211 = vpow2.f32 %v5211_v55  ;;  %v5216_v8 = vmul.f32 -1.442695, %v4426_v23 }
 0x583   : > { %v4369_v40 = vpop.xlane.xlu1 %4368  ;;  %4652 = vperm.xlu1 %6160, %v6188_v50   ;;  %v6194_v4 = vpop.eup %6193  ;;  %6213 = vpow2.f32 %v5213_v42  ;;  %v4548_v16 = vadd.f32 1.0, %v6192_v49  ;;  %v4427_v22 = vadd.f32 %v7997_v38, %v4366_v0 }
 0x584   : > { %v4428_v47 = vadd.f32 %v7997_v38, %v4369_v40  ;;  %v6196_v11 = vpop.eup %6195  ;;  %6215 = vrcp.f32 %v4546_v44 }
 0x585   : > { %v6198_v48 = vpop.eup %6197  ;;  %6217 = vrcp.f32 %v4543_v21  ;;  %v4545_v30 = vadd.f32 1.0, %v6196_v11  ;;  %v5217_v17 = vmul.f32 -1.442695, %v4427_v22 }
 0x586   : > { %v5218_v56 = vmul.f32 -1.442695, %v4428_v47  ;;  %v4372_v62 = vpop.xlane.xlu0 %4371  ;;  %v6200_v58 = vpop.eup %6199  ;;  %6219 = vrcp.f32 %v4548_v16 }
 0x587   : > { %v4375_v60 = vpop.xlane.xlu1 %4374  ;;  %4657 = vperm.xlu1 %6160, %v6194_v4   ;;  %v6202_v9 = vpop.eup %6201  ;;  %6221 = vpow2.f32 %v5216_v8  ;;  %v4547_v13 = vadd.f32 1.0, %v6200_v58  ;;  %v4429_v15 = vadd.f32 %v7997_v38, %v4372_v62 }
 0x588   : > { %v4430_v7 = vadd.f32 %v7997_v38, %v4375_v60  ;;  %v6204_v32 = vpop.eup %6203  ;;  %v4550_v12 = vadd.f32 1.0, %v6202_v9  ;;  %6223 = vpow2.f32 %v5218_v56 }
 0x589   : > { %v6206_v31 = vpop.eup %6205  ;;  %6225 = vpow2.f32 %v5215_v10  ;;  %v5219_v25 = vmul.f32 -1.442695, %v4429_v15 }
 0x58a   : > { %v4378_v34 = vpop.xlane.xlu0 %4377  ;;  %v5220_v61 = vmul.f32 -1.442695, %v4430_v7  ;;  %v6208_v36 = vpop.eup %6207  ;;  %6227 = vrcp.f32 %v4545_v30 }
 0x58b   : > { %v4381_v53 = vpop.xlane.xlu1 %4380  ;;  %4662 = vperm.xlu1 %6160, %v6198_v48   ;;  %v6210_v45 = vpop.eup %6209  ;;  %4682 = vperm.xlu0 %6159, %v6208_v36   ;;  %6229 = vrcp.f32 %v4550_v12  ;;  %v4431_v52 = vadd.f32 %v7997_v38, %v4378_v34 }
 0x58c   : > { %v4432_v6 = vadd.f32 %v7997_v38, %v4381_v53  ;;  %v6212_v35 = vpop.eup %6211  ;;  %v4552_v57 = vadd.f32 1.0, %v6210_v45  ;;  %6231 = vpow2.f32 %v5220_v61 }
 0x58d   : > { %v6214_v46 = vpop.eup %6213  ;;  %6233 = vrcp.f32 %v4547_v13  ;;  %v4549_v51 = vadd.f32 1.0, %v6212_v35  ;;  %v5221_v44 = vmul.f32 -1.442695, %v4431_v52 }
 0x58e   : > { %v4384_v2 = vpop.xlane.xlu0 %4383  ;;  %v5222_v29 = vmul.f32 -1.442695, %v4432_v6  ;;  %v6216_v26 = vpop.eup %6215  ;;  %6235 = vpow2.f32 %v5217_v17  ;;  %v4551_v5 = vadd.f32 1.0, %v6214_v46 }
 0x58f   : > { %v4387_v20 = vpop.xlane.xlu1 %4386  ;;  %4667 = vperm.xlu1 %6160, %v6204_v32   ;;  %v6218_v41 = vpop.eup %6217  ;;  %4692 = vperm.xlu0 %6159, %v6216_v26   ;;  %6237 = vrcp.f32 %v4552_v57  ;;  %v4433_v21 = vadd.f32 %v7997_v38, %v4384_v2 }
 0x590   : > { %v6220_v43 = vpop.eup %6219  ;;  %v4434_v3 = vadd.f32 %v7997_v38, %v4387_v20  ;;  %6239 = vpow2.f32 %v5222_v29 }
 0x591   : > { %v6222_v54 = vpop.eup %6221  ;;  %6241 = vpow2.f32 %v5219_v25  ;;  %v5223_v48 = vmul.f32 -1.442695, %v4433_v21 }
 0x592   : > { %v6224_v55 = vpop.eup %6223  ;;  %v4554_v28 = vadd.f32 1.0, %v6222_v54  ;;  %6243 = vrcp.f32 %v4549_v51  ;;  %v4390_v19 = vpop.xlane.xlu0 %4389  ;;  %v5224_v40 = vmul.f32 -1.442695, %v4434_v3 }
 0x593   : > { %v4393_v50 = vpop.xlane.xlu1 %4392  ;;  %4672 = vperm.xlu1 %6160, %v6206_v31   ;;  %v6226_v23 = vpop.eup %6225  ;;  %v4556_v0 = vadd.f32 1.0, %v6224_v55  ;;  %4702 = vperm.xlu0 %6159, %v6220_v43   ;;  %v4435_v62 = vadd.f32 %v7997_v38, %v4390_v19 }
 0x594   : > { %v4436_v42 = vadd.f32 %v7997_v38, %v4393_v50  ;;  %6245 = vrcp.f32 %v4554_v28  ;;  %v6228_v49 = vpop.eup %6227  ;;  %v4553_v8 = vadd.f32 1.0, %v6226_v23 }
 0x595   : > { %6247 = vrcp.f32 %v4551_v5  ;;  %v6230_v16 = vpop.eup %6229  ;;  %v5225_v12 = vmul.f32 -1.442695, %v4435_v62 }
 0x596   : > { %v5226_v47 = vmul.f32 -1.442695, %v4436_v42  ;;  %6249 = vrcp.f32 %v4556_v0  ;;  %v6232_v56 = vpop.eup %6231  ;;  %v4396_v7 = vpop.xlane.xlu0 %4395 }
 0x597   : > { %v4399_v4 = vpop.xlane.xlu1 %4398  ;;  %4677 = vperm.xlu1 %6160, %v6218_v41   ;;  %6251 = vpow2.f32 %v5221_v44  ;;  %4712 = vperm.xlu0 %6159, %v6230_v16   ;;  %v6234_v10 = vpop.eup %6233  ;;  %v4558_v60 = vadd.f32 1.0, %v6232_v56  ;;  %v4437_v31 = vadd.f32 %v7997_v38, %v4396_v7 }
 0x598   : > { %v4438_v11 = vadd.f32 %v7997_v38, %v4399_v4  ;;  %6253 = vpow2.f32 %v5224_v40  ;;  %v6236_v58 = vpop.eup %6235  ;;  %v4104_v40 = vld [vmem:[%s8245_s9] sm:$0x1] }
 0x599   : > { %6255 = vpow2.f32 %v5226_v47  ;;  %v6238_v30 = vpop.eup %6237  ;;  %v4555_v53 = vadd.f32 1.0, %v6236_v58  ;;  %v5227_v45 = vmul.f32 -1.442695, %v4437_v31 }
 0x59a   : > { %v5228_v9 = vmul.f32 -1.442695, %v4438_v11  ;;  %6257 = vrcp.f32 %v4553_v8  ;;  %v6240_v22 = vpop.eup %6239 }
 0x59b   : > { %4687 = vperm.xlu1 %6160, %v6228_v49   ;;  %6259 = vpow2.f32 %v5223_v48  ;;  %4722 = vperm.xlu0 %6159, %v6238_v30   ;;  %v6242_v32 = vpop.eup %6241  ;;  %v4560_v34 = vadd.f32 1.0, %v6240_v22 }
 0x59c   : > { %6261 = vrcp.f32 %v4558_v60  ;;  %v6244_v61 = vpop.eup %6243  ;;  %v4557_v15 = vadd.f32 1.0, %v6242_v32 }
 0x59d   : > { %6263 = vpow2.f32 %v5228_v9 }
 0x59e   : > { %v6246_v36 = vpop.eup %6245  ;;  %6265 = vrcp.f32 %v4560_v34 }
 0x59f   : > { %4697 = vperm.xlu1 %6160, %v6234_v10   ;;  %v6248_v13 = vpop.eup %6247  ;;  %4732 = vperm.xlu0 %6159, %v6246_v36   ;;  %6267 = vpow2.f32 %v5225_v12  ;;  %v4180_v36 = vld [vmem:[%s8247_s11] sm:$0x1] }
 0x5a0   : > { %v6250_v6 = vpop.eup %6249  ;;  %6269 = vrcp.f32 %v4555_v53 }
 0x5a1   : > { %v6252_v17 = vpop.eup %6251  ;;  %6271 = vrcp.f32 %v4557_v15 }
 0x5a2   : > { %v6254_v35 = vpop.eup %6253  ;;  %6273 = vpow2.f32 %v5227_v45  ;;  %v4559_v20 = vadd.f32 1.0, %v6252_v17 }
 0x5a3   : > { %4707 = vperm.xlu1 %6160, %v6244_v61   ;;  %v6256_v57 = vpop.eup %6255  ;;  %v4562_v38 = vadd.f32 1.0, %v6254_v35  ;;  %4742 = vperm.xlu0 %6159, %v6250_v6  }
 0x5a4   : > { %v6258_v46 = vpop.eup %6257  ;;  %v4564_v2 = vadd.f32 1.0, %v6256_v57 }
 0x5a5   : > { %v6260_v29 = vpop.eup %6259  ;;  %6275 = vrcp.f32 %v4562_v38 }
 0x5a6   : > { %v6262_v26 = vpop.eup %6261  ;;  %6277 = vrcp.f32 %v4564_v2  ;;  %v4561_v52 = vadd.f32 1.0, %v6260_v29 }
 0x5a7   : > { %4717 = vperm.xlu1 %6160, %v6248_v13   ;;  %v6264_v25 = vpop.eup %6263  ;;  %4752 = vperm.xlu0 %6159, %v6262_v26   ;;  %6279 = vrcp.f32 %v4559_v20  ;;  %v4631_v26 = vlaneseq }
 0x5a8   : > { %v6266_v41 = vpop.eup %6265  ;;  %v4566_v51 = vadd.f32 1.0, %v6264_v25 }
 0x5a9   : > { %v6268_v43 = vpop.eup %6267 }
 0x5aa   : > { %v6270_v3 = vpop.eup %6269  ;;  %6281 = vrcp.f32 %v4566_v51  ;;  %v4563_v5 = vadd.f32 1.0, %v6268_v43  ;;  %v4632_v51 = vshrl.u32 %v4631_v26, 7 }
 0x5ab   : > { %4727 = vperm.xlu1 %6160, %v6258_v46   ;;  %4762 = vperm.xlu0 %6159, %v6266_v41   ;;  %v6272_v54 = vpop.eup %6271  ;;  %6283 = vrcp.f32 %v4561_v52 }
 0x5ac   : > { %v6274_v50 = vpop.eup %6273  ;;  %6285 = vrcp.f32 %v4563_v5 }
 0x5ad   : > { %v4565_v42 = vadd.f32 1.0, %v6274_v50 }
 0x5af   : > { %4737 = vperm.xlu1 %6160, %v6270_v3   ;;  %v6276_v55 = vpop.eup %6275  ;;  %6287 = vrcp.f32 %v4565_v42  ;;  %v4633_v3 = vsub.s32 0, %v4632_v51  ;;  %v6299_v51 = vld [vmem:[%s6588_s14 + $0x30] sm:$0xff] }
 0x5b0   : > { %4772 = vperm.xlu0 %6159, %v6276_v55   ;;  %v6278_v28 = vpop.eup %6277 }
 0x5b1   : > { %v6280_v23 = vpop.eup %6279 }
 0x5b3   : > { %4747 = vperm.xlu1 %6160, %v6272_v54  }
 0x5b4   : > { %4782 = vperm.xlu0 %6159, %v6278_v28   ;;  %v6282_v44 = vpop.eup %6281 }
 0x5b5   : > { %v6284_v21 = vpop.eup %6283 }
 0x5b6   : > { %v6286_v19 = vpop.eup %6285 }
 0x5b7   : > { %4757 = vperm.xlu1 %6160, %v6280_v23  }
 0x5b8   : > { %4792 = vperm.xlu0 %6159, %v6282_v44  }
 0x5b9   : > { %v6288_v0 = vpop.eup %6287 }
 0x5bb   : > { %4767 = vperm.xlu1 %6160, %v6284_v21  }
 0x5bf   : > { %4777 = vperm.xlu1 %6160, %v6286_v19  }
 0x5c3   : > { %4787 = vperm.xlu1 %6160, %v6288_v0  }
 0x5e9   : > { %v4174_v49 = vpop.f32.mrb[0].mxu0 }
 0x5ea   : > { %v4175_v47 = vadd.f32 %v4174_v49, %v4104_v40  ;;  %v5920_v4 = vpop.f32.mrb[1].mxu0 }
 0x5ec   : > { %v4178_v16 = vmax.f32 %v4175_v47, 0.0 }
 0x5ee   : > { %5924 = vmatmul.mubr.msk.f32.vlgmr.msra.gmra.mrb[0].mxu1 %vm4181_vm5, %v4178_v16 }
 0x5f6   : > { %v4638_v60 = vpop.permute.xlu0 %4637 }
 0x5fa   : > { %v4643_v8 = vpop.permute.xlu1 %4642 }
 0x5fe   : > { %v4648_v11 = vpop.permute.xlu1 %4647 }
 0x602   : > { %v4653_v56 = vpop.permute.xlu1 %4652 }
 0x606   : > { %v4658_v48 = vpop.permute.xlu1 %4657 }
 0x60a   : > { %v4663_v10 = vpop.permute.xlu1 %4662  ;;  %v4683_v7 = vpop.permute.xlu0 %4682 }
 0x60e   : > { %v4668_v62 = vpop.permute.xlu1 %4667  ;;  %v4693_v30 = vpop.permute.xlu0 %4692 }
 0x612   : > { %v4673_v58 = vpop.permute.xlu1 %4672  ;;  %v4703_v32 = vpop.permute.xlu0 %4702 }
 0x616   : > { %v4678_v9 = vpop.permute.xlu1 %4677  ;;  %v4713_v31 = vpop.permute.xlu0 %4712 }
 0x61a   : > { %v4688_v22 = vpop.permute.xlu1 %4687  ;;  %v4723_v61 = vpop.permute.xlu0 %4722 }
 0x61e   : > { %v4698_v12 = vpop.permute.xlu1 %4697  ;;  %v4733_v13 = vpop.permute.xlu0 %4732 }
 0x622   : > { %v4708_v34 = vpop.permute.xlu1 %4707  ;;  %v4743_v38 = vpop.permute.xlu0 %4742 }
 0x626   : > { %v4718_v53 = vpop.permute.xlu1 %4717  ;;  %v4753_v2 = vpop.permute.xlu0 %4752 }
 0x62a   : > { %v4728_v6 = vpop.permute.xlu1 %4727  ;;  %v4763_v41 = vpop.permute.xlu0 %4762 }
 0x62e   : > { %v4738_v57 = vpop.permute.xlu1 %4737 }
 0x62f   : > { %v4773_v43 = vpop.permute.xlu0 %4772 }
 0x632   : > { %v4748_v46 = vpop.permute.xlu1 %4747 }
 0x633   : > { %v4783_v55 = vpop.permute.xlu0 %4782 }
 0x636   : > { %v4758_v25 = vpop.permute.xlu1 %4757 }
 0x63a   : > { %v4768_v52 = vpop.permute.xlu1 %4767 }
 0x63e   : > { %v4778_v50 = vpop.permute.xlu1 %4777 }
 0x6c1   : > { %v4255_v15 = vpop.f32.mrb[0].mxu1 }
 0x6c2   : > { %v4256_v45 = vadd.f32 %v4255_v15, %v4180_v36  ;;  %v5925_v17 = vpop.f32.mrb[1].mxu1 }
 0x6c4   : > { %v5194_v35 = vmul.f32 -1.442695, %v4256_v45 }
 0x6c6   : > { %6289 = vpow2.f32 %v5194_v35 }
 0x6d0   : > { %v6290_v29 = vpop.eup %6289 }
 0x6d1   : > { %v4262_v20 = vadd.f32 1.0, %v6290_v29 }
 0x6d3   : > { %6291 = vrcp.f32 %v4262_v20 }
 0x6dd   : > { %v6292_v54 = vpop.eup %6291 }
 0x6de   : > { %v4634_v5 = vrot.slane %v6292_v54, %v4633_v3  ;;  %v6301_v54 = vld [vmem:[%s6588_s14 + $0x40] sm:$0xff] }
 0x6e0   : > { %v4795_v28 = vadd.f32 %v4638_v60, %v4634_v5  ;;  %v4796_v42 = vadd.f32 %v4643_v8, %v4634_v5  ;;  %v4797_v23 = vadd.f32 %v4648_v11, %v4634_v5  ;;  %v4798_v44 = vadd.f32 %v4653_v56, %v4634_v5 }
 0x6e1   : > { %v4799_v21 = vadd.f32 %v4658_v48, %v4634_v5  ;;  %v4800_v19 = vadd.f32 %v4663_v10, %v4634_v5  ;;  %v4801_v0 = vadd.f32 %v4668_v62, %v4634_v5  ;;  %v4802_v40 = vadd.f32 %v4673_v58, %v4634_v5  ;;  %v4788_v10 = vpop.permute.xlu1 %4787  ;;  %v4793_v62 = vpop.permute.xlu0 %4792 }
 0x6e2   : > { %v4803_v49 = vadd.f32 %v4678_v9, %v4634_v5  ;;  %v4804_v47 = vadd.f32 %v4683_v7, %v4634_v5  ;;  %v4805_v4 = vadd.f32 %v4688_v22, %v4634_v5  ;;  %v4806_v16 = vadd.f32 %v4693_v30, %v4634_v5 }
 0x6e3   : > { %v4807_v36 = vadd.f32 %v4698_v12, %v4634_v5  ;;  %v4808_v15 = vadd.f32 %v4703_v32, %v4634_v5  ;;  %v4809_v45 = vadd.f32 %v4708_v34, %v4634_v5  ;;  %v4810_v17 = vadd.f32 %v4713_v31, %v4634_v5  ;;  %v6293_v34 = vld [vmem:[%s6588_s14] sm:$0xff] }
 0x6e4   : > { %v4811_v35 = vadd.f32 %v4718_v53, %v4634_v5  ;;  %v4812_v29 = vadd.f32 %v4723_v61, %v4634_v5  ;;  %v4813_v20 = vadd.f32 %v4728_v6, %v4634_v5  ;;  %v4814_v60 = vadd.f32 %v4733_v13, %v4634_v5  ;;  %v6294_v53 = vld [vmem:[%s6588_s14 + $0x8] sm:$0xff]  ;;  %v6295_v6 = vld [vmem:[%s6588_s14 + $0x10] sm:$0xff] }
 0x6e5   : > { %v8040_v8 = vadd.f32 %v4738_v57, %v4634_v5  ;;  %v8042_v11 = vadd.f32 %v4743_v38, %v4634_v5  ;;  %v8044_v56 = vadd.f32 %v4748_v46, %v4634_v5  ;;  %v8046_v48 = vadd.f32 %v4753_v2, %v4634_v5  ;;  %v6296_v38 = vld [vmem:[%s6588_s14 + $0x18] sm:$0xff]  ;;  %v6297_v2 = vld [vmem:[%s6588_s14 + $0x20] sm:$0xff] }
 0x6e6   : > { %v8048_v58 = vadd.f32 %v4758_v25, %v4634_v5  ;;  %v8050_v7 = vadd.f32 %v4763_v41, %v4634_v5  ;;  %v8052_v9 = vadd.f32 %v4768_v52, %v4634_v5  ;;  %v8054_v30 = vadd.f32 %v4773_v43, %v4634_v5  ;;  %v6298_v25 = vld [vmem:[%s6588_s14 + $0x28] sm:$0xff]  ;;  %v6300_v43 = vld [vmem:[%s6588_s14 + $0x38] sm:$0xff] }
 0x6e7   : > { %v8056_v22 = vadd.f32 %v4778_v50, %v4634_v5  ;;  %v8058_v32 = vadd.f32 %v4783_v55, %v4634_v5  ;;  %v8060_v12 = vadd.f32 %v4788_v10, %v4634_v5  ;;  %v8062_v31 = vadd.f32 %v4793_v62, %v4634_v5  ;;  %v6302_v50 = vld [vmem:[%s6588_s14 + $0x48] sm:$0xff]  ;;  %v6311_v62 = vld [vmem:[%s6588_s14 + $0x90] sm:$0xff] }
 0x6e8   : > { %v4827_v61 = vmul.f32 %v6293_v34, %v4795_v28  ;;  %v4828_v13 = vmul.f32 %v6294_v53, %v4796_v42  ;;  %v4829_v57 = vmul.f32 %v6295_v6, %v4797_v23  ;;  %v4830_v46 = vmul.f32 %v6296_v38, %v4798_v44  ;;  %v6303_v28 = vld [vmem:[%s6588_s14 + $0x50] sm:$0xff]  ;;  %v6304_v23 = vld [vmem:[%s6588_s14 + $0x58] sm:$0xff]  ;;  %v6310_v10 = vld [vmem:[%s6588_s14 + $0x88] sm:$0xff] }
 0x6e9   : > { %v4831_v26 = vmul.f32 %v6297_v2, %v4799_v21  ;;  %v4832_v41 = vmul.f32 %v6298_v25, %v4800_v19  ;;  %v4833_v52 = vmul.f32 %v6299_v51, %v4801_v0  ;;  %v4834_v3 = vmul.f32 %v6300_v43, %v4802_v40  ;;  %v6305_v21 = vld [vmem:[%s6588_s14 + $0x60] sm:$0xff]  ;;  %v6306_v0 = vld [vmem:[%s6588_s14 + $0x68] sm:$0xff]  ;;  %v6312_v34 = vld [vmem:[%s6588_s14 + $0x98] sm:$0xff] }
 0x6ea   : > { %v4835_v5 = vmul.f32 %v6301_v54, %v4803_v49  ;;  %v4836_v55 = vmul.f32 %v6302_v50, %v4804_v47  ;;  %v4837_v42 = vmul.f32 %v6303_v28, %v4805_v4  ;;  %v4838_v44 = vmul.f32 %v6304_v23, %v4806_v16  ;;  %4859 = vst.msk [vmem:[%s6588_s14] sm:$0xff] %vm2458_vm2, %v4827_v61  ;;  %v6307_v49 = vld [vmem:[%s6588_s14 + $0x70] sm:$0xff]  ;;  %v6308_v4 = vld [vmem:[%s6588_s14 + $0x78] sm:$0xff]  ;;  %v6314_v53 = vld [vmem:[%s6588_s14 + $0xa8] sm:$0xff] }
 0x6eb   : > { %4860 = vst.msk [vmem:[%s6588_s14 + $0x8] sm:$0xff] %vm2458_vm2, %v4828_v13  ;;  %4861 = vst.msk [vmem:[%s6588_s14 + $0x10] sm:$0xff] %vm2458_vm2, %v4829_v57  ;;  %v4839_v19 = vmul.f32 %v6305_v21, %v4807_v36  ;;  %v4840_v40 = vmul.f32 %v6306_v0, %v4808_v15  ;;  %v4841_v47 = vmul.f32 %v6307_v49, %v4809_v45  ;;  %v6309_v36 = vld [vmem:[%s6588_s14 + $0x80] sm:$0xff] }
 0x6ec   : > { %4862 = vst.msk [vmem:[%s6588_s14 + $0x18] sm:$0xff] %vm2458_vm2, %v4830_v46  ;;  %v4842_v16 = vmul.f32 %v6308_v4, %v4810_v17  ;;  %4863 = vst.msk [vmem:[%s6588_s14 + $0x20] sm:$0xff] %vm2458_vm2, %v4831_v26  ;;  %v4843_v15 = vmul.f32 %v6309_v36, %v4811_v35  ;;  %v4844_v45 = vmul.f32 %v6310_v10, %v4812_v29  ;;  %v6313_v35 = vld [vmem:[%s6588_s14 + $0xa0] sm:$0xff] }
 0x6ed   : > { %4864 = vst.msk [vmem:[%s6588_s14 + $0x28] sm:$0xff] %vm2458_vm2, %v4832_v41  ;;  %4865 = vst.msk [vmem:[%s6588_s14 + $0x30] sm:$0xff] %vm2458_vm2, %v4833_v52  ;;  %v4845_v17 = vmul.f32 %v6311_v62, %v4813_v20  ;;  %v4846_v61 = vmul.f32 %v6312_v34, %v4814_v60  ;;  %v4847_v29 = vmul.f32 %v6313_v35, %v8040_v8 }
 0x6ee   : > { %4866 = vst.msk [vmem:[%s6588_s14 + $0x38] sm:$0xff] %vm2458_vm2, %v4834_v3  ;;  %4867 = vst.msk [vmem:[%s6588_s14 + $0x40] sm:$0xff] %vm2458_vm2, %v4835_v5  ;;  %v4848_v20 = vmul.f32 %v6314_v53, %v8042_v11  ;;  %v4849_v60 = vmul.f32 %v8044_v56, %v7902_v59  ;;  %v4850_v13 = vmul.f32 %v8046_v48, %v7907_v33 }
 0x6ef   : > { %4868 = vst.msk [vmem:[%s6588_s14 + $0x48] sm:$0xff] %vm2458_vm2, %v4836_v55  ;;  %4869 = vst.msk [vmem:[%s6588_s14 + $0x50] sm:$0xff] %vm2458_vm2, %v4837_v42  ;;  %v4851_v8 = vmul.f32 %v8048_v58, %v7915_v18  ;;  %v4852_v59 = vmul.f32 %v8050_v7, %v7921_v39  ;;  %v4853_v33 = vmul.f32 %v8052_v9, %v7929_v14 }
 0x6f0   : > { %4870 = vst.msk [vmem:[%s6588_s14 + $0x58] sm:$0xff] %vm2458_vm2, %v4838_v44  ;;  %4871 = vst.msk [vmem:[%s6588_s14 + $0x60] sm:$0xff] %vm2458_vm2, %v4839_v19  ;;  %v4854_v11 = vmul.f32 %v8054_v30, %v7935_v1  ;;  %v4855_v18 = vmul.f32 %v8056_v22, %v7943_v24  ;;  %v4856_v39 = vmul.f32 %v8058_v32, %v7950_v27 }
 0x6f1   : > { %4872 = vst.msk [vmem:[%s6588_s14 + $0x68] sm:$0xff] %vm2458_vm2, %v4840_v40  ;;  %4873 = vst.msk [vmem:[%s6588_s14 + $0x70] sm:$0xff] %vm2458_vm2, %v4841_v47  ;;  %v4857_v14 = vmul.f32 %v8060_v12, %v7959_v63  ;;  %v4858_v1 = vmul.f32 %v8062_v31, %v7966_v37 }
 0x6f2   : > { %4874 = vst.msk [vmem:[%s6588_s14 + $0x78] sm:$0xff] %vm2458_vm2, %v4842_v16  ;;  %4875 = vst.msk [vmem:[%s6588_s14 + $0x80] sm:$0xff] %vm2458_vm2, %v4843_v15 }
 0x6f3   : > { %4876 = vst.msk [vmem:[%s6588_s14 + $0x88] sm:$0xff] %vm2458_vm2, %v4844_v45  ;;  %4877 = vst.msk [vmem:[%s6588_s14 + $0x90] sm:$0xff] %vm2458_vm2, %v4845_v17 }
 0x6f4   : > { %4878 = vst.msk [vmem:[%s6588_s14 + $0x98] sm:$0xff] %vm2458_vm2, %v4846_v61  ;;  %4879 = vst.msk [vmem:[%s6588_s14 + $0xa0] sm:$0xff] %vm2458_vm2, %v4847_v29 }
 0x6f5   : > { %4880 = vst.msk [vmem:[%s6588_s14 + $0xa8] sm:$0xff] %vm2458_vm2, %v4848_v20  ;;  %4881 = vst.msk [vmem:[%s6588_s14 + $0xb0] sm:$0xff] %vm2458_vm2, %v4849_v60 }
 0x6f6   : > { %4882 = vst.msk [vmem:[%s6588_s14 + $0xb8] sm:$0xff] %vm2458_vm2, %v4850_v13  ;;  %4883 = vst.msk [vmem:[%s6588_s14 + $0xc0] sm:$0xff] %vm2458_vm2, %v4851_v8 }
 0x6f7   : > { %4884 = vst.msk [vmem:[%s6588_s14 + $0xc8] sm:$0xff] %vm2458_vm2, %v4852_v59  ;;  %4885 = vst.msk [vmem:[%s6588_s14 + $0xd0] sm:$0xff] %vm2458_vm2, %v4853_v33 }
 0x6f8   : > { %4886 = vst.msk [vmem:[%s6588_s14 + $0xd8] sm:$0xff] %vm2458_vm2, %v4854_v11  ;;  %4887 = vst.msk [vmem:[%s6588_s14 + $0xe0] sm:$0xff] %vm2458_vm2, %v4855_v18 }
 0x6f9   : > { %4888 = vst.msk [vmem:[%s6588_s14 + $0xe8] sm:$0xff] %vm2458_vm2, %v4856_v39  ;;  %4889 = vst.msk [vmem:[%s6588_s14 + $0xf0] sm:$0xff] %vm2458_vm2, %v4857_v14 }
 0x6fa   : > { %4890 = vst.msk [vmem:[%s6588_s14 + $0xf8] sm:$0xff] %vm2458_vm2, %v4858_v1 }
 0x6fb PF: > { %s5240_s24 = sshll.u32 %s6397_s19, 12  ;;  %s8276_s15 = sld [smem:[#allocation19_spill]] }
 0x6fc   : > { %s4905_s17 = sshll.u32 %s6588_s14, 4  ;;  %s8278_s27 = sand.u32 1, %s6385_s16   ;;  %s8179_s17 = int_to_ptr.vmem [resolvable:$true] %s4905_s17 }
 0x6fd   : > { %s8183_s30 = scalar_lea.sflag [#allocation8], %s8278_s27  ;;  %s6315_s23 = scalar_lea.vmem %s8179_s17, 4096 }
 0x6fe   : > { %p6316_p4 = scmp.ne.s32.totalorder %s8179_s17, %s6315_s23  ;;  %s6422_s19 = smov [#allocation7]  }
 0x6ff   : > { %s6319_s28 = sshll.u32 %s6422_s19, 4  ;;  %s6320_s28 = int_to_ptr.vmem [resolvable:$false] %s6319_s28 }
 0x700   : > { %p6317_p5 = pnand %p6316_p4, %p6551_p3  ;;  %s6321_s21 = scalar_lea.vmem %s6320_s28, 8192 }
 0x701   : > { %s8277_s25 = smov %s8276_s15  ;;  %s8176_s18 = scalar_lea.hbm %s8276_s15, %s5240_s24 }
 0x702   : > { %p6318_p6 = pneg %p6317_p5  ;;  %p6322_p7 = scmp.lt.s32.totalorder %s8179_s17, %s6320_s28 }
 0x703   : > { %p6323_p8 = scmp.lt.s32.totalorder %s6321_s21, %s6315_s23 }
 0x705   : > { %p6324_p10 = por %p6323_p8, %p6322_p7 }
 0x707   : > { %p6325_p11 = pnand %p6324_p10, %p6318_p6 }
 0x709   : > { %6328 = shalt.err (!%p6325_p11)
}
 0x70a   : > { %s6329_s14 = scalar_lea.hbm %s8176_s18, 4096  ;;  %s6333_s24 = scalar_lea.hbm %s8277_s25, 8192 }
 0x70b   : > { %p6330_p12 = scmp.ne.s32.totalorder %s8176_s18, %s6329_s14  ;;  %p6334_p1 = scmp.lt.u32.totalorder %s8176_s18, %s8277_s25 }
 0x70c   : > { %p6335_p2 = scmp.lt.u32.totalorder %s6333_s24, %s6329_s14  ;;  %p6337_p5 = scmp.lt.u32.totalorder %s6329_s14, %s8176_s18 }
 0x70d   : > { %p6331_p13 = pnand %p6330_p12, %p6551_p3 }
 0x70e   : > { %p6336_p4 = por %p6335_p2, %p6334_p1 }
 0x70f   : > { %p6332_p0 = pneg %p6331_p13 }
 0x710   : > { %p6338_p6 = por %p6337_p5, %p6336_p4 }
 0x712   : > { %p6339_p7 = pnand %p6338_p6, %p6332_p0 }
 0x714   : > { %6342 = shalt.err (!%p6339_p7)
}
 0x715   : > { %s6423_s15 = smov 128   ;;  %s8279_s27 = smov 8  }
 0x716   : > { %5932 = dma.vmem_to_hbm [thread:$0]  (%p6551_p3), %s8179_s17, 4096, %s8176_s18, %s8183_s30, %s6423_s15, %s6423_s15, %s8279_s27  }
 0x717 PF: > { %s8280_s23 = sld [smem:[#allocation14_spill]]  ;;  %s8281_s19 = sld [smem:[#allocation10_spill]] }
 0x71d   : > { %p5938_p8 = scmp.ge.s32.totalorder %s8280_s23, 2  ;;  %s4920_s21 = sand.u32 1, %s8281_s19  }
 0x71e   : > { %s4921_s14 = scalar_lea.sflag [#allocation8], %s4920_s21 }
 0x71f   : > { %p5935_p10 = pnand %p5938_p8, %p6561_p9 }
 0x721   : > { %6376 = dma.done.wait (!%p5935_p10), %s4921_s14, 4096  }
 0x722   : > { %6378 = vsyncadd (!%p5935_p10), %s4921_s14, 4294963200  ;;  %s29_s22 = sadd.s32 1, %s8280_s23   ;;  %s8283_s26 = sld [smem:[#allocation11_spill]] }
 0x723   : > { %p26_p11 = scmp.ge.s32.totalorder %s29_s22, 6   ;;  %s8284_s17 = sld [smem:[#allocation18_spill]] }
 0x724   : > { %s8285_s18 = sld [smem:[#allocation12_spill]]  ;;  %s8286_s19 = sld [smem:[#allocation13_spill]] }
 0x725   : > { %s8287_s20 = sld [smem:[#allocation15_spill]]  ;;  %s8288_s21 = sld [smem:[#allocation16_spill]] }
 0x726   : > { %s8289_s15 = smov %s6385_s16  ;;  %28 = sbr.rel (!%p26_p11) target bundleno = 8 (0x8), region = 156 }
 0x728   : > { %s8290_s16 = smov %s8283_s26 }
 0x72d   :  { %4926 = vsyncpa [#allocation8], 1 }
 0x72e   :  { %4928 = vsyncpa [#allocation8 + $0x1], 1 }

</bundles_post_ra>
